<compile_context>
chip_gen: v5e
topology: v5e:2x2
jax: 0.10.0
libtpu: 0.0.40
codegen_flags: <defaults>
</compile_context>

<pallas_src>
import functools

import jax
import jax.numpy as jnp
import numpy as np
from jax import lax
from jax.experimental import pallas as pl
from jax.experimental.pallas import tpu as pltpu


def _sigmoid(x):
    # Single-EUP sigmoid: 0.5*(tanh(0.5*x)+1) — one tanh push instead of exp+div.
    return 0.5 * (jnp.tanh(0.5 * x) + 1.0)


def _lstm_cell(gates, c, H):
    # Gate column order is [i, f, o, g]: one fused sigmoid over the first 3H lanes.
    sg = _sigmoid(gates[:, :3 * H])
    i = sg[:, 0 * H:1 * H]
    f = sg[:, 1 * H:2 * H]
    o = sg[:, 2 * H:3 * H]
    g = jnp.tanh(gates[:, 3 * H:4 * H])
    c_new = f * c + i * g
    h_new = o * jnp.tanh(c_new)
    return h_new, c_new


# ----------------------------------------------------------------------------
# Fused per-layer kernel (single program): input projection for both
# directions in one big GEMM into VMEM scratch, then the interleaved
# fwd/bwd recurrence over that scratch.
#
#   refs = (src_0 .. src_{S-1},   # (R, chunk) bf16, R = T*B  (S=1 layer0, 2 else)
#           w_in,                 # (S, chunk, 8H) bf16; cols [:4H]=fwd, [4H:]=bwd
#           bias,                 # (1, 8H) f32  (b_ih + b_hh, both directions)
#           w_rec,                # (2, H, 4H) f32; [0]=fwd Whh^T, [1]=bwd Whh^T
#           y_f, y_b,             # (R, H) bf16 outputs
#           gx)                   # (R, 8H) f32 VMEM scratch
# ----------------------------------------------------------------------------
def _bilstm_layer_kernel(*refs, S, T, B, H):
    src_refs = refs[:S]
    w_in_ref, b_ref, wrec_ref, yf_ref, yb_ref, gx_ref = refs[S:]
    G = 4 * H

    # --- input projection: one MXU GEMM over all T*B rows, both dirs fused.
    acc = jnp.dot(src_refs[0][...], w_in_ref[0],
                  preferred_element_type=jnp.float32)
    for s in range(1, S):                       # static unroll (S is 1 or 2)
        acc = acc + jnp.dot(src_refs[s][...], w_in_ref[s],
                            preferred_element_type=jnp.float32)
    gx_ref[...] = acc + b_ref[...]

    # --- recurrence: fwd step s and bwd step T-1-s interleaved in one body.
    # Recurrent weights hoisted out of the loop (stay resident across steps).
    wrec_f = wrec_ref[0]
    wrec_b = wrec_ref[1]

    def step(s, carry):
        h_f, c_f, h_b, c_b = carry
        t_f = s
        t_b = T - 1 - s
        # h kept f32 on the recurrent matmul (avoids bf16 feedback drift).
        rec_f = jnp.dot(h_f, wrec_f, preferred_element_type=jnp.float32)
        rec_b = jnp.dot(h_b, wrec_b, preferred_element_type=jnp.float32)
        g_f = gx_ref[pl.ds(t_f * B, B)][:, :G] + rec_f
        g_b = gx_ref[pl.ds(t_b * B, B)][:, G:] + rec_b
        h_f, c_f = _lstm_cell(g_f, c_f, H)
        h_b, c_b = _lstm_cell(g_b, c_b, H)
        yf_ref[pl.ds(t_f * B, B)] = h_f.astype(yf_ref.dtype)
        yb_ref[pl.ds(t_b * B, B)] = h_b.astype(yb_ref.dtype)
        return h_f, c_f, h_b, c_b

    z = jnp.zeros((B, H), jnp.float32)
    unroll = True if T <= 32 else 4
    lax.fori_loop(0, T, step, (z, z, z, z), unroll=unroll)


def _bilstm_layer(srcs, layer, *, T, B):
    """srcs: tuple of (R, chunk) bf16 arrays -> (y_f, y_b), each (R, H) bf16."""
    S = len(srcs)
    R = T * B
    chunk = srcs[0].shape[1]
    w_in, bias, w_rec = layer["w_in"], layer["bias"], layer["w_rec"]
    G8 = w_in.shape[-1]          # 8H
    H = G8 // 8
    G = 4 * H

    kernel = functools.partial(_bilstm_layer_kernel, S=S, T=T, B=B, H=H)

    in_specs = ([pl.BlockSpec((R, chunk), lambda i: (0, 0)) for _ in range(S)] +
                [pl.BlockSpec((S, chunk, G8), lambda i: (0, 0, 0)),
                 pl.BlockSpec((1, G8), lambda i: (0, 0)),
                 pl.BlockSpec((2, H, G), lambda i: (0, 0, 0))])
    out_specs = (pl.BlockSpec((R, H), lambda i: (0, 0)),
                 pl.BlockSpec((R, H), lambda i: (0, 0)))

    # VMEM budget sized from the actual resident buffers (+ generous margin).
    in_bytes = (sum(int(np.prod(s.shape)) * s.dtype.itemsize for s in srcs)
                + w_in.size * w_in.dtype.itemsize
                + bias.size * bias.dtype.itemsize
                + w_rec.size * w_rec.dtype.itemsize)
    out_bytes = 2 * R * H * 2
    scratch_bytes = R * G8 * 4
    vmem_limit = int(2 * (in_bytes + out_bytes) + scratch_bytes) + (8 << 20)

    flops = 2 * R * (S * chunk) * G8 + 2 * T * (2 * B * H * G)
    transcendentals = 2 * T * B * 5 * H
    bytes_accessed = in_bytes + out_bytes

    return pl.pallas_call(
        kernel,
        out_shape=(jax.ShapeDtypeStruct((R, H), jnp.bfloat16),
                   jax.ShapeDtypeStruct((R, H), jnp.bfloat16)),
        grid_spec=pltpu.PrefetchScalarGridSpec(
            num_scalar_prefetch=0,
            grid=(1,),
            in_specs=in_specs,
            out_specs=out_specs,
            scratch_shapes=[pltpu.VMEM((R, G8), jnp.float32)]),
        compiler_params=pltpu.CompilerParams(
            dimension_semantics=("arbitrary",),
            vmem_limit_bytes=vmem_limit),
        cost_estimate=pl.CostEstimate(
            flops=int(flops),
            transcendentals=int(transcendentals),
            bytes_accessed=int(bytes_accessed)),
    )(*srcs, w_in, bias, w_rec)


# ----------------------------------------------------------------------------
# Full module forward (dropout == identity in eval mode).
# ----------------------------------------------------------------------------
def bilstm_rnn_forward(x, packed):
    T, B, D = x.shape
    srcs = (x.astype(jnp.bfloat16).reshape(T * B, D),)    # cast once, in wrapper
    for layer in packed["layers"]:
        y_f, y_b = _bilstm_layer(srcs, layer, T=T, B=B)
        srcs = (y_f, y_b)                                 # bf16, no concat/stack
    last_f = srcs[0][(T - 1) * B:].astype(jnp.float32)    # fwd hidden at t = T-1
    last_b = srcs[1][(T - 1) * B:].astype(jnp.float32)    # bwd hidden at t = T-1
    # Final Linear in plain XLA (tiny B, O); fc_w split so no concat is needed.
    return last_f @ packed["fc_wf"] + last_b @ packed["fc_wb"] + packed["fc_b"]


# ----------------------------------------------------------------------------
# Wrapper-side weight packing (layout plumbing, done once outside jit):
#  - gate rows reordered from PyTorch [i, f, g, o] to [i, f, o, g];
#  - Wih transposed to (Din, 4H), split into per-source input chunks, the two
#    directions concatenated along the output axis to (chunk, 8H), cast bf16;
#  - Whh transposed to (H, 4H) per direction, stacked (2, H, 4H), kept f32;
#  - b_ih + b_hh folded into one f32 bias shaped (1, 8H);
#  - fc_w split into the fwd / bwd column blocks (pre-transposed).
# ----------------------------------------------------------------------------
def _reorder_ifog(w):
    """Leading axis is 4H in PyTorch gate order [i, f, g, o] -> [i, f, o, g]."""
    H = w.shape[0] // 4
    return jnp.concatenate([w[:2 * H], w[3 * H:4 * H], w[2 * H:3 * H]], axis=0)


def pack_params(params):
    H = params["lstm"][0]["fwd"][1].shape[1]
    layers = []
    for li, layer in enumerate(params["lstm"]):
        n_src = 1 if li == 0 else 2
        wih_dirs, wrec_dirs, b_dirs = [], [], []
        for direction in ("fwd", "bwd"):
            wih, whh, b = layer[direction]
            wih_dirs.append(_reorder_ifog(wih))            # (4H, Din)
            wrec_dirs.append(_reorder_ifog(whh).T)         # (H, 4H)
            b_dirs.append(_reorder_ifog(b))                # (4H,)
        din_total = wih_dirs[0].shape[1]
        chunk = din_total // n_src
        w_in_srcs = []
        for s in range(n_src):
            cols = [w[:, s * chunk:(s + 1) * chunk].T for w in wih_dirs]
            w_in_srcs.append(jnp.concatenate(cols, axis=1))  # (chunk, 8H)
        layers.append({
            "w_in": jnp.stack(w_in_srcs).astype(jnp.bfloat16),   # (S, chunk, 8H)
            "bias": jnp.concatenate(b_dirs).reshape(1, 8 * H).astype(jnp.float32),
            "w_rec": jnp.stack(wrec_dirs).astype(jnp.float32),   # (2, H, 4H)
        })
    fc_w = params["fc_w"]                                        # (O, 2H)
    return {
        "layers": layers,
        "fc_wf": jnp.asarray(fc_w[:, :H].T, jnp.float32),        # (H, O)
        "fc_wb": jnp.asarray(fc_w[:, H:].T, jnp.float32),        # (H, O)
        "fc_b": jnp.asarray(params["fc_b"], jnp.float32),
    }


# ----------------------------------------------------------------------------
# Deterministic parameter init (PyTorch-like uniform(-1/sqrt(H), 1/sqrt(H))).
# PyTorch's two LSTM biases (b_ih, b_hh) are summed (identical forward).
# ----------------------------------------------------------------------------
def init_params(key, input_dim, hidden_dim, output_dim, n_layers):
    k = 1.0 / np.sqrt(hidden_dim)
    params = {"lstm": []}
    for l in range(n_layers):
        d_in = input_dim if l == 0 else 2 * hidden_dim
        layer = {}
        for direction in ("fwd", "bwd"):
            key, k1, k2, k3, k4 = jax.random.split(key, 5)
            wih = jax.random.uniform(k1, (4 * hidden_dim, d_in), jnp.float32, -k, k)
            whh = jax.random.uniform(k2, (4 * hidden_dim, hidden_dim), jnp.float32, -k, k)
            b_ih = jax.random.uniform(k3, (4 * hidden_dim,), jnp.float32, -k, k)
            b_hh = jax.random.uniform(k4, (4 * hidden_dim,), jnp.float32, -k, k)
            layer[direction] = (wih, whh, b_ih + b_hh)
        params["lstm"].append(layer)
    key, k1, k2 = jax.random.split(key, 3)
    kf = 1.0 / np.sqrt(2 * hidden_dim)
    params["fc_w"] = jax.random.uniform(k1, (output_dim, 2 * hidden_dim),
                                        jnp.float32, -kf, kf)
    params["fc_b"] = jax.random.uniform(k2, (output_dim,), jnp.float32, -kf, kf)
    return params


# ----------------------------------------------------------------------------
# Pure-JAX f32 reference (correctness check only). Canonical gate order [i,f,g,o].
# ----------------------------------------------------------------------------
def _cell_ref(x_t, h, c, wih, whh, b):
    gates = x_t @ wih.T + h @ whh.T + b
    H = whh.shape[1]
    i = jax.nn.sigmoid(gates[:, 0 * H:1 * H])
    f = jax.nn.sigmoid(gates[:, 1 * H:2 * H])
    g = jnp.tanh(gates[:, 2 * H:3 * H])
    o = jax.nn.sigmoid(gates[:, 3 * H:4 * H])
    c = f * c + i * g
    h = o * jnp.tanh(c)
    return h, c


def bilstm_rnn_reference(x, params):
    T, B, _ = x.shape
    h_in = x
    for layer in params["lstm"]:
        (wih_f, whh_f, b_f) = layer["fwd"]
        (wih_b, whh_b, b_b) = layer["bwd"]
        H = whh_f.shape[1]
        hf = jnp.zeros((B, H)); cf = jnp.zeros((B, H))
        hb = jnp.zeros((B, H)); cb = jnp.zeros((B, H))
        outs_f, outs_b = [], []
        for t in range(T):
            hf, cf = _cell_ref(h_in[t], hf, cf, wih_f, whh_f, b_f)
            outs_f.append(hf)
        for t in range(T - 1, -1, -1):
            hb, cb = _cell_ref(h_in[t], hb, cb, wih_b, whh_b, b_b)
            outs_b.append(hb)
        outs_b = outs_b[::-1]
        h_in = jnp.stack([jnp.concatenate([f, b], axis=-1)
                          for f, b in zip(outs_f, outs_b)], axis=0)
    last = h_in[-1]
    return last @ params["fc_w"].T + params["fc_b"]


if __name__ == "__main__":
    T, B = 8, 2                # seq_len, batch
    input_dim, hidden_dim, output_dim, n_layers = 16, 32, 4, 2

    key = jax.random.PRNGKey(0)
    key, xkey = jax.random.split(key)
    x = jax.random.normal(xkey, (T, B, input_dim), jnp.float32)

    params = init_params(key, input_dim, hidden_dim, output_dim, n_layers)
    packed = pack_params(params)

    fwd = jax.jit(functools.partial(bilstm_rnn_forward, packed=packed))
    out = jax.block_until_ready(fwd(x))

    ref = bilstm_rnn_reference(x, params)
    # Tolerance loosened vs the f32 reference: projection operands and the
    # inter-layer activations are bf16 (f32 accumulation; recurrent path f32).
    np.testing.assert_allclose(np.asarray(out), np.asarray(ref),
                               rtol=2e-2, atol=2e-2)

    assert out.shape == (B, output_dim)
    print("KERNEL_OK")
</pallas_src>

<mosaic_0001>
module attributes {stable_mosaic.version = 11 : i64} {
  func.func @_bilstm_layer_kernel(%arg0: i32, %arg1: memref<16x16xbf16, #tpu.memory_space<vmem>>, %arg2: memref<1x16x256xbf16, #tpu.memory_space<vmem>>, %arg3: memref<1x256xf32, #tpu.memory_space<vmem>>, %arg4: memref<2x32x128xf32, #tpu.memory_space<vmem>>, %arg5: memref<16x32xbf16, #tpu.memory_space<vmem>>, %arg6: memref<16x32xbf16, #tpu.memory_space<vmem>>, %arg7: memref<16x256xf32, #tpu.memory_space<vmem>>) attributes {dimension_semantics = [#tpu.dimension_semantics<arbitrary>], iteration_bounds = array<i64: 1>, scalar_prefetch = 0 : i64, scratch_operands = 1 : i64, tpu.core_type = #tpu.core_type<tc>, window_params = [{pipeline_mode = #tpu.pipeline_mode<synchronous>, transform_indices = @transform_0, window_bounds = array<i64: 16, 16>}, {pipeline_mode = #tpu.pipeline_mode<synchronous>, transform_indices = @transform_1, window_bounds = array<i64: 1, 16, 256>}, {pipeline_mode = #tpu.pipeline_mode<synchronous>, transform_indices = @transform_2, window_bounds = array<i64: 1, 256>}, {pipeline_mode = #tpu.pipeline_mode<synchronous>, transform_indices = @transform_3, window_bounds = array<i64: 2, 32, 128>}, {pipeline_mode = #tpu.pipeline_mode<synchronous>, transform_indices = @transform_4, window_bounds = array<i64: 16, 32>}, {pipeline_mode = #tpu.pipeline_mode<synchronous>, transform_indices = @transform_5, window_bounds = array<i64: 16, 32>}]} {
    %c0 = arith.constant 0 : index
    %c0_0 = arith.constant 0 : index
    %0 = vector.load %arg1[%c0, %c0_0] : memref<16x16xbf16, #tpu.memory_space<vmem>>, vector<16x16xbf16>
    %c0_1 = arith.constant 0 : index
    %c0_2 = arith.constant 0 : index
    %c0_3 = arith.constant 0 : index
    %1 = vector.load %arg2[%c0_1, %c0_2, %c0_3] : memref<1x16x256xbf16, #tpu.memory_space<vmem>>, vector<1x16x256xbf16>
    %2 = vector.shape_cast %1 : vector<1x16x256xbf16> to vector<16x256xbf16>
    %cst = arith.constant dense<0.000000e+00> : vector<16x256xf32>
    %3 = tpu.matmul %0, %2, %cst {dimension_numbers = #tpu.dot_dimension_numbers<[1], [0], [0], [1], [0, 0, 1, 1], [], []>} : vector<16x16xbf16>, vector<16x256xbf16>, vector<16x256xf32> -> vector<16x256xf32>
    %c0_4 = arith.constant 0 : index
    %c0_5 = arith.constant 0 : index
    %4 = vector.load %arg3[%c0_4, %c0_5] : memref<1x256xf32, #tpu.memory_space<vmem>>, vector<1x256xf32>
    %5 = vector.broadcast %4 : vector<1x256xf32> to vector<16x256xf32>
    %6 = arith.addf %3, %5 : vector<16x256xf32>
    %c0_6 = arith.constant 0 : index
    %c0_7 = arith.constant 0 : index
    %7 = vector.load %arg7[%c0_6, %c0_7] : memref<16x256xf32, #tpu.memory_space<vmem>>, vector<16x256xf32>
    tpu.vector_store %arg7[%c0_6, %c0_7], %6 {strides = array<i32>} : memref<16x256xf32, #tpu.memory_space<vmem>>, vector<16x256xf32>,
    %c0_8 = arith.constant 0 : index
    %c0_9 = arith.constant 0 : index
    %c0_10 = arith.constant 0 : index
    %8 = vector.load %arg4[%c0_8, %c0_9, %c0_10] : memref<2x32x128xf32, #tpu.memory_space<vmem>>, vector<1x32x128xf32>
    %9 = vector.shape_cast %8 : vector<1x32x128xf32> to vector<32x128xf32>
    %c1 = arith.constant 1 : index
    %c0_11 = arith.constant 0 : index
    %c0_12 = arith.constant 0 : index
    %10 = vector.load %arg4[%c1, %c0_11, %c0_12] : memref<2x32x128xf32, #tpu.memory_space<vmem>>, vector<1x32x128xf32>
    %11 = vector.shape_cast %10 : vector<1x32x128xf32> to vector<32x128xf32>
    %cst_13 = arith.constant 0.000000e+00 : f32
    %12 = vector.broadcast %cst_13 : f32 to vector<2x32xf32>
    %c0_i32 = arith.constant 0 : i32
    %c7_i32 = arith.constant 7 : i32
    %13 = arith.subi %c7_i32, %c0_i32 : i32
    %cst_14 = arith.constant dense<0.000000e+00> : vector<2x128xf32>
    %14 = tpu.matmul %12, %9, %cst_14 {dimension_numbers = #tpu.dot_dimension_numbers<[1], [0], [0], [1], [0, 0, 1, 1], [], []>} : vector<2x32xf32>, vector<32x128xf32>, vector<2x128xf32> -> vector<2x128xf32>
    %cst_15 = arith.constant dense<0.000000e+00> : vector<2x128xf32>
    %15 = tpu.matmul %12, %11, %cst_15 {dimension_numbers = #tpu.dot_dimension_numbers<[1], [0], [0], [1], [0, 0, 1, 1], [], []>} : vector<2x32xf32>, vector<32x128xf32>, vector<2x128xf32> -> vector<2x128xf32>
    %c2_i32 = arith.constant 2 : i32
    %16 = arith.muli %c0_i32, %c2_i32 : i32
    %17 = arith.index_cast %16 : i32 to index
    %c0_16 = arith.constant 0 : index
    %18 = vector.load %arg7[%17, %c0_16] : memref<16x256xf32, #tpu.memory_space<vmem>>, vector<2x256xf32>
    %19 = vector.extract_strided_slice %18 {offsets = [0, 0], sizes = [2, 128], strides = [1, 1]} : vector<2x256xf32> to vector<2x128xf32>
    %20 = arith.addf %19, %14 : vector<2x128xf32>
    %c2_i32_17 = arith.constant 2 : i32
    %21 = arith.muli %13, %c2_i32_17 : i32
    %22 = arith.index_cast %21 : i32 to index
    %c0_18 = arith.constant 0 : index
    %23 = vector.load %arg7[%22, %c0_18] : memref<16x256xf32, #tpu.memory_space<vmem>>, vector<2x256xf32>
    %24 = vector.extract_strided_slice %23 {offsets = [0, 128], sizes = [2, 128], strides = [1, 1]} : vector<2x256xf32> to vector<2x128xf32>
    %25 = arith.addf %24, %15 : vector<2x128xf32>
    %26 = vector.extract_strided_slice %20 {offsets = [0, 0], sizes = [2, 96], strides = [1, 1]} : vector<2x128xf32> to vector<2x96xf32>
    %cst_19 = arith.constant 5.000000e-01 : f32
    %27 = vector.broadcast %cst_19 : f32 to vector<2x96xf32>
    %28 = arith.mulf %27, %26 : vector<2x96xf32>
    %29 = math.tanh %28 : vector<2x96xf32>
    %cst_20 = arith.constant 1.000000e+00 : f32
    %30 = vector.broadcast %cst_20 : f32 to vector<2x96xf32>
    %31 = arith.addf %29, %30 : vector<2x96xf32>
    %cst_21 = arith.constant 5.000000e-01 : f32
    %32 = vector.broadcast %cst_21 : f32 to vector<2x96xf32>
    %33 = arith.mulf %32, %31 : vector<2x96xf32>
    %34 = vector.extract_strided_slice %33 {offsets = [0, 0], sizes = [2, 32], strides = [1, 1]} : vector<2x96xf32> to vector<2x32xf32>
    %35 = vector.extract_strided_slice %33 {offsets = [0, 32], sizes = [2, 32], strides = [1, 1]} : vector<2x96xf32> to vector<2x32xf32>
    %36 = vector.extract_strided_slice %33 {offsets = [0, 64], sizes = [2, 32], strides = [1, 1]} : vector<2x96xf32> to vector<2x32xf32>
    %37 = vector.extract_strided_slice %20 {offsets = [0, 96], sizes = [2, 32], strides = [1, 1]} : vector<2x128xf32> to vector<2x32xf32>
    %38 = math.tanh %37 : vector<2x32xf32>
    %39 = arith.mulf %35, %12 : vector<2x32xf32>
    %40 = arith.mulf %34, %38 : vector<2x32xf32>
    %41 = arith.addf %39, %40 : vector<2x32xf32>
    %42 = math.tanh %41 : vector<2x32xf32>
    %43 = arith.mulf %36, %42 : vector<2x32xf32>
    %44 = vector.extract_strided_slice %25 {offsets = [0, 0], sizes = [2, 96], strides = [1, 1]} : vector<2x128xf32> to vector<2x96xf32>
    %cst_22 = arith.constant 5.000000e-01 : f32
    %45 = vector.broadcast %cst_22 : f32 to vector<2x96xf32>
    %46 = arith.mulf %45, %44 : vector<2x96xf32>
    %47 = math.tanh %46 : vector<2x96xf32>
    %cst_23 = arith.constant 1.000000e+00 : f32
    %48 = vector.broadcast %cst_23 : f32 to vector<2x96xf32>
    %49 = arith.addf %47, %48 : vector<2x96xf32>
    %cst_24 = arith.constant 5.000000e-01 : f32
    %50 = vector.broadcast %cst_24 : f32 to vector<2x96xf32>
    %51 = arith.mulf %50, %49 : vector<2x96xf32>
    %52 = vector.extract_strided_slice %51 {offsets = [0, 0], sizes = [2, 32], strides = [1, 1]} : vector<2x96xf32> to vector<2x32xf32>
    %53 = vector.extract_strided_slice %51 {offsets = [0, 32], sizes = [2, 32], strides = [1, 1]} : vector<2x96xf32> to vector<2x32xf32>
    %54 = vector.extract_strided_slice %51 {offsets = [0, 64], sizes = [2, 32], strides = [1, 1]} : vector<2x96xf32> to vector<2x32xf32>
    %55 = vector.extract_strided_slice %25 {offsets = [0, 96], sizes = [2, 32], strides = [1, 1]} : vector<2x128xf32> to vector<2x32xf32>
    %56 = math.tanh %55 : vector<2x32xf32>
    %57 = arith.mulf %53, %12 : vector<2x32xf32>
    %58 = arith.mulf %52, %56 : vector<2x32xf32>
    %59 = arith.addf %57, %58 : vector<2x32xf32>
    %60 = math.tanh %59 : vector<2x32xf32>
    %61 = arith.mulf %54, %60 : vector<2x32xf32>
    %62 = arith.truncf %43 : vector<2x32xf32> to vector<2x32xbf16>
    %c2_i32_25 = arith.constant 2 : i32
    %63 = arith.muli %c0_i32, %c2_i32_25 : i32
    %64 = arith.index_cast %63 : i32 to index
    %c0_26 = arith.constant 0 : index
    %65 = vector.load %arg5[%64, %c0_26] : memref<16x32xbf16, #tpu.memory_space<vmem>>, vector<2x32xbf16>
    tpu.vector_store %arg5[%64, %c0_26], %62 {strides = array<i32>} : memref<16x32xbf16, #tpu.memory_space<vmem>>, vector<2x32xbf16>,
    %66 = arith.truncf %61 : vector<2x32xf32> to vector<2x32xbf16>
    %c2_i32_27 = arith.constant 2 : i32
    %67 = arith.muli %13, %c2_i32_27 : i32
    %68 = arith.index_cast %67 : i32 to index
    %c0_28 = arith.constant 0 : index
    %69 = vector.load %arg6[%68, %c0_28] : memref<16x32xbf16, #tpu.memory_space<vmem>>, vector<2x32xbf16>
    tpu.vector_store %arg6[%68, %c0_28], %66 {strides = array<i32>} : memref<16x32xbf16, #tpu.memory_space<vmem>>, vector<2x32xbf16>,
    %c1_i32 = arith.constant 1 : i32
    %c7_i32_29 = arith.constant 7 : i32
    %70 = arith.subi %c7_i32_29, %c1_i32 : i32
    %cst_30 = arith.constant dense<0.000000e+00> : vector<2x128xf32>
    %71 = tpu.matmul %43, %9, %cst_30 {dimension_numbers = #tpu.dot_dimension_numbers<[1], [0], [0], [1], [0, 0, 1, 1], [], []>} : vector<2x32xf32>, vector<32x128xf32>, vector<2x128xf32> -> vector<2x128xf32>
    %cst_31 = arith.constant dense<0.000000e+00> : vector<2x128xf32>
    %72 = tpu.matmul %61, %11, %cst_31 {dimension_numbers = #tpu.dot_dimension_numbers<[1], [0], [0], [1], [0, 0, 1, 1], [], []>} : vector<2x32xf32>, vector<32x128xf32>, vector<2x128xf32> -> vector<2x128xf32>
    %c2_i32_32 = arith.constant 2 : i32
    %73 = arith.muli %c1_i32, %c2_i32_32 : i32
    %74 = arith.index_cast %73 : i32 to index
    %c0_33 = arith.constant 0 : index
    %75 = vector.load %arg7[%74, %c0_33] : memref<16x256xf32, #tpu.memory_space<vmem>>, vector<2x256xf32>
    %76 = vector.extract_strided_slice %75 {offsets = [0, 0], sizes = [2, 128], strides = [1, 1]} : vector<2x256xf32> to vector<2x128xf32>
    %77 = arith.addf %76, %71 : vector<2x128xf32>
    %c2_i32_34 = arith.constant 2 : i32
    %78 = arith.muli %70, %c2_i32_34 : i32
    %79 = arith.index_cast %78 : i32 to index
    %c0_35 = arith.constant 0 : index
    %80 = vector.load %arg7[%79, %c0_35] : memref<16x256xf32, #tpu.memory_space<vmem>>, vector<2x256xf32>
    %81 = vector.extract_strided_slice %80 {offsets = [0, 128], sizes = [2, 128], strides = [1, 1]} : vector<2x256xf32> to vector<2x128xf32>
    %82 = arith.addf %81, %72 : vector<2x128xf32>
    %83 = vector.extract_strided_slice %77 {offsets = [0, 0], sizes = [2, 96], strides = [1, 1]} : vector<2x128xf32> to vector<2x96xf32>
    %cst_36 = arith.constant 5.000000e-01 : f32
    %84 = vector.broadcast %cst_36 : f32 to vector<2x96xf32>
    %85 = arith.mulf %84, %83 : vector<2x96xf32>
    %86 = math.tanh %85 : vector<2x96xf32>
    %cst_37 = arith.constant 1.000000e+00 : f32
    %87 = vector.broadcast %cst_37 : f32 to vector<2x96xf32>
    %88 = arith.addf %86, %87 : vector<2x96xf32>
    %cst_38 = arith.constant 5.000000e-01 : f32
    %89 = vector.broadcast %cst_38 : f32 to vector<2x96xf32>
    %90 = arith.mulf %89, %88 : vector<2x96xf32>
    %91 = vector.extract_strided_slice %90 {offsets = [0, 0], sizes = [2, 32], strides = [1, 1]} : vector<2x96xf32> to vector<2x32xf32>
    %92 = vector.extract_strided_slice %90 {offsets = [0, 32], sizes = [2, 32], strides = [1, 1]} : vector<2x96xf32> to vector<2x32xf32>
    %93 = vector.extract_strided_slice %90 {offsets = [0, 64], sizes = [2, 32], strides = [1, 1]} : vector<2x96xf32> to vector<2x32xf32>
    %94 = vector.extract_strided_slice %77 {offsets = [0, 96], sizes = [2, 32], strides = [1, 1]} : vector<2x128xf32> to vector<2x32xf32>
    %95 = math.tanh %94 : vector<2x32xf32>
    %96 = arith.mulf %92, %41 : vector<2x32xf32>
    %97 = arith.mulf %91, %95 : vector<2x32xf32>
    %98 = arith.addf %96, %97 : vector<2x32xf32>
    %99 = math.tanh %98 : vector<2x32xf32>
    %100 = arith.mulf %93, %99 : vector<2x32xf32>
    %101 = vector.extract_strided_slice %82 {offsets = [0, 0], sizes = [2, 96], strides = [1, 1]} : vector<2x128xf32> to vector<2x96xf32>
    %cst_39 = arith.constant 5.000000e-01 : f32
    %102 = vector.broadcast %cst_39 : f32 to vector<2x96xf32>
    %103 = arith.mulf %102, %101 : vector<2x96xf32>
    %104 = math.tanh %103 : vector<2x96xf32>
    %cst_40 = arith.constant 1.000000e+00 : f32
    %105 = vector.broadcast %cst_40 : f32 to vector<2x96xf32>
    %106 = arith.addf %104, %105 : vector<2x96xf32>
    %cst_41 = arith.constant 5.000000e-01 : f32
    %107 = vector.broadcast %cst_41 : f32 to vector<2x96xf32>
    %108 = arith.mulf %107, %106 : vector<2x96xf32>
    %109 = vector.extract_strided_slice %108 {offsets = [0, 0], sizes = [2, 32], strides = [1, 1]} : vector<2x96xf32> to vector<2x32xf32>
    %110 = vector.extract_strided_slice %108 {offsets = [0, 32], sizes = [2, 32], strides = [1, 1]} : vector<2x96xf32> to vector<2x32xf32>
    %111 = vector.extract_strided_slice %108 {offsets = [0, 64], sizes = [2, 32], strides = [1, 1]} : vector<2x96xf32> to vector<2x32xf32>
    %112 = vector.extract_strided_slice %82 {offsets = [0, 96], sizes = [2, 32], strides = [1, 1]} : vector<2x128xf32> to vector<2x32xf32>
    %113 = math.tanh %112 : vector<2x32xf32>
    %114 = arith.mulf %110, %59 : vector<2x32xf32>
    %115 = arith.mulf %109, %113 : vector<2x32xf32>
    %116 = arith.addf %114, %115 : vector<2x32xf32>
    %117 = math.tanh %116 : vector<2x32xf32>
    %118 = arith.mulf %111, %117 : vector<2x32xf32>
    %119 = arith.truncf %100 : vector<2x32xf32> to vector<2x32xbf16>
    %c2_i32_42 = arith.constant 2 : i32
    %120 = arith.muli %c1_i32, %c2_i32_42 : i32
    %121 = arith.index_cast %120 : i32 to index
    %c0_43 = arith.constant 0 : index
    %122 = vector.load %arg5[%121, %c0_43] : memref<16x32xbf16, #tpu.memory_space<vmem>>, vector<2x32xbf16>
    tpu.vector_store %arg5[%121, %c0_43], %119 {strides = array<i32>} : memref<16x32xbf16, #tpu.memory_space<vmem>>, vector<2x32xbf16>,
    %123 = arith.truncf %118 : vector<2x32xf32> to vector<2x32xbf16>
    %c2_i32_44 = arith.constant 2 : i32
    %124 = arith.muli %70, %c2_i32_44 : i32
    %125 = arith.index_cast %124 : i32 to index
    %c0_45 = arith.constant 0 : index
    %126 = vector.load %arg6[%125, %c0_45] : memref<16x32xbf16, #tpu.memory_space<vmem>>, vector<2x32xbf16>
    tpu.vector_store %arg6[%125, %c0_45], %123 {strides = array<i32>} : memref<16x32xbf16, #tpu.memory_space<vmem>>, vector<2x32xbf16>,
    %c2_i32_46 = arith.constant 2 : i32
    %c7_i32_47 = arith.constant 7 : i32
    %127 = arith.subi %c7_i32_47, %c2_i32_46 : i32
    %cst_48 = arith.constant dense<0.000000e+00> : vector<2x128xf32>
    %128 = tpu.matmul %100, %9, %cst_48 {dimension_numbers = #tpu.dot_dimension_numbers<[1], [0], [0], [1], [0, 0, 1, 1], [], []>} : vector<2x32xf32>, vector<32x128xf32>, vector<2x128xf32> -> vector<2x128xf32>
    %cst_49 = arith.constant dense<0.000000e+00> : vector<2x128xf32>
    %129 = tpu.matmul %118, %11, %cst_49 {dimension_numbers = #tpu.dot_dimension_numbers<[1], [0], [0], [1], [0, 0, 1, 1], [], []>} : vector<2x32xf32>, vector<32x128xf32>, vector<2x128xf32> -> vector<2x128xf32>
    %c2_i32_50 = arith.constant 2 : i32
    %130 = arith.muli %c2_i32_46, %c2_i32_50 : i32
    %131 = arith.index_cast %130 : i32 to index
    %c0_51 = arith.constant 0 : index
    %132 = vector.load %arg7[%131, %c0_51] : memref<16x256xf32, #tpu.memory_space<vmem>>, vector<2x256xf32>
    %133 = vector.extract_strided_slice %132 {offsets = [0, 0], sizes = [2, 128], strides = [1, 1]} : vector<2x256xf32> to vector<2x128xf32>
    %134 = arith.addf %133, %128 : vector<2x128xf32>
    %c2_i32_52 = arith.constant 2 : i32
    %135 = arith.muli %127, %c2_i32_52 : i32
    %136 = arith.index_cast %135 : i32 to index
    %c0_53 = arith.constant 0 : index
    %137 = vector.load %arg7[%136, %c0_53] : memref<16x256xf32, #tpu.memory_space<vmem>>, vector<2x256xf32>
    %138 = vector.extract_strided_slice %137 {offsets = [0, 128], sizes = [2, 128], strides = [1, 1]} : vector<2x256xf32> to vector<2x128xf32>
    %139 = arith.addf %138, %129 : vector<2x128xf32>
    %140 = vector.extract_strided_slice %134 {offsets = [0, 0], sizes = [2, 96], strides = [1, 1]} : vector<2x128xf32> to vector<2x96xf32>
    %cst_54 = arith.constant 5.000000e-01 : f32
    %141 = vector.broadcast %cst_54 : f32 to vector<2x96xf32>
    %142 = arith.mulf %141, %140 : vector<2x96xf32>
    %143 = math.tanh %142 : vector<2x96xf32>
    %cst_55 = arith.constant 1.000000e+00 : f32
    %144 = vector.broadcast %cst_55 : f32 to vector<2x96xf32>
    %145 = arith.addf %143, %144 : vector<2x96xf32>
    %cst_56 = arith.constant 5.000000e-01 : f32
    %146 = vector.broadcast %cst_56 : f32 to vector<2x96xf32>
    %147 = arith.mulf %146, %145 : vector<2x96xf32>
    %148 = vector.extract_strided_slice %147 {offsets = [0, 0], sizes = [2, 32], strides = [1, 1]} : vector<2x96xf32> to vector<2x32xf32>
    %149 = vector.extract_strided_slice %147 {offsets = [0, 32], sizes = [2, 32], strides = [1, 1]} : vector<2x96xf32> to vector<2x32xf32>
    %150 = vector.extract_strided_slice %147 {offsets = [0, 64], sizes = [2, 32], strides = [1, 1]} : vector<2x96xf32> to vector<2x32xf32>
    %151 = vector.extract_strided_slice %134 {offsets = [0, 96], sizes = [2, 32], strides = [1, 1]} : vector<2x128xf32> to vector<2x32xf32>
    %152 = math.tanh %151 : vector<2x32xf32>
    %153 = arith.mulf %149, %98 : vector<2x32xf32>
    %154 = arith.mulf %148, %152 : vector<2x32xf32>
    %155 = arith.addf %153, %154 : vector<2x32xf32>
    %156 = math.tanh %155 : vector<2x32xf32>
    %157 = arith.mulf %150, %156 : vector<2x32xf32>
    %158 = vector.extract_strided_slice %139 {offsets = [0, 0], sizes = [2, 96], strides = [1, 1]} : vector<2x128xf32> to vector<2x96xf32>
    %cst_57 = arith.constant 5.000000e-01 : f32
    %159 = vector.broadcast %cst_57 : f32 to vector<2x96xf32>
    %160 = arith.mulf %159, %158 : vector<2x96xf32>
    %161 = math.tanh %160 : vector<2x96xf32>
    %cst_58 = arith.constant 1.000000e+00 : f32
    %162 = vector.broadcast %cst_58 : f32 to vector<2x96xf32>
    %163 = arith.addf %161, %162 : vector<2x96xf32>
    %cst_59 = arith.constant 5.000000e-01 : f32
    %164 = vector.broadcast %cst_59 : f32 to vector<2x96xf32>
    %165 = arith.mulf %164, %163 : vector<2x96xf32>
    %166 = vector.extract_strided_slice %165 {offsets = [0, 0], sizes = [2, 32], strides = [1, 1]} : vector<2x96xf32> to vector<2x32xf32>
    %167 = vector.extract_strided_slice %165 {offsets = [0, 32], sizes = [2, 32], strides = [1, 1]} : vector<2x96xf32> to vector<2x32xf32>
    %168 = vector.extract_strided_slice %165 {offsets = [0, 64], sizes = [2, 32], strides = [1, 1]} : vector<2x96xf32> to vector<2x32xf32>
    %169 = vector.extract_strided_slice %139 {offsets = [0, 96], sizes = [2, 32], strides = [1, 1]} : vector<2x128xf32> to vector<2x32xf32>
    %170 = math.tanh %169 : vector<2x32xf32>
    %171 = arith.mulf %167, %116 : vector<2x32xf32>
    %172 = arith.mulf %166, %170 : vector<2x32xf32>
    %173 = arith.addf %171, %172 : vector<2x32xf32>
    %174 = math.tanh %173 : vector<2x32xf32>
    %175 = arith.mulf %168, %174 : vector<2x32xf32>
    %176 = arith.truncf %157 : vector<2x32xf32> to vector<2x32xbf16>
    %c2_i32_60 = arith.constant 2 : i32
    %177 = arith.muli %c2_i32_46, %c2_i32_60 : i32
    %178 = arith.index_cast %177 : i32 to index
    %c0_61 = arith.constant 0 : index
    %179 = vector.load %arg5[%178, %c0_61] : memref<16x32xbf16, #tpu.memory_space<vmem>>, vector<2x32xbf16>
    tpu.vector_store %arg5[%178, %c0_61], %176 {strides = array<i32>} : memref<16x32xbf16, #tpu.memory_space<vmem>>, vector<2x32xbf16>,
    %180 = arith.truncf %175 : vector<2x32xf32> to vector<2x32xbf16>
    %c2_i32_62 = arith.constant 2 : i32
    %181 = arith.muli %127, %c2_i32_62 : i32
    %182 = arith.index_cast %181 : i32 to index
    %c0_63 = arith.constant 0 : index
    %183 = vector.load %arg6[%182, %c0_63] : memref<16x32xbf16, #tpu.memory_space<vmem>>, vector<2x32xbf16>
    tpu.vector_store %arg6[%182, %c0_63], %180 {strides = array<i32>} : memref<16x32xbf16, #tpu.memory_space<vmem>>, vector<2x32xbf16>,
    %c3_i32 = arith.constant 3 : i32
    %c7_i32_64 = arith.constant 7 : i32
    %184 = arith.subi %c7_i32_64, %c3_i32 : i32
    %cst_65 = arith.constant dense<0.000000e+00> : vector<2x128xf32>
    %185 = tpu.matmul %157, %9, %cst_65 {dimension_numbers = #tpu.dot_dimension_numbers<[1], [0], [0], [1], [0, 0, 1, 1], [], []>} : vector<2x32xf32>, vector<32x128xf32>, vector<2x128xf32> -> vector<2x128xf32>
    %cst_66 = arith.constant dense<0.000000e+00> : vector<2x128xf32>
    %186 = tpu.matmul %175, %11, %cst_66 {dimension_numbers = #tpu.dot_dimension_numbers<[1], [0], [0], [1], [0, 0, 1, 1], [], []>} : vector<2x32xf32>, vector<32x128xf32>, vector<2x128xf32> -> vector<2x128xf32>
    %c2_i32_67 = arith.constant 2 : i32
    %187 = arith.muli %c3_i32, %c2_i32_67 : i32
    %188 = arith.index_cast %187 : i32 to index
    %c0_68 = arith.constant 0 : index
    %189 = vector.load %arg7[%188, %c0_68] : memref<16x256xf32, #tpu.memory_space<vmem>>, vector<2x256xf32>
    %190 = vector.extract_strided_slice %189 {offsets = [0, 0], sizes = [2, 128], strides = [1, 1]} : vector<2x256xf32> to vector<2x128xf32>
    %191 = arith.addf %190, %185 : vector<2x128xf32>
    %c2_i32_69 = arith.constant 2 : i32
    %192 = arith.muli %184, %c2_i32_69 : i32
    %193 = arith.index_cast %192 : i32 to index
    %c0_70 = arith.constant 0 : index
    %194 = vector.load %arg7[%193, %c0_70] : memref<16x256xf32, #tpu.memory_space<vmem>>, vector<2x256xf32>
    %195 = vector.extract_strided_slice %194 {offsets = [0, 128], sizes = [2, 128], strides = [1, 1]} : vector<2x256xf32> to vector<2x128xf32>
    %196 = arith.addf %195, %186 : vector<2x128xf32>
    %197 = vector.extract_strided_slice %191 {offsets = [0, 0], sizes = [2, 96], strides = [1, 1]} : vector<2x128xf32> to vector<2x96xf32>
    %cst_71 = arith.constant 5.000000e-01 : f32
    %198 = vector.broadcast %cst_71 : f32 to vector<2x96xf32>
    %199 = arith.mulf %198, %197 : vector<2x96xf32>
    %200 = math.tanh %199 : vector<2x96xf32>
    %cst_72 = arith.constant 1.000000e+00 : f32
    %201 = vector.broadcast %cst_72 : f32 to vector<2x96xf32>
    %202 = arith.addf %200, %201 : vector<2x96xf32>
    %cst_73 = arith.constant 5.000000e-01 : f32
    %203 = vector.broadcast %cst_73 : f32 to vector<2x96xf32>
    %204 = arith.mulf %203, %202 : vector<2x96xf32>
    %205 = vector.extract_strided_slice %204 {offsets = [0, 0], sizes = [2, 32], strides = [1, 1]} : vector<2x96xf32> to vector<2x32xf32>
    %206 = vector.extract_strided_slice %204 {offsets = [0, 32], sizes = [2, 32], strides = [1, 1]} : vector<2x96xf32> to vector<2x32xf32>
    %207 = vector.extract_strided_slice %204 {offsets = [0, 64], sizes = [2, 32], strides = [1, 1]} : vector<2x96xf32> to vector<2x32xf32>
    %208 = vector.extract_strided_slice %191 {offsets = [0, 96], sizes = [2, 32], strides = [1, 1]} : vector<2x128xf32> to vector<2x32xf32>
    %209 = math.tanh %208 : vector<2x32xf32>
    %210 = arith.mulf %206, %155 : vector<2x32xf32>
    %211 = arith.mulf %205, %209 : vector<2x32xf32>
    %212 = arith.addf %210, %211 : vector<2x32xf32>
    %213 = math.tanh %212 : vector<2x32xf32>
    %214 = arith.mulf %207, %213 : vector<2x32xf32>
    %215 = vector.extract_strided_slice %196 {offsets = [0, 0], sizes = [2, 96], strides = [1, 1]} : vector<2x128xf32> to vector<2x96xf32>
    %cst_74 = arith.constant 5.000000e-01 : f32
    %216 = vector.broadcast %cst_74 : f32 to vector<2x96xf32>
    %217 = arith.mulf %216, %215 : vector<2x96xf32>
    %218 = math.tanh %217 : vector<2x96xf32>
    %cst_75 = arith.constant 1.000000e+00 : f32
    %219 = vector.broadcast %cst_75 : f32 to vector<2x96xf32>
    %220 = arith.addf %218, %219 : vector<2x96xf32>
    %cst_76 = arith.constant 5.000000e-01 : f32
    %221 = vector.broadcast %cst_76 : f32 to vector<2x96xf32>
    %222 = arith.mulf %221, %220 : vector<2x96xf32>
    %223 = vector.extract_strided_slice %222 {offsets = [0, 0], sizes = [2, 32], strides = [1, 1]} : vector<2x96xf32> to vector<2x32xf32>
    %224 = vector.extract_strided_slice %222 {offsets = [0, 32], sizes = [2, 32], strides = [1, 1]} : vector<2x96xf32> to vector<2x32xf32>
    %225 = vector.extract_strided_slice %222 {offsets = [0, 64], sizes = [2, 32], strides = [1, 1]} : vector<2x96xf32> to vector<2x32xf32>
    %226 = vector.extract_strided_slice %196 {offsets = [0, 96], sizes = [2, 32], strides = [1, 1]} : vector<2x128xf32> to vector<2x32xf32>
    %227 = math.tanh %226 : vector<2x32xf32>
    %228 = arith.mulf %224, %173 : vector<2x32xf32>
    %229 = arith.mulf %223, %227 : vector<2x32xf32>
    %230 = arith.addf %228, %229 : vector<2x32xf32>
    %231 = math.tanh %230 : vector<2x32xf32>
    %232 = arith.mulf %225, %231 : vector<2x32xf32>
    %233 = arith.truncf %214 : vector<2x32xf32> to vector<2x32xbf16>
    %c2_i32_77 = arith.constant 2 : i32
    %234 = arith.muli %c3_i32, %c2_i32_77 : i32
    %235 = arith.index_cast %234 : i32 to index
    %c0_78 = arith.constant 0 : index
    %236 = vector.load %arg5[%235, %c0_78] : memref<16x32xbf16, #tpu.memory_space<vmem>>, vector<2x32xbf16>
    tpu.vector_store %arg5[%235, %c0_78], %233 {strides = array<i32>} : memref<16x32xbf16, #tpu.memory_space<vmem>>, vector<2x32xbf16>,
    %237 = arith.truncf %232 : vector<2x32xf32> to vector<2x32xbf16>
    %c2_i32_79 = arith.constant 2 : i32
    %238 = arith.muli %184, %c2_i32_79 : i32
    %239 = arith.index_cast %238 : i32 to index
    %c0_80 = arith.constant 0 : index
    %240 = vector.load %arg6[%239, %c0_80] : memref<16x32xbf16, #tpu.memory_space<vmem>>, vector<2x32xbf16>
    tpu.vector_store %arg6[%239, %c0_80], %237 {strides = array<i32>} : memref<16x32xbf16, #tpu.memory_space<vmem>>, vector<2x32xbf16>,
    %c4_i32 = arith.constant 4 : i32
    %c7_i32_81 = arith.constant 7 : i32
    %241 = arith.subi %c7_i32_81, %c4_i32 : i32
    %cst_82 = arith.constant dense<0.000000e+00> : vector<2x128xf32>
    %242 = tpu.matmul %214, %9, %cst_82 {dimension_numbers = #tpu.dot_dimension_numbers<[1], [0], [0], [1], [0, 0, 1, 1], [], []>} : vector<2x32xf32>, vector<32x128xf32>, vector<2x128xf32> -> vector<2x128xf32>
    %cst_83 = arith.constant dense<0.000000e+00> : vector<2x128xf32>
    %243 = tpu.matmul %232, %11, %cst_83 {dimension_numbers = #tpu.dot_dimension_numbers<[1], [0], [0], [1], [0, 0, 1, 1], [], []>} : vector<2x32xf32>, vector<32x128xf32>, vector<2x128xf32> -> vector<2x128xf32>
    %c2_i32_84 = arith.constant 2 : i32
    %244 = arith.muli %c4_i32, %c2_i32_84 : i32
    %245 = arith.index_cast %244 : i32 to index
    %c0_85 = arith.constant 0 : index
    %246 = vector.load %arg7[%245, %c0_85] : memref<16x256xf32, #tpu.memory_space<vmem>>, vector<2x256xf32>
    %247 = vector.extract_strided_slice %246 {offsets = [0, 0], sizes = [2, 128], strides = [1, 1]} : vector<2x256xf32> to vector<2x128xf32>
    %248 = arith.addf %247, %242 : vector<2x128xf32>
    %c2_i32_86 = arith.constant 2 : i32
    %249 = arith.muli %241, %c2_i32_86 : i32
    %250 = arith.index_cast %249 : i32 to index
    %c0_87 = arith.constant 0 : index
    %251 = vector.load %arg7[%250, %c0_87] : memref<16x256xf32, #tpu.memory_space<vmem>>, vector<2x256xf32>
    %252 = vector.extract_strided_slice %251 {offsets = [0, 128], sizes = [2, 128], strides = [1, 1]} : vector<2x256xf32> to vector<2x128xf32>
    %253 = arith.addf %252, %243 : vector<2x128xf32>
    %254 = vector.extract_strided_slice %248 {offsets = [0, 0], sizes = [2, 96], strides = [1, 1]} : vector<2x128xf32> to vector<2x96xf32>
    %cst_88 = arith.constant 5.000000e-01 : f32
    %255 = vector.broadcast %cst_88 : f32 to vector<2x96xf32>
    %256 = arith.mulf %255, %254 : vector<2x96xf32>
    %257 = math.tanh %256 : vector<2x96xf32>
    %cst_89 = arith.constant 1.000000e+00 : f32
    %258 = vector.broadcast %cst_89 : f32 to vector<2x96xf32>
    %259 = arith.addf %257, %258 : vector<2x96xf32>
    %cst_90 = arith.constant 5.000000e-01 : f32
    %260 = vector.broadcast %cst_90 : f32 to vector<2x96xf32>
    %261 = arith.mulf %260, %259 : vector<2x96xf32>
    %262 = vector.extract_strided_slice %261 {offsets = [0, 0], sizes = [2, 32], strides = [1, 1]} : vector<2x96xf32> to vector<2x32xf32>
    %263 = vector.extract_strided_slice %261 {offsets = [0, 32], sizes = [2, 32], strides = [1, 1]} : vector<2x96xf32> to vector<2x32xf32>
    %264 = vector.extract_strided_slice %261 {offsets = [0, 64], sizes = [2, 32], strides = [1, 1]} : vector<2x96xf32> to vector<2x32xf32>
    %265 = vector.extract_strided_slice %248 {offsets = [0, 96], sizes = [2, 32], strides = [1, 1]} : vector<2x128xf32> to vector<2x32xf32>
    %266 = math.tanh %265 : vector<2x32xf32>
    %267 = arith.mulf %263, %212 : vector<2x32xf32>
    %268 = arith.mulf %262, %266 : vector<2x32xf32>
    %269 = arith.addf %267, %268 : vector<2x32xf32>
    %270 = math.tanh %269 : vector<2x32xf32>
    %271 = arith.mulf %264, %270 : vector<2x32xf32>
    %272 = vector.extract_strided_slice %253 {offsets = [0, 0], sizes = [2, 96], strides = [1, 1]} : vector<2x128xf32> to vector<2x96xf32>
    %cst_91 = arith.constant 5.000000e-01 : f32
    %273 = vector.broadcast %cst_91 : f32 to vector<2x96xf32>
    %274 = arith.mulf %273, %272 : vector<2x96xf32>
    %275 = math.tanh %274 : vector<2x96xf32>
    %cst_92 = arith.constant 1.000000e+00 : f32
    %276 = vector.broadcast %cst_92 : f32 to vector<2x96xf32>
    %277 = arith.addf %275, %276 : vector<2x96xf32>
    %cst_93 = arith.constant 5.000000e-01 : f32
    %278 = vector.broadcast %cst_93 : f32 to vector<2x96xf32>
    %279 = arith.mulf %278, %277 : vector<2x96xf32>
    %280 = vector.extract_strided_slice %279 {offsets = [0, 0], sizes = [2, 32], strides = [1, 1]} : vector<2x96xf32> to vector<2x32xf32>
    %281 = vector.extract_strided_slice %279 {offsets = [0, 32], sizes = [2, 32], strides = [1, 1]} : vector<2x96xf32> to vector<2x32xf32>
    %282 = vector.extract_strided_slice %279 {offsets = [0, 64], sizes = [2, 32], strides = [1, 1]} : vector<2x96xf32> to vector<2x32xf32>
    %283 = vector.extract_strided_slice %253 {offsets = [0, 96], sizes = [2, 32], strides = [1, 1]} : vector<2x128xf32> to vector<2x32xf32>
    %284 = math.tanh %283 : vector<2x32xf32>
    %285 = arith.mulf %281, %230 : vector<2x32xf32>
    %286 = arith.mulf %280, %284 : vector<2x32xf32>
    %287 = arith.addf %285, %286 : vector<2x32xf32>
    %288 = math.tanh %287 : vector<2x32xf32>
    %289 = arith.mulf %282, %288 : vector<2x32xf32>
    %290 = arith.truncf %271 : vector<2x32xf32> to vector<2x32xbf16>
    %c2_i32_94 = arith.constant 2 : i32
    %291 = arith.muli %c4_i32, %c2_i32_94 : i32
    %292 = arith.index_cast %291 : i32 to index
    %c0_95 = arith.constant 0 : index
    %293 = vector.load %arg5[%292, %c0_95] : memref<16x32xbf16, #tpu.memory_space<vmem>>, vector<2x32xbf16>
    tpu.vector_store %arg5[%292, %c0_95], %290 {strides = array<i32>} : memref<16x32xbf16, #tpu.memory_space<vmem>>, vector<2x32xbf16>,
    %294 = arith.truncf %289 : vector<2x32xf32> to vector<2x32xbf16>
    %c2_i32_96 = arith.constant 2 : i32
    %295 = arith.muli %241, %c2_i32_96 : i32
    %296 = arith.index_cast %295 : i32 to index
    %c0_97 = arith.constant 0 : index
    %297 = vector.load %arg6[%296, %c0_97] : memref<16x32xbf16, #tpu.memory_space<vmem>>, vector<2x32xbf16>
    tpu.vector_store %arg6[%296, %c0_97], %294 {strides = array<i32>} : memref<16x32xbf16, #tpu.memory_space<vmem>>, vector<2x32xbf16>,
    %c5_i32 = arith.constant 5 : i32
    %c7_i32_98 = arith.constant 7 : i32
    %298 = arith.subi %c7_i32_98, %c5_i32 : i32
    %cst_99 = arith.constant dense<0.000000e+00> : vector<2x128xf32>
    %299 = tpu.matmul %271, %9, %cst_99 {dimension_numbers = #tpu.dot_dimension_numbers<[1], [0], [0], [1], [0, 0, 1, 1], [], []>} : vector<2x32xf32>, vector<32x128xf32>, vector<2x128xf32> -> vector<2x128xf32>
    %cst_100 = arith.constant dense<0.000000e+00> : vector<2x128xf32>
    %300 = tpu.matmul %289, %11, %cst_100 {dimension_numbers = #tpu.dot_dimension_numbers<[1], [0], [0], [1], [0, 0, 1, 1], [], []>} : vector<2x32xf32>, vector<32x128xf32>, vector<2x128xf32> -> vector<2x128xf32>
    %c2_i32_101 = arith.constant 2 : i32
    %301 = arith.muli %c5_i32, %c2_i32_101 : i32
    %302 = arith.index_cast %301 : i32 to index
    %c0_102 = arith.constant 0 : index
    %303 = vector.load %arg7[%302, %c0_102] : memref<16x256xf32, #tpu.memory_space<vmem>>, vector<2x256xf32>
    %304 = vector.extract_strided_slice %303 {offsets = [0, 0], sizes = [2, 128], strides = [1, 1]} : vector<2x256xf32> to vector<2x128xf32>
    %305 = arith.addf %304, %299 : vector<2x128xf32>
    %c2_i32_103 = arith.constant 2 : i32
    %306 = arith.muli %298, %c2_i32_103 : i32
    %307 = arith.index_cast %306 : i32 to index
    %c0_104 = arith.constant 0 : index
    %308 = vector.load %arg7[%307, %c0_104] : memref<16x256xf32, #tpu.memory_space<vmem>>, vector<2x256xf32>
    %309 = vector.extract_strided_slice %308 {offsets = [0, 128], sizes = [2, 128], strides = [1, 1]} : vector<2x256xf32> to vector<2x128xf32>
    %310 = arith.addf %309, %300 : vector<2x128xf32>
    %311 = vector.extract_strided_slice %305 {offsets = [0, 0], sizes = [2, 96], strides = [1, 1]} : vector<2x128xf32> to vector<2x96xf32>
    %cst_105 = arith.constant 5.000000e-01 : f32
    %312 = vector.broadcast %cst_105 : f32 to vector<2x96xf32>
    %313 = arith.mulf %312, %311 : vector<2x96xf32>
    %314 = math.tanh %313 : vector<2x96xf32>
    %cst_106 = arith.constant 1.000000e+00 : f32
    %315 = vector.broadcast %cst_106 : f32 to vector<2x96xf32>
    %316 = arith.addf %314, %315 : vector<2x96xf32>
    %cst_107 = arith.constant 5.000000e-01 : f32
    %317 = vector.broadcast %cst_107 : f32 to vector<2x96xf32>
    %318 = arith.mulf %317, %316 : vector<2x96xf32>
    %319 = vector.extract_strided_slice %318 {offsets = [0, 0], sizes = [2, 32], strides = [1, 1]} : vector<2x96xf32> to vector<2x32xf32>
    %320 = vector.extract_strided_slice %318 {offsets = [0, 32], sizes = [2, 32], strides = [1, 1]} : vector<2x96xf32> to vector<2x32xf32>
    %321 = vector.extract_strided_slice %318 {offsets = [0, 64], sizes = [2, 32], strides = [1, 1]} : vector<2x96xf32> to vector<2x32xf32>
    %322 = vector.extract_strided_slice %305 {offsets = [0, 96], sizes = [2, 32], strides = [1, 1]} : vector<2x128xf32> to vector<2x32xf32>
    %323 = math.tanh %322 : vector<2x32xf32>
    %324 = arith.mulf %320, %269 : vector<2x32xf32>
    %325 = arith.mulf %319, %323 : vector<2x32xf32>
    %326 = arith.addf %324, %325 : vector<2x32xf32>
    %327 = math.tanh %326 : vector<2x32xf32>
    %328 = arith.mulf %321, %327 : vector<2x32xf32>
    %329 = vector.extract_strided_slice %310 {offsets = [0, 0], sizes = [2, 96], strides = [1, 1]} : vector<2x128xf32> to vector<2x96xf32>
    %cst_108 = arith.constant 5.000000e-01 : f32
    %330 = vector.broadcast %cst_108 : f32 to vector<2x96xf32>
    %331 = arith.mulf %330, %329 : vector<2x96xf32>
    %332 = math.tanh %331 : vector<2x96xf32>
    %cst_109 = arith.constant 1.000000e+00 : f32
    %333 = vector.broadcast %cst_109 : f32 to vector<2x96xf32>
    %334 = arith.addf %332, %333 : vector<2x96xf32>
    %cst_110 = arith.constant 5.000000e-01 : f32
    %335 = vector.broadcast %cst_110 : f32 to vector<2x96xf32>
    %336 = arith.mulf %335, %334 : vector<2x96xf32>
    %337 = vector.extract_strided_slice %336 {offsets = [0, 0], sizes = [2, 32], strides = [1, 1]} : vector<2x96xf32> to vector<2x32xf32>
    %338 = vector.extract_strided_slice %336 {offsets = [0, 32], sizes = [2, 32], strides = [1, 1]} : vector<2x96xf32> to vector<2x32xf32>
    %339 = vector.extract_strided_slice %336 {offsets = [0, 64], sizes = [2, 32], strides = [1, 1]} : vector<2x96xf32> to vector<2x32xf32>
    %340 = vector.extract_strided_slice %310 {offsets = [0, 96], sizes = [2, 32], strides = [1, 1]} : vector<2x128xf32> to vector<2x32xf32>
    %341 = math.tanh %340 : vector<2x32xf32>
    %342 = arith.mulf %338, %287 : vector<2x32xf32>
    %343 = arith.mulf %337, %341 : vector<2x32xf32>
    %344 = arith.addf %342, %343 : vector<2x32xf32>
    %345 = math.tanh %344 : vector<2x32xf32>
    %346 = arith.mulf %339, %345 : vector<2x32xf32>
    %347 = arith.truncf %328 : vector<2x32xf32> to vector<2x32xbf16>
    %c2_i32_111 = arith.constant 2 : i32
    %348 = arith.muli %c5_i32, %c2_i32_111 : i32
    %349 = arith.index_cast %348 : i32 to index
    %c0_112 = arith.constant 0 : index
    %350 = vector.load %arg5[%349, %c0_112] : memref<16x32xbf16, #tpu.memory_space<vmem>>, vector<2x32xbf16>
    tpu.vector_store %arg5[%349, %c0_112], %347 {strides = array<i32>} : memref<16x32xbf16, #tpu.memory_space<vmem>>, vector<2x32xbf16>,
    %351 = arith.truncf %346 : vector<2x32xf32> to vector<2x32xbf16>
    %c2_i32_113 = arith.constant 2 : i32
    %352 = arith.muli %298, %c2_i32_113 : i32
    %353 = arith.index_cast %352 : i32 to index
    %c0_114 = arith.constant 0 : index
    %354 = vector.load %arg6[%353, %c0_114] : memref<16x32xbf16, #tpu.memory_space<vmem>>, vector<2x32xbf16>
    tpu.vector_store %arg6[%353, %c0_114], %351 {strides = array<i32>} : memref<16x32xbf16, #tpu.memory_space<vmem>>, vector<2x32xbf16>,
    %c6_i32 = arith.constant 6 : i32
    %c7_i32_115 = arith.constant 7 : i32
    %355 = arith.subi %c7_i32_115, %c6_i32 : i32
    %cst_116 = arith.constant dense<0.000000e+00> : vector<2x128xf32>
    %356 = tpu.matmul %328, %9, %cst_116 {dimension_numbers = #tpu.dot_dimension_numbers<[1], [0], [0], [1], [0, 0, 1, 1], [], []>} : vector<2x32xf32>, vector<32x128xf32>, vector<2x128xf32> -> vector<2x128xf32>
    %cst_117 = arith.constant dense<0.000000e+00> : vector<2x128xf32>
    %357 = tpu.matmul %346, %11, %cst_117 {dimension_numbers = #tpu.dot_dimension_numbers<[1], [0], [0], [1], [0, 0, 1, 1], [], []>} : vector<2x32xf32>, vector<32x128xf32>, vector<2x128xf32> -> vector<2x128xf32>
    %c2_i32_118 = arith.constant 2 : i32
    %358 = arith.muli %c6_i32, %c2_i32_118 : i32
    %359 = arith.index_cast %358 : i32 to index
    %c0_119 = arith.constant 0 : index
    %360 = vector.load %arg7[%359, %c0_119] : memref<16x256xf32, #tpu.memory_space<vmem>>, vector<2x256xf32>
    %361 = vector.extract_strided_slice %360 {offsets = [0, 0], sizes = [2, 128], strides = [1, 1]} : vector<2x256xf32> to vector<2x128xf32>
    %362 = arith.addf %361, %356 : vector<2x128xf32>
    %c2_i32_120 = arith.constant 2 : i32
    %363 = arith.muli %355, %c2_i32_120 : i32
    %364 = arith.index_cast %363 : i32 to index
    %c0_121 = arith.constant 0 : index
    %365 = vector.load %arg7[%364, %c0_121] : memref<16x256xf32, #tpu.memory_space<vmem>>, vector<2x256xf32>
    %366 = vector.extract_strided_slice %365 {offsets = [0, 128], sizes = [2, 128], strides = [1, 1]} : vector<2x256xf32> to vector<2x128xf32>
    %367 = arith.addf %366, %357 : vector<2x128xf32>
    %368 = vector.extract_strided_slice %362 {offsets = [0, 0], sizes = [2, 96], strides = [1, 1]} : vector<2x128xf32> to vector<2x96xf32>
    %cst_122 = arith.constant 5.000000e-01 : f32
    %369 = vector.broadcast %cst_122 : f32 to vector<2x96xf32>
    %370 = arith.mulf %369, %368 : vector<2x96xf32>
    %371 = math.tanh %370 : vector<2x96xf32>
    %cst_123 = arith.constant 1.000000e+00 : f32
    %372 = vector.broadcast %cst_123 : f32 to vector<2x96xf32>
    %373 = arith.addf %371, %372 : vector<2x96xf32>
    %cst_124 = arith.constant 5.000000e-01 : f32
    %374 = vector.broadcast %cst_124 : f32 to vector<2x96xf32>
    %375 = arith.mulf %374, %373 : vector<2x96xf32>
    %376 = vector.extract_strided_slice %375 {offsets = [0, 0], sizes = [2, 32], strides = [1, 1]} : vector<2x96xf32> to vector<2x32xf32>
    %377 = vector.extract_strided_slice %375 {offsets = [0, 32], sizes = [2, 32], strides = [1, 1]} : vector<2x96xf32> to vector<2x32xf32>
    %378 = vector.extract_strided_slice %375 {offsets = [0, 64], sizes = [2, 32], strides = [1, 1]} : vector<2x96xf32> to vector<2x32xf32>
    %379 = vector.extract_strided_slice %362 {offsets = [0, 96], sizes = [2, 32], strides = [1, 1]} : vector<2x128xf32> to vector<2x32xf32>
    %380 = math.tanh %379 : vector<2x32xf32>
    %381 = arith.mulf %377, %326 : vector<2x32xf32>
    %382 = arith.mulf %376, %380 : vector<2x32xf32>
    %383 = arith.addf %381, %382 : vector<2x32xf32>
    %384 = math.tanh %383 : vector<2x32xf32>
    %385 = arith.mulf %378, %384 : vector<2x32xf32>
    %386 = vector.extract_strided_slice %367 {offsets = [0, 0], sizes = [2, 96], strides = [1, 1]} : vector<2x128xf32> to vector<2x96xf32>
    %cst_125 = arith.constant 5.000000e-01 : f32
    %387 = vector.broadcast %cst_125 : f32 to vector<2x96xf32>
    %388 = arith.mulf %387, %386 : vector<2x96xf32>
    %389 = math.tanh %388 : vector<2x96xf32>
    %cst_126 = arith.constant 1.000000e+00 : f32
    %390 = vector.broadcast %cst_126 : f32 to vector<2x96xf32>
    %391 = arith.addf %389, %390 : vector<2x96xf32>
    %cst_127 = arith.constant 5.000000e-01 : f32
    %392 = vector.broadcast %cst_127 : f32 to vector<2x96xf32>
    %393 = arith.mulf %392, %391 : vector<2x96xf32>
    %394 = vector.extract_strided_slice %393 {offsets = [0, 0], sizes = [2, 32], strides = [1, 1]} : vector<2x96xf32> to vector<2x32xf32>
    %395 = vector.extract_strided_slice %393 {offsets = [0, 32], sizes = [2, 32], strides = [1, 1]} : vector<2x96xf32> to vector<2x32xf32>
    %396 = vector.extract_strided_slice %393 {offsets = [0, 64], sizes = [2, 32], strides = [1, 1]} : vector<2x96xf32> to vector<2x32xf32>
    %397 = vector.extract_strided_slice %367 {offsets = [0, 96], sizes = [2, 32], strides = [1, 1]} : vector<2x128xf32> to vector<2x32xf32>
    %398 = math.tanh %397 : vector<2x32xf32>
    %399 = arith.mulf %395, %344 : vector<2x32xf32>
    %400 = arith.mulf %394, %398 : vector<2x32xf32>
    %401 = arith.addf %399, %400 : vector<2x32xf32>
    %402 = math.tanh %401 : vector<2x32xf32>
    %403 = arith.mulf %396, %402 : vector<2x32xf32>
    %404 = arith.truncf %385 : vector<2x32xf32> to vector<2x32xbf16>
    %c2_i32_128 = arith.constant 2 : i32
    %405 = arith.muli %c6_i32, %c2_i32_128 : i32
    %406 = arith.index_cast %405 : i32 to index
    %c0_129 = arith.constant 0 : index
    %407 = vector.load %arg5[%406, %c0_129] : memref<16x32xbf16, #tpu.memory_space<vmem>>, vector<2x32xbf16>
    tpu.vector_store %arg5[%406, %c0_129], %404 {strides = array<i32>} : memref<16x32xbf16, #tpu.memory_space<vmem>>, vector<2x32xbf16>,
    %408 = arith.truncf %403 : vector<2x32xf32> to vector<2x32xbf16>
    %c2_i32_130 = arith.constant 2 : i32
    %409 = arith.muli %355, %c2_i32_130 : i32
    %410 = arith.index_cast %409 : i32 to index
    %c0_131 = arith.constant 0 : index
    %411 = vector.load %arg6[%410, %c0_131] : memref<16x32xbf16, #tpu.memory_space<vmem>>, vector<2x32xbf16>
    tpu.vector_store %arg6[%410, %c0_131], %408 {strides = array<i32>} : memref<16x32xbf16, #tpu.memory_space<vmem>>, vector<2x32xbf16>,
    %c7_i32_132 = arith.constant 7 : i32
    %c7_i32_133 = arith.constant 7 : i32
    %412 = arith.subi %c7_i32_133, %c7_i32_132 : i32
    %cst_134 = arith.constant dense<0.000000e+00> : vector<2x128xf32>
    %413 = tpu.matmul %385, %9, %cst_134 {dimension_numbers = #tpu.dot_dimension_numbers<[1], [0], [0], [1], [0, 0, 1, 1], [], []>} : vector<2x32xf32>, vector<32x128xf32>, vector<2x128xf32> -> vector<2x128xf32>
    %cst_135 = arith.constant dense<0.000000e+00> : vector<2x128xf32>
    %414 = tpu.matmul %403, %11, %cst_135 {dimension_numbers = #tpu.dot_dimension_numbers<[1], [0], [0], [1], [0, 0, 1, 1], [], []>} : vector<2x32xf32>, vector<32x128xf32>, vector<2x128xf32> -> vector<2x128xf32>
    %c2_i32_136 = arith.constant 2 : i32
    %415 = arith.muli %c7_i32_132, %c2_i32_136 : i32
    %416 = arith.index_cast %415 : i32 to index
    %c0_137 = arith.constant 0 : index
    %417 = vector.load %arg7[%416, %c0_137] : memref<16x256xf32, #tpu.memory_space<vmem>>, vector<2x256xf32>
    %418 = vector.extract_strided_slice %417 {offsets = [0, 0], sizes = [2, 128], strides = [1, 1]} : vector<2x256xf32> to vector<2x128xf32>
    %419 = arith.addf %418, %413 : vector<2x128xf32>
    %c2_i32_138 = arith.constant 2 : i32
    %420 = arith.muli %412, %c2_i32_138 : i32
    %421 = arith.index_cast %420 : i32 to index
    %c0_139 = arith.constant 0 : index
    %422 = vector.load %arg7[%421, %c0_139] : memref<16x256xf32, #tpu.memory_space<vmem>>, vector<2x256xf32>
    %423 = vector.extract_strided_slice %422 {offsets = [0, 128], sizes = [2, 128], strides = [1, 1]} : vector<2x256xf32> to vector<2x128xf32>
    %424 = arith.addf %423, %414 : vector<2x128xf32>
    %425 = vector.extract_strided_slice %419 {offsets = [0, 0], sizes = [2, 96], strides = [1, 1]} : vector<2x128xf32> to vector<2x96xf32>
    %cst_140 = arith.constant 5.000000e-01 : f32
    %426 = vector.broadcast %cst_140 : f32 to vector<2x96xf32>
    %427 = arith.mulf %426, %425 : vector<2x96xf32>
    %428 = math.tanh %427 : vector<2x96xf32>
    %cst_141 = arith.constant 1.000000e+00 : f32
    %429 = vector.broadcast %cst_141 : f32 to vector<2x96xf32>
    %430 = arith.addf %428, %429 : vector<2x96xf32>
    %cst_142 = arith.constant 5.000000e-01 : f32
    %431 = vector.broadcast %cst_142 : f32 to vector<2x96xf32>
    %432 = arith.mulf %431, %430 : vector<2x96xf32>
    %433 = vector.extract_strided_slice %432 {offsets = [0, 0], sizes = [2, 32], strides = [1, 1]} : vector<2x96xf32> to vector<2x32xf32>
    %434 = vector.extract_strided_slice %432 {offsets = [0, 32], sizes = [2, 32], strides = [1, 1]} : vector<2x96xf32> to vector<2x32xf32>
    %435 = vector.extract_strided_slice %432 {offsets = [0, 64], sizes = [2, 32], strides = [1, 1]} : vector<2x96xf32> to vector<2x32xf32>
    %436 = vector.extract_strided_slice %419 {offsets = [0, 96], sizes = [2, 32], strides = [1, 1]} : vector<2x128xf32> to vector<2x32xf32>
    %437 = math.tanh %436 : vector<2x32xf32>
    %438 = arith.mulf %434, %383 : vector<2x32xf32>
    %439 = arith.mulf %433, %437 : vector<2x32xf32>
    %440 = arith.addf %438, %439 : vector<2x32xf32>
    %441 = math.tanh %440 : vector<2x32xf32>
    %442 = arith.mulf %435, %441 : vector<2x32xf32>
    %443 = vector.extract_strided_slice %424 {offsets = [0, 0], sizes = [2, 96], strides = [1, 1]} : vector<2x128xf32> to vector<2x96xf32>
    %cst_143 = arith.constant 5.000000e-01 : f32
    %444 = vector.broadcast %cst_143 : f32 to vector<2x96xf32>
    %445 = arith.mulf %444, %443 : vector<2x96xf32>
    %446 = math.tanh %445 : vector<2x96xf32>
    %cst_144 = arith.constant 1.000000e+00 : f32
    %447 = vector.broadcast %cst_144 : f32 to vector<2x96xf32>
    %448 = arith.addf %446, %447 : vector<2x96xf32>
    %cst_145 = arith.constant 5.000000e-01 : f32
    %449 = vector.broadcast %cst_145 : f32 to vector<2x96xf32>
    %450 = arith.mulf %449, %448 : vector<2x96xf32>
    %451 = vector.extract_strided_slice %450 {offsets = [0, 0], sizes = [2, 32], strides = [1, 1]} : vector<2x96xf32> to vector<2x32xf32>
    %452 = vector.extract_strided_slice %450 {offsets = [0, 32], sizes = [2, 32], strides = [1, 1]} : vector<2x96xf32> to vector<2x32xf32>
    %453 = vector.extract_strided_slice %450 {offsets = [0, 64], sizes = [2, 32], strides = [1, 1]} : vector<2x96xf32> to vector<2x32xf32>
    %454 = vector.extract_strided_slice %424 {offsets = [0, 96], sizes = [2, 32], strides = [1, 1]} : vector<2x128xf32> to vector<2x32xf32>
    %455 = math.tanh %454 : vector<2x32xf32>
    %456 = arith.mulf %452, %401 : vector<2x32xf32>
    %457 = arith.mulf %451, %455 : vector<2x32xf32>
    %458 = arith.addf %456, %457 : vector<2x32xf32>
    %459 = math.tanh %458 : vector<2x32xf32>
    %460 = arith.mulf %453, %459 : vector<2x32xf32>
    %461 = arith.truncf %442 : vector<2x32xf32> to vector<2x32xbf16>
    %c2_i32_146 = arith.constant 2 : i32
    %462 = arith.muli %c7_i32_132, %c2_i32_146 : i32
    %463 = arith.index_cast %462 : i32 to index
    %c0_147 = arith.constant 0 : index
    %464 = vector.load %arg5[%463, %c0_147] : memref<16x32xbf16, #tpu.memory_space<vmem>>, vector<2x32xbf16>
    tpu.vector_store %arg5[%463, %c0_147], %461 {strides = array<i32>} : memref<16x32xbf16, #tpu.memory_space<vmem>>, vector<2x32xbf16>,
    %465 = arith.truncf %460 : vector<2x32xf32> to vector<2x32xbf16>
    %c2_i32_148 = arith.constant 2 : i32
    %466 = arith.muli %412, %c2_i32_148 : i32
    %467 = arith.index_cast %466 : i32 to index
    %c0_149 = arith.constant 0 : index
    %468 = vector.load %arg6[%467, %c0_149] : memref<16x32xbf16, #tpu.memory_space<vmem>>, vector<2x32xbf16>
    tpu.vector_store %arg6[%467, %c0_149], %465 {strides = array<i32>} : memref<16x32xbf16, #tpu.memory_space<vmem>>, vector<2x32xbf16>,
    %c8_i32 = arith.constant 8 : i32
    return
  }
  func.func @transform_0(%arg0: i32) -> (i32, i32) {
    %c0_i32 = arith.constant 0 : i32
    %c0_i32_0 = arith.constant 0 : i32
    %c0_i32_1 = arith.constant 0 : i32
    return %c0_i32, %c0_i32_0 : i32, i32
  }
  func.func @transform_1(%arg0: i32) -> (i32, i32, i32) {
    %c0_i32 = arith.constant 0 : i32
    %c0_i32_0 = arith.constant 0 : i32
    %c0_i32_1 = arith.constant 0 : i32
    %c0_i32_2 = arith.constant 0 : i32
    return %c0_i32, %c0_i32_0, %c0_i32_1 : i32, i32, i32
  }
  func.func @transform_2(%arg0: i32) -> (i32, i32) {
    %c0_i32 = arith.constant 0 : i32
    %c0_i32_0 = arith.constant 0 : i32
    %c0_i32_1 = arith.constant 0 : i32
    return %c0_i32, %c0_i32_0 : i32, i32
  }
  func.func @transform_3(%arg0: i32) -> (i32, i32, i32) {
    %c0_i32 = arith.constant 0 : i32
    %c0_i32_0 = arith.constant 0 : i32
    %c0_i32_1 = arith.constant 0 : i32
    %c0_i32_2 = arith.constant 0 : i32
    return %c0_i32, %c0_i32_0, %c0_i32_1 : i32, i32, i32
  }
  func.func @transform_4(%arg0: i32) -> (i32, i32) {
    %c0_i32 = arith.constant 0 : i32
    %c0_i32_0 = arith.constant 0 : i32
    %c0_i32_1 = arith.constant 0 : i32
    return %c0_i32, %c0_i32_0 : i32, i32
  }
  func.func @transform_5(%arg0: i32) -> (i32, i32) {
    %c0_i32 = arith.constant 0 : i32
    %c0_i32_0 = arith.constant 0 : i32
    %c0_i32_1 = arith.constant 0 : i32
    return %c0_i32, %c0_i32_0 : i32, i32
  }
}

module attributes {stable_mosaic.version = 11 : i64} {
  func.func @_bilstm_layer_kernel(%arg0: i32, %arg1: memref<16x32xbf16, #tpu.memory_space<vmem>>, %arg2: memref<16x32xbf16, #tpu.memory_space<vmem>>, %arg3: memref<2x32x256xbf16, #tpu.memory_space<vmem>>, %arg4: memref<1x256xf32, #tpu.memory_space<vmem>>, %arg5: memref<2x32x128xf32, #tpu.memory_space<vmem>>, %arg6: memref<16x32xbf16, #tpu.memory_space<vmem>>, %arg7: memref<16x32xbf16, #tpu.memory_space<vmem>>, %arg8: memref<16x256xf32, #tpu.memory_space<vmem>>) attributes {dimension_semantics = [#tpu.dimension_semantics<arbitrary>], iteration_bounds = array<i64: 1>, scalar_prefetch = 0 : i64, scratch_operands = 1 : i64, tpu.core_type = #tpu.core_type<tc>, window_params = [{pipeline_mode = #tpu.pipeline_mode<synchronous>, transform_indices = @transform_0, window_bounds = array<i64: 16, 32>}, {pipeline_mode = #tpu.pipeline_mode<synchronous>, transform_indices = @transform_1, window_bounds = array<i64: 16, 32>}, {pipeline_mode = #tpu.pipeline_mode<synchronous>, transform_indices = @transform_2, window_bounds = array<i64: 2, 32, 256>}, {pipeline_mode = #tpu.pipeline_mode<synchronous>, transform_indices = @transform_3, window_bounds = array<i64: 1, 256>}, {pipeline_mode = #tpu.pipeline_mode<synchronous>, transform_indices = @transform_4, window_bounds = array<i64: 2, 32, 128>}, {pipeline_mode = #tpu.pipeline_mode<synchronous>, transform_indices = @transform_5, window_bounds = array<i64: 16, 32>}, {pipeline_mode = #tpu.pipeline_mode<synchronous>, transform_indices = @transform_6, window_bounds = array<i64: 16, 32>}]} {
    %c0 = arith.constant 0 : index
    %c0_0 = arith.constant 0 : index
    %0 = vector.load %arg1[%c0, %c0_0] : memref<16x32xbf16, #tpu.memory_space<vmem>>, vector<16x32xbf16>
    %c0_1 = arith.constant 0 : index
    %c0_2 = arith.constant 0 : index
    %c0_3 = arith.constant 0 : index
    %1 = vector.load %arg3[%c0_1, %c0_2, %c0_3] : memref<2x32x256xbf16, #tpu.memory_space<vmem>>, vector<1x32x256xbf16>
    %2 = vector.shape_cast %1 : vector<1x32x256xbf16> to vector<32x256xbf16>
    %cst = arith.constant dense<0.000000e+00> : vector<16x256xf32>
    %3 = tpu.matmul %0, %2, %cst {dimension_numbers = #tpu.dot_dimension_numbers<[1], [0], [0], [1], [0, 0, 1, 1], [], []>} : vector<16x32xbf16>, vector<32x256xbf16>, vector<16x256xf32> -> vector<16x256xf32>
    %c0_4 = arith.constant 0 : index
    %c0_5 = arith.constant 0 : index
    %4 = vector.load %arg2[%c0_4, %c0_5] : memref<16x32xbf16, #tpu.memory_space<vmem>>, vector<16x32xbf16>
    %c1 = arith.constant 1 : index
    %c0_6 = arith.constant 0 : index
    %c0_7 = arith.constant 0 : index
    %5 = vector.load %arg3[%c1, %c0_6, %c0_7] : memref<2x32x256xbf16, #tpu.memory_space<vmem>>, vector<1x32x256xbf16>
    %6 = vector.shape_cast %5 : vector<1x32x256xbf16> to vector<32x256xbf16>
    %cst_8 = arith.constant dense<0.000000e+00> : vector<16x256xf32>
    %7 = tpu.matmul %4, %6, %cst_8 {dimension_numbers = #tpu.dot_dimension_numbers<[1], [0], [0], [1], [0, 0, 1, 1], [], []>} : vector<16x32xbf16>, vector<32x256xbf16>, vector<16x256xf32> -> vector<16x256xf32>
    %8 = arith.addf %3, %7 : vector<16x256xf32>
    %c0_9 = arith.constant 0 : index
    %c0_10 = arith.constant 0 : index
    %9 = vector.load %arg4[%c0_9, %c0_10] : memref<1x256xf32, #tpu.memory_space<vmem>>, vector<1x256xf32>
    %10 = vector.broadcast %9 : vector<1x256xf32> to vector<16x256xf32>
    %11 = arith.addf %8, %10 : vector<16x256xf32>
    %c0_11 = arith.constant 0 : index
    %c0_12 = arith.constant 0 : index
    %12 = vector.load %arg8[%c0_11, %c0_12] : memref<16x256xf32, #tpu.memory_space<vmem>>, vector<16x256xf32>
    tpu.vector_store %arg8[%c0_11, %c0_12], %11 {strides = array<i32>} : memref<16x256xf32, #tpu.memory_space<vmem>>, vector<16x256xf32>,
    %c0_13 = arith.constant 0 : index
    %c0_14 = arith.constant 0 : index
    %c0_15 = arith.constant 0 : index
    %13 = vector.load %arg5[%c0_13, %c0_14, %c0_15] : memref<2x32x128xf32, #tpu.memory_space<vmem>>, vector<1x32x128xf32>
    %14 = vector.shape_cast %13 : vector<1x32x128xf32> to vector<32x128xf32>
    %c1_16 = arith.constant 1 : index
    %c0_17 = arith.constant 0 : index
    %c0_18 = arith.constant 0 : index
    %15 = vector.load %arg5[%c1_16, %c0_17, %c0_18] : memref<2x32x128xf32, #tpu.memory_space<vmem>>, vector<1x32x128xf32>
    %16 = vector.shape_cast %15 : vector<1x32x128xf32> to vector<32x128xf32>
    %cst_19 = arith.constant 0.000000e+00 : f32
    %17 = vector.broadcast %cst_19 : f32 to vector<2x32xf32>
    %c0_i32 = arith.constant 0 : i32
    %c7_i32 = arith.constant 7 : i32
    %18 = arith.subi %c7_i32, %c0_i32 : i32
    %cst_20 = arith.constant dense<0.000000e+00> : vector<2x128xf32>
    %19 = tpu.matmul %17, %14, %cst_20 {dimension_numbers = #tpu.dot_dimension_numbers<[1], [0], [0], [1], [0, 0, 1, 1], [], []>} : vector<2x32xf32>, vector<32x128xf32>, vector<2x128xf32> -> vector<2x128xf32>
    %cst_21 = arith.constant dense<0.000000e+00> : vector<2x128xf32>
    %20 = tpu.matmul %17, %16, %cst_21 {dimension_numbers = #tpu.dot_dimension_numbers<[1], [0], [0], [1], [0, 0, 1, 1], [], []>} : vector<2x32xf32>, vector<32x128xf32>, vector<2x128xf32> -> vector<2x128xf32>
    %c2_i32 = arith.constant 2 : i32
    %21 = arith.muli %c0_i32, %c2_i32 : i32
    %22 = arith.index_cast %21 : i32 to index
    %c0_22 = arith.constant 0 : index
    %23 = vector.load %arg8[%22, %c0_22] : memref<16x256xf32, #tpu.memory_space<vmem>>, vector<2x256xf32>
    %24 = vector.extract_strided_slice %23 {offsets = [0, 0], sizes = [2, 128], strides = [1, 1]} : vector<2x256xf32> to vector<2x128xf32>
    %25 = arith.addf %24, %19 : vector<2x128xf32>
    %c2_i32_23 = arith.constant 2 : i32
    %26 = arith.muli %18, %c2_i32_23 : i32
    %27 = arith.index_cast %26 : i32 to index
    %c0_24 = arith.constant 0 : index
    %28 = vector.load %arg8[%27, %c0_24] : memref<16x256xf32, #tpu.memory_space<vmem>>, vector<2x256xf32>
    %29 = vector.extract_strided_slice %28 {offsets = [0, 128], sizes = [2, 128], strides = [1, 1]} : vector<2x256xf32> to vector<2x128xf32>
    %30 = arith.addf %29, %20 : vector<2x128xf32>
    %31 = vector.extract_strided_slice %25 {offsets = [0, 0], sizes = [2, 96], strides = [1, 1]} : vector<2x128xf32> to vector<2x96xf32>
    %cst_25 = arith.constant 5.000000e-01 : f32
    %32 = vector.broadcast %cst_25 : f32 to vector<2x96xf32>
    %33 = arith.mulf %32, %31 : vector<2x96xf32>
    %34 = math.tanh %33 : vector<2x96xf32>
    %cst_26 = arith.constant 1.000000e+00 : f32
    %35 = vector.broadcast %cst_26 : f32 to vector<2x96xf32>
    %36 = arith.addf %34, %35 : vector<2x96xf32>
    %cst_27 = arith.constant 5.000000e-01 : f32
    %37 = vector.broadcast %cst_27 : f32 to vector<2x96xf32>
    %38 = arith.mulf %37, %36 : vector<2x96xf32>
    %39 = vector.extract_strided_slice %38 {offsets = [0, 0], sizes = [2, 32], strides = [1, 1]} : vector<2x96xf32> to vector<2x32xf32>
    %40 = vector.extract_strided_slice %38 {offsets = [0, 32], sizes = [2, 32], strides = [1, 1]} : vector<2x96xf32> to vector<2x32xf32>
    %41 = vector.extract_strided_slice %38 {offsets = [0, 64], sizes = [2, 32], strides = [1, 1]} : vector<2x96xf32> to vector<2x32xf32>
    %42 = vector.extract_strided_slice %25 {offsets = [0, 96], sizes = [2, 32], strides = [1, 1]} : vector<2x128xf32> to vector<2x32xf32>
    %43 = math.tanh %42 : vector<2x32xf32>
    %44 = arith.mulf %40, %17 : vector<2x32xf32>
    %45 = arith.mulf %39, %43 : vector<2x32xf32>
    %46 = arith.addf %44, %45 : vector<2x32xf32>
    %47 = math.tanh %46 : vector<2x32xf32>
    %48 = arith.mulf %41, %47 : vector<2x32xf32>
    %49 = vector.extract_strided_slice %30 {offsets = [0, 0], sizes = [2, 96], strides = [1, 1]} : vector<2x128xf32> to vector<2x96xf32>
    %cst_28 = arith.constant 5.000000e-01 : f32
    %50 = vector.broadcast %cst_28 : f32 to vector<2x96xf32>
    %51 = arith.mulf %50, %49 : vector<2x96xf32>
    %52 = math.tanh %51 : vector<2x96xf32>
    %cst_29 = arith.constant 1.000000e+00 : f32
    %53 = vector.broadcast %cst_29 : f32 to vector<2x96xf32>
    %54 = arith.addf %52, %53 : vector<2x96xf32>
    %cst_30 = arith.constant 5.000000e-01 : f32
    %55 = vector.broadcast %cst_30 : f32 to vector<2x96xf32>
    %56 = arith.mulf %55, %54 : vector<2x96xf32>
    %57 = vector.extract_strided_slice %56 {offsets = [0, 0], sizes = [2, 32], strides = [1, 1]} : vector<2x96xf32> to vector<2x32xf32>
    %58 = vector.extract_strided_slice %56 {offsets = [0, 32], sizes = [2, 32], strides = [1, 1]} : vector<2x96xf32> to vector<2x32xf32>
    %59 = vector.extract_strided_slice %56 {offsets = [0, 64], sizes = [2, 32], strides = [1, 1]} : vector<2x96xf32> to vector<2x32xf32>
    %60 = vector.extract_strided_slice %30 {offsets = [0, 96], sizes = [2, 32], strides = [1, 1]} : vector<2x128xf32> to vector<2x32xf32>
    %61 = math.tanh %60 : vector<2x32xf32>
    %62 = arith.mulf %58, %17 : vector<2x32xf32>
    %63 = arith.mulf %57, %61 : vector<2x32xf32>
    %64 = arith.addf %62, %63 : vector<2x32xf32>
    %65 = math.tanh %64 : vector<2x32xf32>
    %66 = arith.mulf %59, %65 : vector<2x32xf32>
    %67 = arith.truncf %48 : vector<2x32xf32> to vector<2x32xbf16>
    %c2_i32_31 = arith.constant 2 : i32
    %68 = arith.muli %c0_i32, %c2_i32_31 : i32
    %69 = arith.index_cast %68 : i32 to index
    %c0_32 = arith.constant 0 : index
    %70 = vector.load %arg6[%69, %c0_32] : memref<16x32xbf16, #tpu.memory_space<vmem>>, vector<2x32xbf16>
    tpu.vector_store %arg6[%69, %c0_32], %67 {strides = array<i32>} : memref<16x32xbf16, #tpu.memory_space<vmem>>, vector<2x32xbf16>,
    %71 = arith.truncf %66 : vector<2x32xf32> to vector<2x32xbf16>
    %c2_i32_33 = arith.constant 2 : i32
    %72 = arith.muli %18, %c2_i32_33 : i32
    %73 = arith.index_cast %72 : i32 to index
    %c0_34 = arith.constant 0 : index
    %74 = vector.load %arg7[%73, %c0_34] : memref<16x32xbf16, #tpu.memory_space<vmem>>, vector<2x32xbf16>
    tpu.vector_store %arg7[%73, %c0_34], %71 {strides = array<i32>} : memref<16x32xbf16, #tpu.memory_space<vmem>>, vector<2x32xbf16>,
    %c1_i32 = arith.constant 1 : i32
    %c7_i32_35 = arith.constant 7 : i32
    %75 = arith.subi %c7_i32_35, %c1_i32 : i32
    %cst_36 = arith.constant dense<0.000000e+00> : vector<2x128xf32>
    %76 = tpu.matmul %48, %14, %cst_36 {dimension_numbers = #tpu.dot_dimension_numbers<[1], [0], [0], [1], [0, 0, 1, 1], [], []>} : vector<2x32xf32>, vector<32x128xf32>, vector<2x128xf32> -> vector<2x128xf32>
    %cst_37 = arith.constant dense<0.000000e+00> : vector<2x128xf32>
    %77 = tpu.matmul %66, %16, %cst_37 {dimension_numbers = #tpu.dot_dimension_numbers<[1], [0], [0], [1], [0, 0, 1, 1], [], []>} : vector<2x32xf32>, vector<32x128xf32>, vector<2x128xf32> -> vector<2x128xf32>
    %c2_i32_38 = arith.constant 2 : i32
    %78 = arith.muli %c1_i32, %c2_i32_38 : i32
    %79 = arith.index_cast %78 : i32 to index
    %c0_39 = arith.constant 0 : index
    %80 = vector.load %arg8[%79, %c0_39] : memref<16x256xf32, #tpu.memory_space<vmem>>, vector<2x256xf32>
    %81 = vector.extract_strided_slice %80 {offsets = [0, 0], sizes = [2, 128], strides = [1, 1]} : vector<2x256xf32> to vector<2x128xf32>
    %82 = arith.addf %81, %76 : vector<2x128xf32>
    %c2_i32_40 = arith.constant 2 : i32
    %83 = arith.muli %75, %c2_i32_40 : i32
    %84 = arith.index_cast %83 : i32 to index
    %c0_41 = arith.constant 0 : index
    %85 = vector.load %arg8[%84, %c0_41] : memref<16x256xf32, #tpu.memory_space<vmem>>, vector<2x256xf32>
    %86 = vector.extract_strided_slice %85 {offsets = [0, 128], sizes = [2, 128], strides = [1, 1]} : vector<2x256xf32> to vector<2x128xf32>
    %87 = arith.addf %86, %77 : vector<2x128xf32>
    %88 = vector.extract_strided_slice %82 {offsets = [0, 0], sizes = [2, 96], strides = [1, 1]} : vector<2x128xf32> to vector<2x96xf32>
    %cst_42 = arith.constant 5.000000e-01 : f32
    %89 = vector.broadcast %cst_42 : f32 to vector<2x96xf32>
    %90 = arith.mulf %89, %88 : vector<2x96xf32>
    %91 = math.tanh %90 : vector<2x96xf32>
    %cst_43 = arith.constant 1.000000e+00 : f32
    %92 = vector.broadcast %cst_43 : f32 to vector<2x96xf32>
    %93 = arith.addf %91, %92 : vector<2x96xf32>
    %cst_44 = arith.constant 5.000000e-01 : f32
    %94 = vector.broadcast %cst_44 : f32 to vector<2x96xf32>
    %95 = arith.mulf %94, %93 : vector<2x96xf32>
    %96 = vector.extract_strided_slice %95 {offsets = [0, 0], sizes = [2, 32], strides = [1, 1]} : vector<2x96xf32> to vector<2x32xf32>
    %97 = vector.extract_strided_slice %95 {offsets = [0, 32], sizes = [2, 32], strides = [1, 1]} : vector<2x96xf32> to vector<2x32xf32>
    %98 = vector.extract_strided_slice %95 {offsets = [0, 64], sizes = [2, 32], strides = [1, 1]} : vector<2x96xf32> to vector<2x32xf32>
    %99 = vector.extract_strided_slice %82 {offsets = [0, 96], sizes = [2, 32], strides = [1, 1]} : vector<2x128xf32> to vector<2x32xf32>
    %100 = math.tanh %99 : vector<2x32xf32>
    %101 = arith.mulf %97, %46 : vector<2x32xf32>
    %102 = arith.mulf %96, %100 : vector<2x32xf32>
    %103 = arith.addf %101, %102 : vector<2x32xf32>
    %104 = math.tanh %103 : vector<2x32xf32>
    %105 = arith.mulf %98, %104 : vector<2x32xf32>
    %106 = vector.extract_strided_slice %87 {offsets = [0, 0], sizes = [2, 96], strides = [1, 1]} : vector<2x128xf32> to vector<2x96xf32>
    %cst_45 = arith.constant 5.000000e-01 : f32
    %107 = vector.broadcast %cst_45 : f32 to vector<2x96xf32>
    %108 = arith.mulf %107, %106 : vector<2x96xf32>
    %109 = math.tanh %108 : vector<2x96xf32>
    %cst_46 = arith.constant 1.000000e+00 : f32
    %110 = vector.broadcast %cst_46 : f32 to vector<2x96xf32>
    %111 = arith.addf %109, %110 : vector<2x96xf32>
    %cst_47 = arith.constant 5.000000e-01 : f32
    %112 = vector.broadcast %cst_47 : f32 to vector<2x96xf32>
    %113 = arith.mulf %112, %111 : vector<2x96xf32>
    %114 = vector.extract_strided_slice %113 {offsets = [0, 0], sizes = [2, 32], strides = [1, 1]} : vector<2x96xf32> to vector<2x32xf32>
    %115 = vector.extract_strided_slice %113 {offsets = [0, 32], sizes = [2, 32], strides = [1, 1]} : vector<2x96xf32> to vector<2x32xf32>
    %116 = vector.extract_strided_slice %113 {offsets = [0, 64], sizes = [2, 32], strides = [1, 1]} : vector<2x96xf32> to vector<2x32xf32>
    %117 = vector.extract_strided_slice %87 {offsets = [0, 96], sizes = [2, 32], strides = [1, 1]} : vector<2x128xf32> to vector<2x32xf32>
    %118 = math.tanh %117 : vector<2x32xf32>
    %119 = arith.mulf %115, %64 : vector<2x32xf32>
    %120 = arith.mulf %114, %118 : vector<2x32xf32>
    %121 = arith.addf %119, %120 : vector<2x32xf32>
    %122 = math.tanh %121 : vector<2x32xf32>
    %123 = arith.mulf %116, %122 : vector<2x32xf32>
    %124 = arith.truncf %105 : vector<2x32xf32> to vector<2x32xbf16>
    %c2_i32_48 = arith.constant 2 : i32
    %125 = arith.muli %c1_i32, %c2_i32_48 : i32
    %126 = arith.index_cast %125 : i32 to index
    %c0_49 = arith.constant 0 : index
    %127 = vector.load %arg6[%126, %c0_49] : memref<16x32xbf16, #tpu.memory_space<vmem>>, vector<2x32xbf16>
    tpu.vector_store %arg6[%126, %c0_49], %124 {strides = array<i32>} : memref<16x32xbf16, #tpu.memory_space<vmem>>, vector<2x32xbf16>,
    %128 = arith.truncf %123 : vector<2x32xf32> to vector<2x32xbf16>
    %c2_i32_50 = arith.constant 2 : i32
    %129 = arith.muli %75, %c2_i32_50 : i32
    %130 = arith.index_cast %129 : i32 to index
    %c0_51 = arith.constant 0 : index
    %131 = vector.load %arg7[%130, %c0_51] : memref<16x32xbf16, #tpu.memory_space<vmem>>, vector<2x32xbf16>
    tpu.vector_store %arg7[%130, %c0_51], %128 {strides = array<i32>} : memref<16x32xbf16, #tpu.memory_space<vmem>>, vector<2x32xbf16>,
    %c2_i32_52 = arith.constant 2 : i32
    %c7_i32_53 = arith.constant 7 : i32
    %132 = arith.subi %c7_i32_53, %c2_i32_52 : i32
    %cst_54 = arith.constant dense<0.000000e+00> : vector<2x128xf32>
    %133 = tpu.matmul %105, %14, %cst_54 {dimension_numbers = #tpu.dot_dimension_numbers<[1], [0], [0], [1], [0, 0, 1, 1], [], []>} : vector<2x32xf32>, vector<32x128xf32>, vector<2x128xf32> -> vector<2x128xf32>
    %cst_55 = arith.constant dense<0.000000e+00> : vector<2x128xf32>
    %134 = tpu.matmul %123, %16, %cst_55 {dimension_numbers = #tpu.dot_dimension_numbers<[1], [0], [0], [1], [0, 0, 1, 1], [], []>} : vector<2x32xf32>, vector<32x128xf32>, vector<2x128xf32> -> vector<2x128xf32>
    %c2_i32_56 = arith.constant 2 : i32
    %135 = arith.muli %c2_i32_52, %c2_i32_56 : i32
    %136 = arith.index_cast %135 : i32 to index
    %c0_57 = arith.constant 0 : index
    %137 = vector.load %arg8[%136, %c0_57] : memref<16x256xf32, #tpu.memory_space<vmem>>, vector<2x256xf32>
    %138 = vector.extract_strided_slice %137 {offsets = [0, 0], sizes = [2, 128], strides = [1, 1]} : vector<2x256xf32> to vector<2x128xf32>
    %139 = arith.addf %138, %133 : vector<2x128xf32>
    %c2_i32_58 = arith.constant 2 : i32
    %140 = arith.muli %132, %c2_i32_58 : i32
    %141 = arith.index_cast %140 : i32 to index
    %c0_59 = arith.constant 0 : index
    %142 = vector.load %arg8[%141, %c0_59] : memref<16x256xf32, #tpu.memory_space<vmem>>, vector<2x256xf32>
    %143 = vector.extract_strided_slice %142 {offsets = [0, 128], sizes = [2, 128], strides = [1, 1]} : vector<2x256xf32> to vector<2x128xf32>
    %144 = arith.addf %143, %134 : vector<2x128xf32>
    %145 = vector.extract_strided_slice %139 {offsets = [0, 0], sizes = [2, 96], strides = [1, 1]} : vector<2x128xf32> to vector<2x96xf32>
    %cst_60 = arith.constant 5.000000e-01 : f32
    %146 = vector.broadcast %cst_60 : f32 to vector<2x96xf32>
    %147 = arith.mulf %146, %145 : vector<2x96xf32>
    %148 = math.tanh %147 : vector<2x96xf32>
    %cst_61 = arith.constant 1.000000e+00 : f32
    %149 = vector.broadcast %cst_61 : f32 to vector<2x96xf32>
    %150 = arith.addf %148, %149 : vector<2x96xf32>
    %cst_62 = arith.constant 5.000000e-01 : f32
    %151 = vector.broadcast %cst_62 : f32 to vector<2x96xf32>
    %152 = arith.mulf %151, %150 : vector<2x96xf32>
    %153 = vector.extract_strided_slice %152 {offsets = [0, 0], sizes = [2, 32], strides = [1, 1]} : vector<2x96xf32> to vector<2x32xf32>
    %154 = vector.extract_strided_slice %152 {offsets = [0, 32], sizes = [2, 32], strides = [1, 1]} : vector<2x96xf32> to vector<2x32xf32>
    %155 = vector.extract_strided_slice %152 {offsets = [0, 64], sizes = [2, 32], strides = [1, 1]} : vector<2x96xf32> to vector<2x32xf32>
    %156 = vector.extract_strided_slice %139 {offsets = [0, 96], sizes = [2, 32], strides = [1, 1]} : vector<2x128xf32> to vector<2x32xf32>
    %157 = math.tanh %156 : vector<2x32xf32>
    %158 = arith.mulf %154, %103 : vector<2x32xf32>
    %159 = arith.mulf %153, %157 : vector<2x32xf32>
    %160 = arith.addf %158, %159 : vector<2x32xf32>
    %161 = math.tanh %160 : vector<2x32xf32>
    %162 = arith.mulf %155, %161 : vector<2x32xf32>
    %163 = vector.extract_strided_slice %144 {offsets = [0, 0], sizes = [2, 96], strides = [1, 1]} : vector<2x128xf32> to vector<2x96xf32>
    %cst_63 = arith.constant 5.000000e-01 : f32
    %164 = vector.broadcast %cst_63 : f32 to vector<2x96xf32>
    %165 = arith.mulf %164, %163 : vector<2x96xf32>
    %166 = math.tanh %165 : vector<2x96xf32>
    %cst_64 = arith.constant 1.000000e+00 : f32
    %167 = vector.broadcast %cst_64 : f32 to vector<2x96xf32>
    %168 = arith.addf %166, %167 : vector<2x96xf32>
    %cst_65 = arith.constant 5.000000e-01 : f32
    %169 = vector.broadcast %cst_65 : f32 to vector<2x96xf32>
    %170 = arith.mulf %169, %168 : vector<2x96xf32>
    %171 = vector.extract_strided_slice %170 {offsets = [0, 0], sizes = [2, 32], strides = [1, 1]} : vector<2x96xf32> to vector<2x32xf32>
    %172 = vector.extract_strided_slice %170 {offsets = [0, 32], sizes = [2, 32], strides = [1, 1]} : vector<2x96xf32> to vector<2x32xf32>
    %173 = vector.extract_strided_slice %170 {offsets = [0, 64], sizes = [2, 32], strides = [1, 1]} : vector<2x96xf32> to vector<2x32xf32>
    %174 = vector.extract_strided_slice %144 {offsets = [0, 96], sizes = [2, 32], strides = [1, 1]} : vector<2x128xf32> to vector<2x32xf32>
    %175 = math.tanh %174 : vector<2x32xf32>
    %176 = arith.mulf %172, %121 : vector<2x32xf32>
    %177 = arith.mulf %171, %175 : vector<2x32xf32>
    %178 = arith.addf %176, %177 : vector<2x32xf32>
    %179 = math.tanh %178 : vector<2x32xf32>
    %180 = arith.mulf %173, %179 : vector<2x32xf32>
    %181 = arith.truncf %162 : vector<2x32xf32> to vector<2x32xbf16>
    %c2_i32_66 = arith.constant 2 : i32
    %182 = arith.muli %c2_i32_52, %c2_i32_66 : i32
    %183 = arith.index_cast %182 : i32 to index
    %c0_67 = arith.constant 0 : index
    %184 = vector.load %arg6[%183, %c0_67] : memref<16x32xbf16, #tpu.memory_space<vmem>>, vector<2x32xbf16>
    tpu.vector_store %arg6[%183, %c0_67], %181 {strides = array<i32>} : memref<16x32xbf16, #tpu.memory_space<vmem>>, vector<2x32xbf16>,
    %185 = arith.truncf %180 : vector<2x32xf32> to vector<2x32xbf16>
    %c2_i32_68 = arith.constant 2 : i32
    %186 = arith.muli %132, %c2_i32_68 : i32
    %187 = arith.index_cast %186 : i32 to index
    %c0_69 = arith.constant 0 : index
    %188 = vector.load %arg7[%187, %c0_69] : memref<16x32xbf16, #tpu.memory_space<vmem>>, vector<2x32xbf16>
    tpu.vector_store %arg7[%187, %c0_69], %185 {strides = array<i32>} : memref<16x32xbf16, #tpu.memory_space<vmem>>, vector<2x32xbf16>,
    %c3_i32 = arith.constant 3 : i32
    %c7_i32_70 = arith.constant 7 : i32
    %189 = arith.subi %c7_i32_70, %c3_i32 : i32
    %cst_71 = arith.constant dense<0.000000e+00> : vector<2x128xf32>
    %190 = tpu.matmul %162, %14, %cst_71 {dimension_numbers = #tpu.dot_dimension_numbers<[1], [0], [0], [1], [0, 0, 1, 1], [], []>} : vector<2x32xf32>, vector<32x128xf32>, vector<2x128xf32> -> vector<2x128xf32>
    %cst_72 = arith.constant dense<0.000000e+00> : vector<2x128xf32>
    %191 = tpu.matmul %180, %16, %cst_72 {dimension_numbers = #tpu.dot_dimension_numbers<[1], [0], [0], [1], [0, 0, 1, 1], [], []>} : vector<2x32xf32>, vector<32x128xf32>, vector<2x128xf32> -> vector<2x128xf32>
    %c2_i32_73 = arith.constant 2 : i32
    %192 = arith.muli %c3_i32, %c2_i32_73 : i32
    %193 = arith.index_cast %192 : i32 to index
    %c0_74 = arith.constant 0 : index
    %194 = vector.load %arg8[%193, %c0_74] : memref<16x256xf32, #tpu.memory_space<vmem>>, vector<2x256xf32>
    %195 = vector.extract_strided_slice %194 {offsets = [0, 0], sizes = [2, 128], strides = [1, 1]} : vector<2x256xf32> to vector<2x128xf32>
    %196 = arith.addf %195, %190 : vector<2x128xf32>
    %c2_i32_75 = arith.constant 2 : i32
    %197 = arith.muli %189, %c2_i32_75 : i32
    %198 = arith.index_cast %197 : i32 to index
    %c0_76 = arith.constant 0 : index
    %199 = vector.load %arg8[%198, %c0_76] : memref<16x256xf32, #tpu.memory_space<vmem>>, vector<2x256xf32>
    %200 = vector.extract_strided_slice %199 {offsets = [0, 128], sizes = [2, 128], strides = [1, 1]} : vector<2x256xf32> to vector<2x128xf32>
    %201 = arith.addf %200, %191 : vector<2x128xf32>
    %202 = vector.extract_strided_slice %196 {offsets = [0, 0], sizes = [2, 96], strides = [1, 1]} : vector<2x128xf32> to vector<2x96xf32>
    %cst_77 = arith.constant 5.000000e-01 : f32
    %203 = vector.broadcast %cst_77 : f32 to vector<2x96xf32>
    %204 = arith.mulf %203, %202 : vector<2x96xf32>
    %205 = math.tanh %204 : vector<2x96xf32>
    %cst_78 = arith.constant 1.000000e+00 : f32
    %206 = vector.broadcast %cst_78 : f32 to vector<2x96xf32>
    %207 = arith.addf %205, %206 : vector<2x96xf32>
    %cst_79 = arith.constant 5.000000e-01 : f32
    %208 = vector.broadcast %cst_79 : f32 to vector<2x96xf32>
    %209 = arith.mulf %208, %207 : vector<2x96xf32>
    %210 = vector.extract_strided_slice %209 {offsets = [0, 0], sizes = [2, 32], strides = [1, 1]} : vector<2x96xf32> to vector<2x32xf32>
    %211 = vector.extract_strided_slice %209 {offsets = [0, 32], sizes = [2, 32], strides = [1, 1]} : vector<2x96xf32> to vector<2x32xf32>
    %212 = vector.extract_strided_slice %209 {offsets = [0, 64], sizes = [2, 32], strides = [1, 1]} : vector<2x96xf32> to vector<2x32xf32>
    %213 = vector.extract_strided_slice %196 {offsets = [0, 96], sizes = [2, 32], strides = [1, 1]} : vector<2x128xf32> to vector<2x32xf32>
    %214 = math.tanh %213 : vector<2x32xf32>
    %215 = arith.mulf %211, %160 : vector<2x32xf32>
    %216 = arith.mulf %210, %214 : vector<2x32xf32>
    %217 = arith.addf %215, %216 : vector<2x32xf32>
    %218 = math.tanh %217 : vector<2x32xf32>
    %219 = arith.mulf %212, %218 : vector<2x32xf32>
    %220 = vector.extract_strided_slice %201 {offsets = [0, 0], sizes = [2, 96], strides = [1, 1]} : vector<2x128xf32> to vector<2x96xf32>
    %cst_80 = arith.constant 5.000000e-01 : f32
    %221 = vector.broadcast %cst_80 : f32 to vector<2x96xf32>
    %222 = arith.mulf %221, %220 : vector<2x96xf32>
    %223 = math.tanh %222 : vector<2x96xf32>
    %cst_81 = arith.constant 1.000000e+00 : f32
    %224 = vector.broadcast %cst_81 : f32 to vector<2x96xf32>
    %225 = arith.addf %223, %224 : vector<2x96xf32>
    %cst_82 = arith.constant 5.000000e-01 : f32
    %226 = vector.broadcast %cst_82 : f32 to vector<2x96xf32>
    %227 = arith.mulf %226, %225 : vector<2x96xf32>
    %228 = vector.extract_strided_slice %227 {offsets = [0, 0], sizes = [2, 32], strides = [1, 1]} : vector<2x96xf32> to vector<2x32xf32>
    %229 = vector.extract_strided_slice %227 {offsets = [0, 32], sizes = [2, 32], strides = [1, 1]} : vector<2x96xf32> to vector<2x32xf32>
    %230 = vector.extract_strided_slice %227 {offsets = [0, 64], sizes = [2, 32], strides = [1, 1]} : vector<2x96xf32> to vector<2x32xf32>
    %231 = vector.extract_strided_slice %201 {offsets = [0, 96], sizes = [2, 32], strides = [1, 1]} : vector<2x128xf32> to vector<2x32xf32>
    %232 = math.tanh %231 : vector<2x32xf32>
    %233 = arith.mulf %229, %178 : vector<2x32xf32>
    %234 = arith.mulf %228, %232 : vector<2x32xf32>
    %235 = arith.addf %233, %234 : vector<2x32xf32>
    %236 = math.tanh %235 : vector<2x32xf32>
    %237 = arith.mulf %230, %236 : vector<2x32xf32>
    %238 = arith.truncf %219 : vector<2x32xf32> to vector<2x32xbf16>
    %c2_i32_83 = arith.constant 2 : i32
    %239 = arith.muli %c3_i32, %c2_i32_83 : i32
    %240 = arith.index_cast %239 : i32 to index
    %c0_84 = arith.constant 0 : index
    %241 = vector.load %arg6[%240, %c0_84] : memref<16x32xbf16, #tpu.memory_space<vmem>>, vector<2x32xbf16>
    tpu.vector_store %arg6[%240, %c0_84], %238 {strides = array<i32>} : memref<16x32xbf16, #tpu.memory_space<vmem>>, vector<2x32xbf16>,
    %242 = arith.truncf %237 : vector<2x32xf32> to vector<2x32xbf16>
    %c2_i32_85 = arith.constant 2 : i32
    %243 = arith.muli %189, %c2_i32_85 : i32
    %244 = arith.index_cast %243 : i32 to index
    %c0_86 = arith.constant 0 : index
    %245 = vector.load %arg7[%244, %c0_86] : memref<16x32xbf16, #tpu.memory_space<vmem>>, vector<2x32xbf16>
    tpu.vector_store %arg7[%244, %c0_86], %242 {strides = array<i32>} : memref<16x32xbf16, #tpu.memory_space<vmem>>, vector<2x32xbf16>,
    %c4_i32 = arith.constant 4 : i32
    %c7_i32_87 = arith.constant 7 : i32
    %246 = arith.subi %c7_i32_87, %c4_i32 : i32
    %cst_88 = arith.constant dense<0.000000e+00> : vector<2x128xf32>
    %247 = tpu.matmul %219, %14, %cst_88 {dimension_numbers = #tpu.dot_dimension_numbers<[1], [0], [0], [1], [0, 0, 1, 1], [], []>} : vector<2x32xf32>, vector<32x128xf32>, vector<2x128xf32> -> vector<2x128xf32>
    %cst_89 = arith.constant dense<0.000000e+00> : vector<2x128xf32>
    %248 = tpu.matmul %237, %16, %cst_89 {dimension_numbers = #tpu.dot_dimension_numbers<[1], [0], [0], [1], [0, 0, 1, 1], [], []>} : vector<2x32xf32>, vector<32x128xf32>, vector<2x128xf32> -> vector<2x128xf32>
    %c2_i32_90 = arith.constant 2 : i32
    %249 = arith.muli %c4_i32, %c2_i32_90 : i32
    %250 = arith.index_cast %249 : i32 to index
    %c0_91 = arith.constant 0 : index
    %251 = vector.load %arg8[%250, %c0_91] : memref<16x256xf32, #tpu.memory_space<vmem>>, vector<2x256xf32>
    %252 = vector.extract_strided_slice %251 {offsets = [0, 0], sizes = [2, 128], strides = [1, 1]} : vector<2x256xf32> to vector<2x128xf32>
    %253 = arith.addf %252, %247 : vector<2x128xf32>
    %c2_i32_92 = arith.constant 2 : i32
    %254 = arith.muli %246, %c2_i32_92 : i32
    %255 = arith.index_cast %254 : i32 to index
    %c0_93 = arith.constant 0 : index
    %256 = vector.load %arg8[%255, %c0_93] : memref<16x256xf32, #tpu.memory_space<vmem>>, vector<2x256xf32>
    %257 = vector.extract_strided_slice %256 {offsets = [0, 128], sizes = [2, 128], strides = [1, 1]} : vector<2x256xf32> to vector<2x128xf32>
    %258 = arith.addf %257, %248 : vector<2x128xf32>
    %259 = vector.extract_strided_slice %253 {offsets = [0, 0], sizes = [2, 96], strides = [1, 1]} : vector<2x128xf32> to vector<2x96xf32>
    %cst_94 = arith.constant 5.000000e-01 : f32
    %260 = vector.broadcast %cst_94 : f32 to vector<2x96xf32>
    %261 = arith.mulf %260, %259 : vector<2x96xf32>
    %262 = math.tanh %261 : vector<2x96xf32>
    %cst_95 = arith.constant 1.000000e+00 : f32
    %263 = vector.broadcast %cst_95 : f32 to vector<2x96xf32>
    %264 = arith.addf %262, %263 : vector<2x96xf32>
    %cst_96 = arith.constant 5.000000e-01 : f32
    %265 = vector.broadcast %cst_96 : f32 to vector<2x96xf32>
    %266 = arith.mulf %265, %264 : vector<2x96xf32>
    %267 = vector.extract_strided_slice %266 {offsets = [0, 0], sizes = [2, 32], strides = [1, 1]} : vector<2x96xf32> to vector<2x32xf32>
    %268 = vector.extract_strided_slice %266 {offsets = [0, 32], sizes = [2, 32], strides = [1, 1]} : vector<2x96xf32> to vector<2x32xf32>
    %269 = vector.extract_strided_slice %266 {offsets = [0, 64], sizes = [2, 32], strides = [1, 1]} : vector<2x96xf32> to vector<2x32xf32>
    %270 = vector.extract_strided_slice %253 {offsets = [0, 96], sizes = [2, 32], strides = [1, 1]} : vector<2x128xf32> to vector<2x32xf32>
    %271 = math.tanh %270 : vector<2x32xf32>
    %272 = arith.mulf %268, %217 : vector<2x32xf32>
    %273 = arith.mulf %267, %271 : vector<2x32xf32>
    %274 = arith.addf %272, %273 : vector<2x32xf32>
    %275 = math.tanh %274 : vector<2x32xf32>
    %276 = arith.mulf %269, %275 : vector<2x32xf32>
    %277 = vector.extract_strided_slice %258 {offsets = [0, 0], sizes = [2, 96], strides = [1, 1]} : vector<2x128xf32> to vector<2x96xf32>
    %cst_97 = arith.constant 5.000000e-01 : f32
    %278 = vector.broadcast %cst_97 : f32 to vector<2x96xf32>
    %279 = arith.mulf %278, %277 : vector<2x96xf32>
    %280 = math.tanh %279 : vector<2x96xf32>
    %cst_98 = arith.constant 1.000000e+00 : f32
    %281 = vector.broadcast %cst_98 : f32 to vector<2x96xf32>
    %282 = arith.addf %280, %281 : vector<2x96xf32>
    %cst_99 = arith.constant 5.000000e-01 : f32
    %283 = vector.broadcast %cst_99 : f32 to vector<2x96xf32>
    %284 = arith.mulf %283, %282 : vector<2x96xf32>
    %285 = vector.extract_strided_slice %284 {offsets = [0, 0], sizes = [2, 32], strides = [1, 1]} : vector<2x96xf32> to vector<2x32xf32>
    %286 = vector.extract_strided_slice %284 {offsets = [0, 32], sizes = [2, 32], strides = [1, 1]} : vector<2x96xf32> to vector<2x32xf32>
    %287 = vector.extract_strided_slice %284 {offsets = [0, 64], sizes = [2, 32], strides = [1, 1]} : vector<2x96xf32> to vector<2x32xf32>
    %288 = vector.extract_strided_slice %258 {offsets = [0, 96], sizes = [2, 32], strides = [1, 1]} : vector<2x128xf32> to vector<2x32xf32>
    %289 = math.tanh %288 : vector<2x32xf32>
    %290 = arith.mulf %286, %235 : vector<2x32xf32>
    %291 = arith.mulf %285, %289 : vector<2x32xf32>
    %292 = arith.addf %290, %291 : vector<2x32xf32>
    %293 = math.tanh %292 : vector<2x32xf32>
    %294 = arith.mulf %287, %293 : vector<2x32xf32>
    %295 = arith.truncf %276 : vector<2x32xf32> to vector<2x32xbf16>
    %c2_i32_100 = arith.constant 2 : i32
    %296 = arith.muli %c4_i32, %c2_i32_100 : i32
    %297 = arith.index_cast %296 : i32 to index
    %c0_101 = arith.constant 0 : index
    %298 = vector.load %arg6[%297, %c0_101] : memref<16x32xbf16, #tpu.memory_space<vmem>>, vector<2x32xbf16>
    tpu.vector_store %arg6[%297, %c0_101], %295 {strides = array<i32>} : memref<16x32xbf16, #tpu.memory_space<vmem>>, vector<2x32xbf16>,
    %299 = arith.truncf %294 : vector<2x32xf32> to vector<2x32xbf16>
    %c2_i32_102 = arith.constant 2 : i32
    %300 = arith.muli %246, %c2_i32_102 : i32
    %301 = arith.index_cast %300 : i32 to index
    %c0_103 = arith.constant 0 : index
    %302 = vector.load %arg7[%301, %c0_103] : memref<16x32xbf16, #tpu.memory_space<vmem>>, vector<2x32xbf16>
    tpu.vector_store %arg7[%301, %c0_103], %299 {strides = array<i32>} : memref<16x32xbf16, #tpu.memory_space<vmem>>, vector<2x32xbf16>,
    %c5_i32 = arith.constant 5 : i32
    %c7_i32_104 = arith.constant 7 : i32
    %303 = arith.subi %c7_i32_104, %c5_i32 : i32
    %cst_105 = arith.constant dense<0.000000e+00> : vector<2x128xf32>
    %304 = tpu.matmul %276, %14, %cst_105 {dimension_numbers = #tpu.dot_dimension_numbers<[1], [0], [0], [1], [0, 0, 1, 1], [], []>} : vector<2x32xf32>, vector<32x128xf32>, vector<2x128xf32> -> vector<2x128xf32>
    %cst_106 = arith.constant dense<0.000000e+00> : vector<2x128xf32>
    %305 = tpu.matmul %294, %16, %cst_106 {dimension_numbers = #tpu.dot_dimension_numbers<[1], [0], [0], [1], [0, 0, 1, 1], [], []>} : vector<2x32xf32>, vector<32x128xf32>, vector<2x128xf32> -> vector<2x128xf32>
    %c2_i32_107 = arith.constant 2 : i32
    %306 = arith.muli %c5_i32, %c2_i32_107 : i32
    %307 = arith.index_cast %306 : i32 to index
    %c0_108 = arith.constant 0 : index
    %308 = vector.load %arg8[%307, %c0_108] : memref<16x256xf32, #tpu.memory_space<vmem>>, vector<2x256xf32>
    %309 = vector.extract_strided_slice %308 {offsets = [0, 0], sizes = [2, 128], strides = [1, 1]} : vector<2x256xf32> to vector<2x128xf32>
    %310 = arith.addf %309, %304 : vector<2x128xf32>
    %c2_i32_109 = arith.constant 2 : i32
    %311 = arith.muli %303, %c2_i32_109 : i32
    %312 = arith.index_cast %311 : i32 to index
    %c0_110 = arith.constant 0 : index
    %313 = vector.load %arg8[%312, %c0_110] : memref<16x256xf32, #tpu.memory_space<vmem>>, vector<2x256xf32>
    %314 = vector.extract_strided_slice %313 {offsets = [0, 128], sizes = [2, 128], strides = [1, 1]} : vector<2x256xf32> to vector<2x128xf32>
    %315 = arith.addf %314, %305 : vector<2x128xf32>
    %316 = vector.extract_strided_slice %310 {offsets = [0, 0], sizes = [2, 96], strides = [1, 1]} : vector<2x128xf32> to vector<2x96xf32>
    %cst_111 = arith.constant 5.000000e-01 : f32
    %317 = vector.broadcast %cst_111 : f32 to vector<2x96xf32>
    %318 = arith.mulf %317, %316 : vector<2x96xf32>
    %319 = math.tanh %318 : vector<2x96xf32>
    %cst_112 = arith.constant 1.000000e+00 : f32
    %320 = vector.broadcast %cst_112 : f32 to vector<2x96xf32>
    %321 = arith.addf %319, %320 : vector<2x96xf32>
    %cst_113 = arith.constant 5.000000e-01 : f32
    %322 = vector.broadcast %cst_113 : f32 to vector<2x96xf32>
    %323 = arith.mulf %322, %321 : vector<2x96xf32>
    %324 = vector.extract_strided_slice %323 {offsets = [0, 0], sizes = [2, 32], strides = [1, 1]} : vector<2x96xf32> to vector<2x32xf32>
    %325 = vector.extract_strided_slice %323 {offsets = [0, 32], sizes = [2, 32], strides = [1, 1]} : vector<2x96xf32> to vector<2x32xf32>
    %326 = vector.extract_strided_slice %323 {offsets = [0, 64], sizes = [2, 32], strides = [1, 1]} : vector<2x96xf32> to vector<2x32xf32>
    %327 = vector.extract_strided_slice %310 {offsets = [0, 96], sizes = [2, 32], strides = [1, 1]} : vector<2x128xf32> to vector<2x32xf32>
    %328 = math.tanh %327 : vector<2x32xf32>
    %329 = arith.mulf %325, %274 : vector<2x32xf32>
    %330 = arith.mulf %324, %328 : vector<2x32xf32>
    %331 = arith.addf %329, %330 : vector<2x32xf32>
    %332 = math.tanh %331 : vector<2x32xf32>
    %333 = arith.mulf %326, %332 : vector<2x32xf32>
    %334 = vector.extract_strided_slice %315 {offsets = [0, 0], sizes = [2, 96], strides = [1, 1]} : vector<2x128xf32> to vector<2x96xf32>
    %cst_114 = arith.constant 5.000000e-01 : f32
    %335 = vector.broadcast %cst_114 : f32 to vector<2x96xf32>
    %336 = arith.mulf %335, %334 : vector<2x96xf32>
    %337 = math.tanh %336 : vector<2x96xf32>
    %cst_115 = arith.constant 1.000000e+00 : f32
    %338 = vector.broadcast %cst_115 : f32 to vector<2x96xf32>
    %339 = arith.addf %337, %338 : vector<2x96xf32>
    %cst_116 = arith.constant 5.000000e-01 : f32
    %340 = vector.broadcast %cst_116 : f32 to vector<2x96xf32>
    %341 = arith.mulf %340, %339 : vector<2x96xf32>
    %342 = vector.extract_strided_slice %341 {offsets = [0, 0], sizes = [2, 32], strides = [1, 1]} : vector<2x96xf32> to vector<2x32xf32>
    %343 = vector.extract_strided_slice %341 {offsets = [0, 32], sizes = [2, 32], strides = [1, 1]} : vector<2x96xf32> to vector<2x32xf32>
    %344 = vector.extract_strided_slice %341 {offsets = [0, 64], sizes = [2, 32], strides = [1, 1]} : vector<2x96xf32> to vector<2x32xf32>
    %345 = vector.extract_strided_slice %315 {offsets = [0, 96], sizes = [2, 32], strides = [1, 1]} : vector<2x128xf32> to vector<2x32xf32>
    %346 = math.tanh %345 : vector<2x32xf32>
    %347 = arith.mulf %343, %292 : vector<2x32xf32>
    %348 = arith.mulf %342, %346 : vector<2x32xf32>
    %349 = arith.addf %347, %348 : vector<2x32xf32>
    %350 = math.tanh %349 : vector<2x32xf32>
    %351 = arith.mulf %344, %350 : vector<2x32xf32>
    %352 = arith.truncf %333 : vector<2x32xf32> to vector<2x32xbf16>
    %c2_i32_117 = arith.constant 2 : i32
    %353 = arith.muli %c5_i32, %c2_i32_117 : i32
    %354 = arith.index_cast %353 : i32 to index
    %c0_118 = arith.constant 0 : index
    %355 = vector.load %arg6[%354, %c0_118] : memref<16x32xbf16, #tpu.memory_space<vmem>>, vector<2x32xbf16>
    tpu.vector_store %arg6[%354, %c0_118], %352 {strides = array<i32>} : memref<16x32xbf16, #tpu.memory_space<vmem>>, vector<2x32xbf16>,
    %356 = arith.truncf %351 : vector<2x32xf32> to vector<2x32xbf16>
    %c2_i32_119 = arith.constant 2 : i32
    %357 = arith.muli %303, %c2_i32_119 : i32
    %358 = arith.index_cast %357 : i32 to index
    %c0_120 = arith.constant 0 : index
    %359 = vector.load %arg7[%358, %c0_120] : memref<16x32xbf16, #tpu.memory_space<vmem>>, vector<2x32xbf16>
    tpu.vector_store %arg7[%358, %c0_120], %356 {strides = array<i32>} : memref<16x32xbf16, #tpu.memory_space<vmem>>, vector<2x32xbf16>,
    %c6_i32 = arith.constant 6 : i32
    %c7_i32_121 = arith.constant 7 : i32
    %360 = arith.subi %c7_i32_121, %c6_i32 : i32
    %cst_122 = arith.constant dense<0.000000e+00> : vector<2x128xf32>
    %361 = tpu.matmul %333, %14, %cst_122 {dimension_numbers = #tpu.dot_dimension_numbers<[1], [0], [0], [1], [0, 0, 1, 1], [], []>} : vector<2x32xf32>, vector<32x128xf32>, vector<2x128xf32> -> vector<2x128xf32>
    %cst_123 = arith.constant dense<0.000000e+00> : vector<2x128xf32>
    %362 = tpu.matmul %351, %16, %cst_123 {dimension_numbers = #tpu.dot_dimension_numbers<[1], [0], [0], [1], [0, 0, 1, 1], [], []>} : vector<2x32xf32>, vector<32x128xf32>, vector<2x128xf32> -> vector<2x128xf32>
    %c2_i32_124 = arith.constant 2 : i32
    %363 = arith.muli %c6_i32, %c2_i32_124 : i32
    %364 = arith.index_cast %363 : i32 to index
    %c0_125 = arith.constant 0 : index
    %365 = vector.load %arg8[%364, %c0_125] : memref<16x256xf32, #tpu.memory_space<vmem>>, vector<2x256xf32>
    %366 = vector.extract_strided_slice %365 {offsets = [0, 0], sizes = [2, 128], strides = [1, 1]} : vector<2x256xf32> to vector<2x128xf32>
    %367 = arith.addf %366, %361 : vector<2x128xf32>
    %c2_i32_126 = arith.constant 2 : i32
    %368 = arith.muli %360, %c2_i32_126 : i32
    %369 = arith.index_cast %368 : i32 to index
    %c0_127 = arith.constant 0 : index
    %370 = vector.load %arg8[%369, %c0_127] : memref<16x256xf32, #tpu.memory_space<vmem>>, vector<2x256xf32>
    %371 = vector.extract_strided_slice %370 {offsets = [0, 128], sizes = [2, 128], strides = [1, 1]} : vector<2x256xf32> to vector<2x128xf32>
    %372 = arith.addf %371, %362 : vector<2x128xf32>
    %373 = vector.extract_strided_slice %367 {offsets = [0, 0], sizes = [2, 96], strides = [1, 1]} : vector<2x128xf32> to vector<2x96xf32>
    %cst_128 = arith.constant 5.000000e-01 : f32
    %374 = vector.broadcast %cst_128 : f32 to vector<2x96xf32>
    %375 = arith.mulf %374, %373 : vector<2x96xf32>
    %376 = math.tanh %375 : vector<2x96xf32>
    %cst_129 = arith.constant 1.000000e+00 : f32
    %377 = vector.broadcast %cst_129 : f32 to vector<2x96xf32>
    %378 = arith.addf %376, %377 : vector<2x96xf32>
    %cst_130 = arith.constant 5.000000e-01 : f32
    %379 = vector.broadcast %cst_130 : f32 to vector<2x96xf32>
    %380 = arith.mulf %379, %378 : vector<2x96xf32>
    %381 = vector.extract_strided_slice %380 {offsets = [0, 0], sizes = [2, 32], strides = [1, 1]} : vector<2x96xf32> to vector<2x32xf32>
    %382 = vector.extract_strided_slice %380 {offsets = [0, 32], sizes = [2, 32], strides = [1, 1]} : vector<2x96xf32> to vector<2x32xf32>
    %383 = vector.extract_strided_slice %380 {offsets = [0, 64], sizes = [2, 32], strides = [1, 1]} : vector<2x96xf32> to vector<2x32xf32>
    %384 = vector.extract_strided_slice %367 {offsets = [0, 96], sizes = [2, 32], strides = [1, 1]} : vector<2x128xf32> to vector<2x32xf32>
    %385 = math.tanh %384 : vector<2x32xf32>
    %386 = arith.mulf %382, %331 : vector<2x32xf32>
    %387 = arith.mulf %381, %385 : vector<2x32xf32>
    %388 = arith.addf %386, %387 : vector<2x32xf32>
    %389 = math.tanh %388 : vector<2x32xf32>
    %390 = arith.mulf %383, %389 : vector<2x32xf32>
    %391 = vector.extract_strided_slice %372 {offsets = [0, 0], sizes = [2, 96], strides = [1, 1]} : vector<2x128xf32> to vector<2x96xf32>
    %cst_131 = arith.constant 5.000000e-01 : f32
    %392 = vector.broadcast %cst_131 : f32 to vector<2x96xf32>
    %393 = arith.mulf %392, %391 : vector<2x96xf32>
    %394 = math.tanh %393 : vector<2x96xf32>
    %cst_132 = arith.constant 1.000000e+00 : f32
    %395 = vector.broadcast %cst_132 : f32 to vector<2x96xf32>
    %396 = arith.addf %394, %395 : vector<2x96xf32>
    %cst_133 = arith.constant 5.000000e-01 : f32
    %397 = vector.broadcast %cst_133 : f32 to vector<2x96xf32>
    %398 = arith.mulf %397, %396 : vector<2x96xf32>
    %399 = vector.extract_strided_slice %398 {offsets = [0, 0], sizes = [2, 32], strides = [1, 1]} : vector<2x96xf32> to vector<2x32xf32>
    %400 = vector.extract_strided_slice %398 {offsets = [0, 32], sizes = [2, 32], strides = [1, 1]} : vector<2x96xf32> to vector<2x32xf32>
    %401 = vector.extract_strided_slice %398 {offsets = [0, 64], sizes = [2, 32], strides = [1, 1]} : vector<2x96xf32> to vector<2x32xf32>
    %402 = vector.extract_strided_slice %372 {offsets = [0, 96], sizes = [2, 32], strides = [1, 1]} : vector<2x128xf32> to vector<2x32xf32>
    %403 = math.tanh %402 : vector<2x32xf32>
    %404 = arith.mulf %400, %349 : vector<2x32xf32>
    %405 = arith.mulf %399, %403 : vector<2x32xf32>
    %406 = arith.addf %404, %405 : vector<2x32xf32>
    %407 = math.tanh %406 : vector<2x32xf32>
    %408 = arith.mulf %401, %407 : vector<2x32xf32>
    %409 = arith.truncf %390 : vector<2x32xf32> to vector<2x32xbf16>
    %c2_i32_134 = arith.constant 2 : i32
    %410 = arith.muli %c6_i32, %c2_i32_134 : i32
    %411 = arith.index_cast %410 : i32 to index
    %c0_135 = arith.constant 0 : index
    %412 = vector.load %arg6[%411, %c0_135] : memref<16x32xbf16, #tpu.memory_space<vmem>>, vector<2x32xbf16>
    tpu.vector_store %arg6[%411, %c0_135], %409 {strides = array<i32>} : memref<16x32xbf16, #tpu.memory_space<vmem>>, vector<2x32xbf16>,
    %413 = arith.truncf %408 : vector<2x32xf32> to vector<2x32xbf16>
    %c2_i32_136 = arith.constant 2 : i32
    %414 = arith.muli %360, %c2_i32_136 : i32
    %415 = arith.index_cast %414 : i32 to index
    %c0_137 = arith.constant 0 : index
    %416 = vector.load %arg7[%415, %c0_137] : memref<16x32xbf16, #tpu.memory_space<vmem>>, vector<2x32xbf16>
    tpu.vector_store %arg7[%415, %c0_137], %413 {strides = array<i32>} : memref<16x32xbf16, #tpu.memory_space<vmem>>, vector<2x32xbf16>,
    %c7_i32_138 = arith.constant 7 : i32
    %c7_i32_139 = arith.constant 7 : i32
    %417 = arith.subi %c7_i32_139, %c7_i32_138 : i32
    %cst_140 = arith.constant dense<0.000000e+00> : vector<2x128xf32>
    %418 = tpu.matmul %390, %14, %cst_140 {dimension_numbers = #tpu.dot_dimension_numbers<[1], [0], [0], [1], [0, 0, 1, 1], [], []>} : vector<2x32xf32>, vector<32x128xf32>, vector<2x128xf32> -> vector<2x128xf32>
    %cst_141 = arith.constant dense<0.000000e+00> : vector<2x128xf32>
    %419 = tpu.matmul %408, %16, %cst_141 {dimension_numbers = #tpu.dot_dimension_numbers<[1], [0], [0], [1], [0, 0, 1, 1], [], []>} : vector<2x32xf32>, vector<32x128xf32>, vector<2x128xf32> -> vector<2x128xf32>
    %c2_i32_142 = arith.constant 2 : i32
    %420 = arith.muli %c7_i32_138, %c2_i32_142 : i32
    %421 = arith.index_cast %420 : i32 to index
    %c0_143 = arith.constant 0 : index
    %422 = vector.load %arg8[%421, %c0_143] : memref<16x256xf32, #tpu.memory_space<vmem>>, vector<2x256xf32>
    %423 = vector.extract_strided_slice %422 {offsets = [0, 0], sizes = [2, 128], strides = [1, 1]} : vector<2x256xf32> to vector<2x128xf32>
    %424 = arith.addf %423, %418 : vector<2x128xf32>
    %c2_i32_144 = arith.constant 2 : i32
    %425 = arith.muli %417, %c2_i32_144 : i32
    %426 = arith.index_cast %425 : i32 to index
    %c0_145 = arith.constant 0 : index
    %427 = vector.load %arg8[%426, %c0_145] : memref<16x256xf32, #tpu.memory_space<vmem>>, vector<2x256xf32>
    %428 = vector.extract_strided_slice %427 {offsets = [0, 128], sizes = [2, 128], strides = [1, 1]} : vector<2x256xf32> to vector<2x128xf32>
    %429 = arith.addf %428, %419 : vector<2x128xf32>
    %430 = vector.extract_strided_slice %424 {offsets = [0, 0], sizes = [2, 96], strides = [1, 1]} : vector<2x128xf32> to vector<2x96xf32>
    %cst_146 = arith.constant 5.000000e-01 : f32
    %431 = vector.broadcast %cst_146 : f32 to vector<2x96xf32>
    %432 = arith.mulf %431, %430 : vector<2x96xf32>
    %433 = math.tanh %432 : vector<2x96xf32>
    %cst_147 = arith.constant 1.000000e+00 : f32
    %434 = vector.broadcast %cst_147 : f32 to vector<2x96xf32>
    %435 = arith.addf %433, %434 : vector<2x96xf32>
    %cst_148 = arith.constant 5.000000e-01 : f32
    %436 = vector.broadcast %cst_148 : f32 to vector<2x96xf32>
    %437 = arith.mulf %436, %435 : vector<2x96xf32>
    %438 = vector.extract_strided_slice %437 {offsets = [0, 0], sizes = [2, 32], strides = [1, 1]} : vector<2x96xf32> to vector<2x32xf32>
    %439 = vector.extract_strided_slice %437 {offsets = [0, 32], sizes = [2, 32], strides = [1, 1]} : vector<2x96xf32> to vector<2x32xf32>
    %440 = vector.extract_strided_slice %437 {offsets = [0, 64], sizes = [2, 32], strides = [1, 1]} : vector<2x96xf32> to vector<2x32xf32>
    %441 = vector.extract_strided_slice %424 {offsets = [0, 96], sizes = [2, 32], strides = [1, 1]} : vector<2x128xf32> to vector<2x32xf32>
    %442 = math.tanh %441 : vector<2x32xf32>
    %443 = arith.mulf %439, %388 : vector<2x32xf32>
    %444 = arith.mulf %438, %442 : vector<2x32xf32>
    %445 = arith.addf %443, %444 : vector<2x32xf32>
    %446 = math.tanh %445 : vector<2x32xf32>
    %447 = arith.mulf %440, %446 : vector<2x32xf32>
    %448 = vector.extract_strided_slice %429 {offsets = [0, 0], sizes = [2, 96], strides = [1, 1]} : vector<2x128xf32> to vector<2x96xf32>
    %cst_149 = arith.constant 5.000000e-01 : f32
    %449 = vector.broadcast %cst_149 : f32 to vector<2x96xf32>
    %450 = arith.mulf %449, %448 : vector<2x96xf32>
    %451 = math.tanh %450 : vector<2x96xf32>
    %cst_150 = arith.constant 1.000000e+00 : f32
    %452 = vector.broadcast %cst_150 : f32 to vector<2x96xf32>
    %453 = arith.addf %451, %452 : vector<2x96xf32>
    %cst_151 = arith.constant 5.000000e-01 : f32
    %454 = vector.broadcast %cst_151 : f32 to vector<2x96xf32>
    %455 = arith.mulf %454, %453 : vector<2x96xf32>
    %456 = vector.extract_strided_slice %455 {offsets = [0, 0], sizes = [2, 32], strides = [1, 1]} : vector<2x96xf32> to vector<2x32xf32>
    %457 = vector.extract_strided_slice %455 {offsets = [0, 32], sizes = [2, 32], strides = [1, 1]} : vector<2x96xf32> to vector<2x32xf32>
    %458 = vector.extract_strided_slice %455 {offsets = [0, 64], sizes = [2, 32], strides = [1, 1]} : vector<2x96xf32> to vector<2x32xf32>
    %459 = vector.extract_strided_slice %429 {offsets = [0, 96], sizes = [2, 32], strides = [1, 1]} : vector<2x128xf32> to vector<2x32xf32>
    %460 = math.tanh %459 : vector<2x32xf32>
    %461 = arith.mulf %457, %406 : vector<2x32xf32>
    %462 = arith.mulf %456, %460 : vector<2x32xf32>
    %463 = arith.addf %461, %462 : vector<2x32xf32>
    %464 = math.tanh %463 : vector<2x32xf32>
    %465 = arith.mulf %458, %464 : vector<2x32xf32>
    %466 = arith.truncf %447 : vector<2x32xf32> to vector<2x32xbf16>
    %c2_i32_152 = arith.constant 2 : i32
    %467 = arith.muli %c7_i32_138, %c2_i32_152 : i32
    %468 = arith.index_cast %467 : i32 to index
    %c0_153 = arith.constant 0 : index
    %469 = vector.load %arg6[%468, %c0_153] : memref<16x32xbf16, #tpu.memory_space<vmem>>, vector<2x32xbf16>
    tpu.vector_store %arg6[%468, %c0_153], %466 {strides = array<i32>} : memref<16x32xbf16, #tpu.memory_space<vmem>>, vector<2x32xbf16>,
    %470 = arith.truncf %465 : vector<2x32xf32> to vector<2x32xbf16>
    %c2_i32_154 = arith.constant 2 : i32
    %471 = arith.muli %417, %c2_i32_154 : i32
    %472 = arith.index_cast %471 : i32 to index
    %c0_155 = arith.constant 0 : index
    %473 = vector.load %arg7[%472, %c0_155] : memref<16x32xbf16, #tpu.memory_space<vmem>>, vector<2x32xbf16>
    tpu.vector_store %arg7[%472, %c0_155], %470 {strides = array<i32>} : memref<16x32xbf16, #tpu.memory_space<vmem>>, vector<2x32xbf16>,
    %c8_i32 = arith.constant 8 : i32
    return
  }
  func.func @transform_0(%arg0: i32) -> (i32, i32) {
    %c0_i32 = arith.constant 0 : i32
    %c0_i32_0 = arith.constant 0 : i32
    %c0_i32_1 = arith.constant 0 : i32
    return %c0_i32, %c0_i32_0 : i32, i32
  }
  func.func @transform_1(%arg0: i32) -> (i32, i32) {
    %c0_i32 = arith.constant 0 : i32
    %c0_i32_0 = arith.constant 0 : i32
    %c0_i32_1 = arith.constant 0 : i32
    return %c0_i32, %c0_i32_0 : i32, i32
  }
  func.func @transform_2(%arg0: i32) -> (i32, i32, i32) {
    %c0_i32 = arith.constant 0 : i32
    %c0_i32_0 = arith.constant 0 : i32
    %c0_i32_1 = arith.constant 0 : i32
    %c0_i32_2 = arith.constant 0 : i32
    return %c0_i32, %c0_i32_0, %c0_i32_1 : i32, i32, i32
  }
  func.func @transform_3(%arg0: i32) -> (i32, i32) {
    %c0_i32 = arith.constant 0 : i32
    %c0_i32_0 = arith.constant 0 : i32
    %c0_i32_1 = arith.constant 0 : i32
    return %c0_i32, %c0_i32_0 : i32, i32
  }
  func.func @transform_4(%arg0: i32) -> (i32, i32, i32) {
    %c0_i32 = arith.constant 0 : i32
    %c0_i32_0 = arith.constant 0 : i32
    %c0_i32_1 = arith.constant 0 : i32
    %c0_i32_2 = arith.constant 0 : i32
    return %c0_i32, %c0_i32_0, %c0_i32_1 : i32, i32, i32
  }
  func.func @transform_5(%arg0: i32) -> (i32, i32) {
    %c0_i32 = arith.constant 0 : i32
    %c0_i32_0 = arith.constant 0 : i32
    %c0_i32_1 = arith.constant 0 : i32
    return %c0_i32, %c0_i32_0 : i32, i32
  }
  func.func @transform_6(%arg0: i32) -> (i32, i32) {
    %c0_i32 = arith.constant 0 : i32
    %c0_i32_0 = arith.constant 0 : i32
    %c0_i32_1 = arith.constant 0 : i32
    return %c0_i32, %c0_i32_0 : i32, i32
  }
}

</mosaic_0001>

<bundles_post_ra>
// kernel: bilstm_rnn_forward.2
= control target key start
LH: loop header
LB: loop body
LE: loop exit
PB: predicated region body
PF: predicated region fallthrough
CT: control target
= control target key end

     0   :  { %11 = vsyncpa [#allocation4], 0  ;;  %s1241_s21 = smov [#allocation3]   ;;  %s1242_s23 = smov 128   ;;  %s1625_s0 = inlined_call_operand.vmem [shape: bf16[16,16], index: 0, kind: input, shape index: {}]   ;;  %s1626_s1 = inlined_call_operand.vmem [shape: bf16[1,16,256], index: 1, kind: input, shape index: {}]   ;;  %s1627_s2 = inlined_call_operand.vmem [shape: f32[1,256], index: 2, kind: input, shape index: {}]   ;;  %s1628_s3 = inlined_call_operand.hbm [shape: f32[2,32,128], index: 3, kind: input, shape index: {}]   ;;  %s1629_s4 = inlined_call_operand.vmem [shape: bf16[16,32], index: 4, kind: output, shape index: {0}]   ;;  %s1630_s5 = inlined_call_operand.vmem [shape: bf16[16,32], index: 5, kind: output, shape index: {1}]  }
   0x1   :  { %s22_s20 = sshll.u32 %s1628_s3, 4  ;;  %s24_s22 = sshll.u32 %s1241_s21, 4  ;;  %s23_s20 = int_to_ptr.hbm [resolvable:$true] %s22_s20  ;;  %s25_s22 = int_to_ptr.vmem [resolvable:$true] %s24_s22 }
   0x2   :  { %s1243_s24 = smov 8  }
   0x3   :  { %30 = dma.hbm_to_vmem [thread:$0]  %s23_s20, 1024, %s25_s22, [#allocation4], %s1242_s23, %s1242_s23, %s1243_s24  }
   0x4   :  { %1239 = dma.done.wait [#allocation4], 1024  }
   0x5   :  { %1240 = vsyncadd [#allocation4], 4294966272  ;;  %v1088_v0 = vld [vmem:[%s1626_s1] sm:$0xf]  ;;  %v1112_v1 = vld [vmem:[%s1626_s1 + $0x4] sm:$0xf0] }
   0x6   :  { %v1111_v2 = vld [vmem:[%s1626_s1 + $0x4] sm:$0xf]  ;;  %v1089_v3 = vor.u32 %v1112_v1, %v1088_v0  ;;  %v1090_v4 = vld [vmem:[%s1626_s1 + $0x8] sm:$0xf0]  ;;  %v1292_v5 = vld [vmem:[#allocation3 + $0x18] sm:$0xff]  ;;  %vm61_vm0 = vcmask 130048  }
   0x7   :  { %v1294_v6 = vld [vmem:[#allocation3 + $0x10] sm:$0xff]  ;;  %v1093_v7 = vor.u32 %v1111_v2, %v1090_v4  ;;  %122 = vmatpush.msra.mxu2 %v1292_v5  ;;  %v1110_v8 = vld [vmem:[%s1625_s0] sm:$0xff]  ;;  %v1300_v9 = vld [vmem:[#allocation3 + $0x8] sm:$0xff]  ;;  %v1244_v15 = vmov 0.0   ;;  %s1246_s9 = smov 64   ;;  %vm106_vm1 = vcmask 261120  }
   0x8   :  { %72 = vmatpush.bf16.msra.mxu0 %v1089_v3  ;;  %v1302_v10 = vld [vmem:[#allocation3 + $0x38] sm:$0xff]  ;;  %v1305_v11 = vld [vmem:[#allocation3 + $0x30] sm:$0xff]  ;;  %v1307_v12 = vld [vmem:[#allocation3] sm:$0xff]  ;;  %vm206_vm2 = vcmask 253952   ;;  %vm338_vm3 = vcmask 256002   ;;  %vm213_vm4 = vcmask 257027  }
   0x9   :  { %86 = vmatpush.bf16.msra.mxu1 %v1093_v7  ;;  %123 = vmatpush.msra.mxu2 %v1294_v6  ;;  %v1312_v13 = vld [vmem:[#allocation3 + $0x28] sm:$0xff]  ;;  %v1316_v14 = vld [vmem:[#allocation3 + $0x20] sm:$0xff]  ;;  %vm331_vm5 = vcmask 254977  }
   0xa   :  { %142 = vmatpush.msra.mxu3 %v1302_v10  ;;  %v40_v16 = vld [vmem:[%s1627_s2] sm:$0x3]  ;;  %s1245_s2 = smov 32  }
   0xb   :  { %1094 = vmatmul.msk.bf16.vlgmr.msra.gmra.mxu0 %vm61_vm0, %v1110_v8  ;;  %124 = vmatpush.msra.mxu2 %v1300_v9  ;;  %v42_v17 = vperm.slane %v40_v16, 0  ;;  %v43_v19 = vperm.slane %v40_v16, 1 }
   0xc   :  { %358 = vmatpush.msrb.mxu0 %v1292_v5  ;;  %1095 = vmatmul.msk.bf16.vlgmr.msra.gmra.mxu1 %vm61_vm0, %v1110_v8 }
   0xd   :  { %143 = vmatpush.msra.mxu3 %v1305_v11  ;;  %125 = vmatpush.msra.mxu2 %v1307_v12 }
   0xe   :  { %359 = vmatpush.msrb.mxu0 %v1294_v6  ;;  %126 = vmatmul.f32.vlgmr.msra.gmra.mxu2 %v1244_v15 }
   0xf   :  { %144 = vmatpush.msra.mxu3 %v1312_v13  ;;  %232 = vmatpush.msrb.mxu2 %v1292_v5 }
  0x10   :  { %360 = vmatpush.msrb.mxu0 %v1300_v9  ;;  %384 = vmatpush.msrb.mxu1 %v1302_v10 }
  0x11   :  { %145 = vmatpush.msra.mxu3 %v1316_v14  ;;  %233 = vmatpush.msrb.mxu2 %v1294_v6 }
  0x12   :  { %146 = vmatmul.f32.vlgmr.msra.gmra.mxu3 %v1244_v15  ;;  %361 = vmatpush.msrb.mxu0 %v1307_v12 }
  0x13   :  { %258 = vmatpush.msrb.mxu3 %v1302_v10  ;;  %234 = vmatpush.msrb.mxu2 %v1300_v9 }
  0x14   :  { %385 = vmatpush.msrb.mxu1 %v1305_v11  ;;  %603 = vmatpush.msra.mxu0 %v1292_v5 }
  0x15   :  { %259 = vmatpush.msrb.mxu3 %v1305_v11  ;;  %235 = vmatpush.msrb.mxu2 %v1307_v12 }
  0x16   :  { %386 = vmatpush.msrb.mxu1 %v1312_v13  ;;  %604 = vmatpush.msra.mxu0 %v1294_v6 }
  0x17   :  { %260 = vmatpush.msrb.mxu3 %v1312_v13  ;;  %482 = vmatpush.msra.mxu2 %v1292_v5 }
  0x18   :  { %387 = vmatpush.msrb.mxu1 %v1316_v14  ;;  %605 = vmatpush.msra.mxu0 %v1300_v9 }
  0x19   :  { %261 = vmatpush.msrb.mxu3 %v1316_v14  ;;  %483 = vmatpush.msra.mxu2 %v1294_v6 }
  0x1a   :  { %628 = vmatpush.msra.mxu1 %v1302_v10  ;;  %606 = vmatpush.msra.mxu0 %v1307_v12 }
  0x1b   :  { %508 = vmatpush.msra.mxu3 %v1302_v10  ;;  %484 = vmatpush.msra.mxu2 %v1300_v9 }
  0x1c   :  { %629 = vmatpush.msra.mxu1 %v1305_v11 }
  0x1d   :  { %509 = vmatpush.msra.mxu3 %v1305_v11  ;;  %485 = vmatpush.msra.mxu2 %v1307_v12 }
  0x1e   :  { %630 = vmatpush.msra.mxu1 %v1312_v13 }
  0x1f   :  { %510 = vmatpush.msra.mxu3 %v1312_v13 }
  0x20   :  { %631 = vmatpush.msra.mxu1 %v1316_v14 }
  0x21   :  { %511 = vmatpush.msra.mxu3 %v1316_v14 }
  0x88   :  { %v74_v18 = vpop.f32.mrf.mxu0 }
  0x89   :  { %v75_v20 = vadd.f32 %v74_v18, %v42_v17  ;;  %v88_v21 = vpop.f32.mrf.mxu1 }
  0x8a   :  { %v89_v22 = vadd.f32 %v88_v21, %v43_v19 }
  0x8b   :  { %93 = vst [vmem:[#allocation2 + $0x10] sm:$0xff] %v75_v20 }
  0x8c   :  { %94 = vst [vmem:[#allocation2] sm:$0xff] %v89_v22 }
  0x90   :  { %v76_v23 = vpop.f32.mrf.mxu0 }
  0x91   :  { %v77_v24 = vadd.f32 %v76_v23, %v42_v17  ;;  %v90_v25 = vpop.f32.mrf.mxu1  ;;  %v127_v26 = vpop.f32.mrf.mxu2 }
  0x92   :  { %v91_v27 = vadd.f32 %v90_v25, %v43_v19  ;;  %v150_v28 = vld [vmem:[#allocation2 + $0x10] sm:$0x3]  ;;  %v266_v1 = vld [vmem:[#allocation2 + $0x10] sm:$0xc] }
  0x93   :  { %95 = vst [vmem:[#allocation2 + $0x18] sm:$0xff] %v77_v24  ;;  %v151_v29 = vadd.f32 %v150_v28, %v127_v26 }
  0x94   :  { %96 = vst [vmem:[#allocation2 + $0x8] sm:$0xff] %v91_v27 }
  0x95   :  { %1119 = vtanh.f32 %v151_v29  ;;  %v147_v30 = vpop.f32.mrf.mxu3  ;;  %v157_v36 = vmul.f32 0.5, %v151_v29 }
  0x96   :  { %v154_v31 = vrot.slane %v147_v30, 2 }
  0x9b   :  { %v1120_v32 = vpop.eup %1119  ;;  %v152_v33 = vld [vmem:[#allocation2 + $0x8] sm:$0xc0]  ;;  %v271_v8 = vld [vmem:[#allocation2 + $0x8] sm:$0x30] }
  0x9c   :  { %v156_v34 = vadd.f32 %v154_v31, %v152_v33  ;;  %164 = vrot.lane.b32.xlu0 %v1120_v32, %s1245_s2 }
  0x9e   :  { %1121 = vtanh.f32 %v156_v34  ;;  %v179_v37 = vmul.f32 0.5, %v156_v34 }
  0x9f   :  { %1123 = vtanh.f32 %v157_v36 }
  0xa0   :  { %1125 = vtanh.f32 %v179_v37 }
  0xa4   :  { %v1122_v35 = vpop.eup %1121 }
  0xa5   :  { %186 = vrot.lane.b32.xlu0 %v1122_v35, %s1245_s2  ;;  %v1124_v38 = vpop.eup %1123 }
  0xa6   :  { %v159_v39 = vadd.f32 1.0, %v1124_v38  ;;  %v1126_v42 = vpop.eup %1125 }
  0xa7   :  { %v181_v44 = vadd.f32 1.0, %v1126_v42 }
  0xa8   :  { %v160_v40 = vmul.f32 0.5, %v159_v39 }
  0xa9   :  { %v182_v45 = vmul.f32 0.5, %v181_v44 }
  0xaa   :  { %v162_v48 = vmul.f32 0.0, %v160_v40 }
  0xab   :  { %v184_v51 = vmul.f32 0.0, %v182_v45 }
 0x10e   :  { %v165_v41 = vpop.permute.xlu0 %164 }
 0x10f   :  { %v167_v43 = vmul.f32 %v165_v41, %v160_v40 }
 0x111   :  { %169 = vrot.lane.b32.xlu1 %v167_v43, %s1245_s2 }
 0x117   :  { %v187_v46 = vpop.permute.xlu0 %186 }
 0x118   :  { %v189_v47 = vmul.f32 %v187_v46, %v182_v45 }
 0x11a   :  { %191 = vrot.lane.b32.xlu1 %v189_v47, %s1245_s2 }
 0x183   :  { %v170_v49 = vpop.permute.xlu1 %169 }
 0x184   :  { %v1358_v50 = vadd.f32 %v170_v49, %v162_v48  ;;  %v392_v49 = vld [vmem:[#allocation2 + $0x10] sm:$0x30] }
 0x186   :  { %1127 = vtanh.f32 %v1358_v50  ;;  %v282_v29 = vrot.slane %v1358_v50, 6 }
 0x18c   :  { %v1128_v52 = vpop.eup %1127  ;;  %v192_v53 = vpop.permute.xlu1 %191 }
 0x18d   :  { %v1361_v54 = vadd.f32 %v192_v53, %v184_v51  ;;  %175 = vrot.lane.b32.xlu2 %v1128_v52, %s1245_s2 }
 0x18f   :  { %1129 = vtanh.f32 %v1361_v54  ;;  %v307_v33 = vrot.slane %v1361_v54, 2  ;;  %v397_v54 = vld [vmem:[#allocation2 + $0x8] sm:$0xc] }
 0x195   :  { %v1130_v55 = vpop.eup %1129 }
 0x196   :  { %197 = vrot.lane.b32.xlu2 %v1130_v55, %s1245_s2 }
 0x1e7   :  { %v176_v56 = vpop.permute.xlu2 %175 }
 0x1e8   :  { %v1366_v57 = vmul.f32 %v176_v56, %v160_v40 }
 0x1ea   :  { %216 = vrot.lane.b32.xlu0 %v1366_v57, %s1246_s9 }
 0x1f0   :  { %v198_v58 = vpop.permute.xlu2 %197 }
 0x1f1   :  { %v1370_v59 = vmul.f32 %v198_v58, %v182_v45 }
 0x1f3   :  { %v241_v60 = vrot.slane %v1370_v59, 6 }
 0x1f5   :  { %242 = vrot.lane.b32.xlu1 %v241_v60, %s1246_s9 }
 0x25c   :  { %v217_v61 = vpop.permute.xlu0 %216 }
 0x25d   :  { %1096 = vmatmul.msk.f32.vlgmr.msrb.gmra.mxu2 %vm106_vm1, %v217_v61 }
 0x25e   :  { %722 = vmatpush.msrb.mxu2 %v1292_v5 }
 0x260   :  { %723 = vmatpush.msrb.mxu2 %v1294_v6 }
 0x262   :  { %724 = vmatpush.msrb.mxu2 %v1300_v9 }
 0x264   :  { %725 = vmatpush.msrb.mxu2 %v1307_v12 }
 0x267   :  { %v243_v62 = vpop.permute.xlu1 %242 }
 0x268   :  { %1097 = vmatmul.msk.f32.vlgmr.msrb.gmra.mxu3 %vm106_vm1, %v243_v62 }
 0x269   :  { %748 = vmatpush.msrb.mxu3 %v1302_v10 }
 0x26b   :  { %749 = vmatpush.msrb.mxu3 %v1305_v11 }
 0x26d   :  { %750 = vmatpush.msrb.mxu3 %v1312_v13 }
 0x26f   :  { %751 = vmatpush.msrb.mxu3 %v1316_v14 }
 0x2e0   :  { %v237_v63 = vpop.f32.mrf.mxu2 }
 0x2e1   :  { %v268_v0 = vrot.slane %v237_v63, 6 }
 0x2e3   :  { %v270_v2 = vadd.f32 %v268_v0, %v266_v1 }
 0x2e5   :  { %1131 = vtanh.f32 %v270_v2  ;;  %v276_v17 = vmul.f32 0.5, %v270_v2 }
 0x2eb   :  { %v1132_v3 = vpop.eup %1131  ;;  %v263_v4 = vpop.f32.mrf.mxu3 }
 0x2ec   :  { %v273_v7 = vrot.slane %v263_v4, 4  ;;  %286 = vrot.lane.b32.xlu2 %v1132_v3, %s1245_s2 }
 0x2ee   :  { %v275_v15 = vadd.f32 %v273_v7, %v271_v8 }
 0x2f0   :  { %1133 = vtanh.f32 %v275_v15  ;;  %v301_v23 = vmul.f32 0.5, %v275_v15 }
 0x2f1   :  { %1135 = vtanh.f32 %v276_v17 }
 0x2f2   :  { %1137 = vtanh.f32 %v301_v23 }
 0x2f6   :  { %v1134_v16 = vpop.eup %1133 }
 0x2f7   :  { %311 = vrot.lane.b32.xlu0 %v1134_v16, %s1245_s2  ;;  %v1136_v18 = vpop.eup %1135 }
 0x2f8   :  { %v278_v19 = vadd.f32 1.0, %v1136_v18  ;;  %v1138_v24 = vpop.eup %1137 }
 0x2f9   :  { %v303_v25 = vadd.f32 1.0, %v1138_v24 }
 0x2fa   :  { %v279_v20 = vmul.f32 0.5, %v278_v19 }
 0x2fb   :  { %v304_v26 = vmul.f32 0.5, %v303_v25 }
 0x2fc   :  { %v284_v30 = vmul.f32 %v282_v29, %v279_v20 }
 0x2fd   :  { %v309_v35 = vmul.f32 %v307_v33, %v304_v26 }
 0x346   :  { %v287_v21 = vpop.permute.xlu2 %286 }
 0x347   :  { %v289_v22 = vmul.f32 %v287_v21, %v279_v20 }
 0x349   :  { %291 = vrot.lane.b32.xlu1 %v289_v22, %s1245_s2 }
 0x369   :  { %v312_v27 = vpop.permute.xlu0 %311 }
 0x36a   :  { %v314_v28 = vmul.f32 %v312_v27, %v304_v26 }
 0x36c   :  { %316 = vrot.lane.b32.xlu2 %v314_v28, %s1245_s2 }
 0x3bb   :  { %v292_v31 = vpop.permute.xlu1 %291 }
 0x3bc   :  { %v1389_v32 = vadd.f32 %v292_v31, %v284_v30 }
 0x3be   :  { %1139 = vtanh.f32 %v1389_v32  ;;  %v408_v15 = vrot.slane %v1389_v32, 6 }
 0x3c4   :  { %v1140_v34 = vpop.eup %1139 }
 0x3c5   :  { %297 = vrot.lane.b32.xlu0 %v1140_v34, %s1245_s2 }
 0x3c6   :  { %v317_v36 = vpop.permute.xlu2 %316 }
 0x3c7   :  { %v1394_v37 = vadd.f32 %v317_v36, %v309_v35  ;;  %v521_v36 = vld [vmem:[#allocation2 + $0x8] sm:$0x3] }
 0x3c9   :  { %1141 = vtanh.f32 %v1394_v37  ;;  %v433_v19 = vrot.slane %v1394_v37, 2 }
 0x3cf   :  { %v1142_v38 = vpop.eup %1141 }
 0x3d0   :  { %322 = vrot.lane.b32.xlu1 %v1142_v38, %s1245_s2 }
 0x437   :  { %v298_v39 = vpop.permute.xlu0 %297 }
 0x438   :  { %v1398_v40 = vmul.f32 %v298_v39, %v279_v20 }
 0x43a   :  { %v341_v41 = vrot.slane %v1398_v40, 2 }
 0x43c   :  { %342 = vrot.lane.b32.xlu2 %v341_v41, %s1246_s9 }
 0x442   :  { %v323_v42 = vpop.permute.xlu1 %322 }
 0x443   :  { %v1402_v43 = vmul.f32 %v323_v42, %v304_v26 }
 0x445   :  { %v367_v44 = vrot.slane %v1402_v43, 4 }
 0x447   :  { %368 = vrot.lane.b32.xlu0 %v367_v44, %s1246_s9 }
 0x496   :  { %v343_v45 = vpop.permute.xlu2 %342 }
 0x497   :  { %1098 = vmatmul.msk.f32.vlgmr.msrb.gmra.mxu0 %vm106_vm1, %v343_v45 }
 0x498   :  { %846 = vmatpush.msrb.mxu0 %v1292_v5 }
 0x49a   :  { %847 = vmatpush.msrb.mxu0 %v1294_v6 }
 0x49c   :  { %848 = vmatpush.msrb.mxu0 %v1300_v9 }
 0x49e   :  { %849 = vmatpush.msrb.mxu0 %v1307_v12 }
 0x4b9   :  { %v369_v46 = vpop.permute.xlu0 %368 }
 0x4ba   :  { %1099 = vmatmul.msk.f32.vlgmr.msrb.gmra.mxu1 %vm106_vm1, %v369_v46 }
 0x4bb   :  { %872 = vmatpush.msrb.mxu1 %v1302_v10 }
 0x4bd   :  { %873 = vmatpush.msrb.mxu1 %v1305_v11 }
 0x4bf   :  { %874 = vmatpush.msrb.mxu1 %v1312_v13 }
 0x4c1   :  { %875 = vmatpush.msrb.mxu1 %v1316_v14 }
 0x514   :  { %v363_v47 = vpop.f32.mrf.mxu0 }
 0x515   :  { %v394_v48 = vrot.slane %v363_v47, 4 }
 0x517   :  { %v396_v50 = vadd.f32 %v394_v48, %v392_v49 }
 0x519   :  { %1143 = vtanh.f32 %v396_v50  ;;  %v402_v58 = vmul.f32 0.5, %v396_v50 }
 0x51f   :  { %v1144_v51 = vpop.eup %1143 }
 0x520   :  { %412 = vrot.lane.b32.xlu1 %v1144_v51, %s1245_s2 }
 0x537   :  { %v389_v52 = vpop.f32.mrf.mxu1 }
 0x538   :  { %v399_v53 = vrot.slane %v389_v52, 6 }
 0x53a   :  { %v401_v55 = vadd.f32 %v399_v53, %v397_v54 }
 0x53c   :  { %1145 = vtanh.f32 %v401_v55  ;;  %v427_v61 = vmul.f32 0.5, %v401_v55 }
 0x53d   :  { %1147 = vtanh.f32 %v402_v58 }
 0x53e   :  { %1149 = vtanh.f32 %v427_v61 }
 0x542   :  { %v1146_v56 = vpop.eup %1145 }
 0x543   :  { %437 = vrot.lane.b32.xlu2 %v1146_v56, %s1245_s2  ;;  %v1148_v60 = vpop.eup %1147 }
 0x544   :  { %v404_v62 = vadd.f32 1.0, %v1148_v60  ;;  %v1150_v2 = vpop.eup %1149 }
 0x545   :  { %v429_v3 = vadd.f32 1.0, %v1150_v2 }
 0x546   :  { %v405_v63 = vmul.f32 0.5, %v404_v62 }
 0x547   :  { %v430_v4 = vmul.f32 0.5, %v429_v3 }
 0x548   :  { %v410_v16 = vmul.f32 %v408_v15, %v405_v63 }
 0x549   :  { %v435_v21 = vmul.f32 %v433_v19, %v430_v4 }
 0x592   :  { %v413_v0 = vpop.permute.xlu1 %412 }
 0x593   :  { %v415_v1 = vmul.f32 %v413_v0, %v405_v63 }
 0x595   :  { %417 = vrot.lane.b32.xlu0 %v415_v1, %s1245_s2 }
 0x59d   :  { %v438_v7 = vpop.permute.xlu2 %437 }
 0x59e   :  { %v440_v8 = vmul.f32 %v438_v7, %v430_v4 }
 0x5a0   :  { %442 = vrot.lane.b32.xlu1 %v440_v8, %s1245_s2 }
 0x607   :  { %v418_v17 = vpop.permute.xlu0 %417 }
 0x608   :  { %v420_v18 = vadd.f32 %v418_v17, %v410_v16  ;;  %v638_v17 = vld [vmem:[#allocation2] sm:$0xc0] }
 0x60a   :  { %1151 = vtanh.f32 %v420_v18  ;;  %v529_v48 = vrot.slane %v420_v18, 6 }
 0x610   :  { %v1152_v20 = vpop.eup %1151 }
 0x611   :  { %423 = vrot.lane.b32.xlu2 %v1152_v20, %s1245_s2 }
 0x612   :  { %v443_v22 = vpop.permute.xlu1 %442 }
 0x613   :  { %v445_v23 = vadd.f32 %v443_v22, %v435_v21 }
 0x615   :  { %1153 = vtanh.f32 %v445_v23  ;;  %v554_v53 = vrot.slane %v445_v23, 2 }
 0x61b   :  { %v1154_v24 = vpop.eup %1153 }
 0x61c   :  { %448 = vrot.lane.b32.xlu0 %v1154_v24, %s1245_s2 }
 0x66b   :  { %v424_v25 = vpop.permute.xlu2 %423 }
 0x66c   :  { %v1424_v26 = vmul.f32 %v424_v25, %v405_v63 }
 0x66e   :  { %v465_v27 = vrot.slane %v1424_v26, 4 }
 0x670   :  { %466 = vrot.lane.b32.xlu1 %v465_v27, %s1246_s9 }
 0x68e   :  { %v449_v28 = vpop.permute.xlu0 %448 }
 0x68f   :  { %v1428_v29 = vmul.f32 %v449_v28, %v430_v4  ;;  %v636_v4 = vld [vmem:[#allocation2 + $0x18] sm:$0x3] }
 0x691   :  { %v491_v30 = vrot.slane %v1428_v29, 2 }
 0x693   :  { %492 = vrot.lane.b32.xlu2 %v491_v30, %s1246_s9 }
 0x6e2   :  { %v467_v31 = vpop.permute.xlu1 %466 }
 0x6e3   :  { %1100 = vmatmul.msk.f32.vlgmr.msra.gmra.mxu2 %vm106_vm1, %v467_v31 }
 0x6e4   :  { %970 = vmatpush.msra.mxu2 %v1292_v5  ;;  %v516_v5 = vld [vmem:[#allocation2 + $0x10] sm:$0xc0] }
 0x6e6   :  { %971 = vmatpush.msra.mxu2 %v1294_v6 }
 0x6e8   :  { %972 = vmatpush.msra.mxu2 %v1300_v9 }
 0x6ea   :  { %973 = vmatpush.msra.mxu2 %v1307_v12 }
 0x6ed   :  { %v493_v32 = vpop.permute.xlu2 %492 }
 0x6ee   :  { %1101 = vmatmul.msk.f32.vlgmr.msra.gmra.mxu3 %vm106_vm1, %v493_v32 }
 0x6ef   :  { %996 = vmatpush.msra.mxu3 %v1302_v10 }
 0x6f1   :  { %997 = vmatpush.msra.mxu3 %v1305_v11 }
 0x6f3   :  { %998 = vmatpush.msra.mxu3 %v1312_v13 }
 0x6f5   :  { %999 = vmatpush.msra.mxu3 %v1316_v14 }
 0x766   :  { %v487_v33 = vpop.f32.mrf.mxu2 }
 0x767   :  { %v518_v34 = vrot.slane %v487_v33, 2 }
 0x769   :  { %v520_v35 = vadd.f32 %v518_v34, %v516_v5 }
 0x76b   :  { %1155 = vtanh.f32 %v520_v35  ;;  %v523_v10 = vmul.f32 0.5, %v520_v35 }
 0x771   :  { %v1156_v6 = vpop.eup %1155  ;;  %v513_v9 = vpop.f32.mrf.mxu3 }
 0x772   :  { %v522_v12 = vadd.f32 %v521_v36, %v513_v9  ;;  %533 = vrot.lane.b32.xlu0 %v1156_v6, %s1245_s2 }
 0x774   :  { %1157 = vtanh.f32 %v522_v12  ;;  %v548_v11 = vmul.f32 0.5, %v522_v12 }
 0x775   :  { %1159 = vtanh.f32 %v523_v10 }
 0x776   :  { %1161 = vtanh.f32 %v548_v11 }
 0x77a   :  { %v1158_v37 = vpop.eup %1157 }
 0x77b   :  { %558 = vrot.lane.b32.xlu1 %v1158_v37, %s1245_s2  ;;  %v1160_v13 = vpop.eup %1159 }
 0x77c   :  { %v525_v14 = vadd.f32 1.0, %v1160_v13  ;;  %v1162_v41 = vpop.eup %1161 }
 0x77d   :  { %v550_v44 = vadd.f32 1.0, %v1162_v41 }
 0x77e   :  { %v526_v38 = vmul.f32 0.5, %v525_v14 }
 0x77f   :  { %v551_v45 = vmul.f32 0.5, %v550_v44 }
 0x780   :  { %v531_v49 = vmul.f32 %v529_v48, %v526_v38 }
 0x781   :  { %v556_v54 = vmul.f32 %v554_v53, %v551_v45 }
 0x7e4   :  { %v534_v39 = vpop.permute.xlu0 %533 }
 0x7e5   :  { %v536_v42 = vmul.f32 %v534_v39, %v526_v38 }
 0x7e7   :  { %538 = vrot.lane.b32.xlu2 %v536_v42, %s1245_s2 }
 0x7ed   :  { %v559_v46 = vpop.permute.xlu1 %558 }
 0x7ee   :  { %v561_v47 = vmul.f32 %v559_v46, %v551_v45 }
 0x7f0   :  { %563 = vrot.lane.b32.xlu0 %v561_v47, %s1245_s2  ;;  %v756_v47 = vld [vmem:[#allocation2 + $0x18] sm:$0xc] }
 0x841   :  { %v539_v50 = vpop.permute.xlu2 %538 }
 0x842   :  { %v541_v51 = vadd.f32 %v539_v50, %v531_v49 }
 0x844   :  { %1163 = vtanh.f32 %v541_v51  ;;  %v649_v34 = vrot.slane %v541_v51, 6 }
 0x84a   :  { %v1164_v52 = vpop.eup %1163 }
 0x84b   :  { %544 = vrot.lane.b32.xlu1 %v1164_v52, %s1245_s2  ;;  %v761_v52 = vld [vmem:[#allocation2] sm:$0x30] }
 0x862   :  { %v564_v55 = vpop.permute.xlu0 %563 }
 0x863   :  { %v566_v56 = vadd.f32 %v564_v55, %v556_v54 }
 0x865   :  { %1165 = vtanh.f32 %v566_v56  ;;  %v674_v9 = vrot.slane %v566_v56, 2 }
 0x86b   :  { %v1166_v58 = vpop.eup %1165 }
 0x86c   :  { %569 = vrot.lane.b32.xlu2 %v1166_v58, %s1245_s2 }
 0x8bd   :  { %v545_v60 = vpop.permute.xlu1 %544 }
 0x8be   :  { %v1448_v61 = vmul.f32 %v545_v60, %v526_v38 }
 0x8c0   :  { %v586_v62 = vrot.slane %v1448_v61, 6 }
 0x8c2   :  { %587 = vrot.lane.b32.xlu1 %v586_v62, %s1246_s9 }
 0x8c6   :  { %v570_v63 = vpop.permute.xlu2 %569 }
 0x8c7   :  { %v1452_v0 = vmul.f32 %v570_v63, %v551_v45 }
 0x8c9   :  { %612 = vrot.lane.b32.xlu0 %v1452_v0, %s1246_s9 }
 0x934   :  { %v588_v1 = vpop.permute.xlu1 %587 }
 0x935   :  { %1102 = vmatmul.msk.f32.vlgmr.msra.gmra.mxu0 %vm106_vm1, %v588_v1 }
 0x93b   :  { %v613_v2 = vpop.permute.xlu0 %612 }
 0x93c   :  { %1103 = vmatmul.msk.f32.vlgmr.msra.gmra.mxu1 %vm106_vm1, %v613_v2 }
 0x9b2   :  { %v608_v3 = vpop.f32.mrf.mxu0 }
 0x9b3   :  { %v637_v7 = vadd.f32 %v636_v4, %v608_v3 }
 0x9b5   :  { %1167 = vtanh.f32 %v637_v7  ;;  %v643_v20 = vmul.f32 0.5, %v637_v7 }
 0x9b9   :  { %v633_v8 = vpop.f32.mrf.mxu1 }
 0x9ba   :  { %v640_v15 = vrot.slane %v633_v8, 2 }
 0x9bb   :  { %v1168_v16 = vpop.eup %1167 }
 0x9bc   :  { %v642_v18 = vadd.f32 %v640_v15, %v638_v17  ;;  %653 = vrot.lane.b32.xlu2 %v1168_v16, %s1245_s2 }
 0x9be   :  { %1169 = vtanh.f32 %v642_v18  ;;  %v668_v27 = vmul.f32 0.5, %v642_v18 }
 0x9bf   :  { %1171 = vtanh.f32 %v643_v20 }
 0x9c0   :  { %1173 = vtanh.f32 %v668_v27 }
 0x9c4   :  { %v1170_v19 = vpop.eup %1169 }
 0x9c5   :  { %678 = vrot.lane.b32.xlu0 %v1170_v19, %s1245_s2  ;;  %v1172_v21 = vpop.eup %1171 }
 0x9c6   :  { %v645_v22 = vadd.f32 1.0, %v1172_v21  ;;  %v1174_v28 = vpop.eup %1173 }
 0x9c7   :  { %v670_v30 = vadd.f32 1.0, %v1174_v28 }
 0x9c8   :  { %v646_v23 = vmul.f32 0.5, %v645_v22 }
 0x9c9   :  { %v671_v31 = vmul.f32 0.5, %v670_v30 }
 0x9ca   :  { %v651_v5 = vmul.f32 %v649_v34, %v646_v23 }
 0x9cb   :  { %v676_v36 = vmul.f32 %v674_v9, %v671_v31 }
 0xa16   :  { %v654_v24 = vpop.permute.xlu2 %653 }
 0xa17   :  { %v656_v25 = vmul.f32 %v654_v24, %v646_v23 }
 0xa19   :  { %658 = vrot.lane.b32.xlu1 %v656_v25, %s1245_s2 }
 0xa37   :  { %v679_v32 = vpop.permute.xlu0 %678 }
 0xa38   :  { %v681_v33 = vmul.f32 %v679_v32, %v671_v31 }
 0xa3a   :  { %683 = vrot.lane.b32.xlu2 %v681_v33, %s1245_s2 }
 0xa8b   :  { %v659_v35 = vpop.permute.xlu1 %658 }
 0xa8c   :  { %v661_v6 = vadd.f32 %v659_v35, %v651_v5 }
 0xa8e   :  { %1175 = vtanh.f32 %v661_v6  ;;  %v772_v15 = vrot.slane %v661_v6, 6  ;;  %v880_v6 = vld [vmem:[#allocation2 + $0x18] sm:$0x30] }
 0xa94   :  { %v1176_v12 = vpop.eup %1175  ;;  %v684_v37 = vpop.permute.xlu2 %683 }
 0xa95   :  { %v686_v10 = vadd.f32 %v684_v37, %v676_v36  ;;  %664 = vrot.lane.b32.xlu0 %v1176_v12, %s1245_s2 }
 0xa97   :  { %1177 = vtanh.f32 %v686_v10  ;;  %v797_v19 = vrot.slane %v686_v10, 2  ;;  %v885_v10 = vld [vmem:[#allocation2] sm:$0xc] }
 0xa9d   :  { %v1178_v11 = vpop.eup %1177 }
 0xa9e   :  { %689 = vrot.lane.b32.xlu1 %v1178_v11, %s1245_s2 }
 0xb07   :  { %v665_v13 = vpop.permute.xlu0 %664 }
 0xb08   :  { %v1464_v14 = vmul.f32 %v665_v13, %v646_v23 }
 0xb0a   :  { %706 = vrot.lane.b32.xlu2 %v1464_v14, %s1246_s9 }
 0xb10   :  { %v690_v38 = vpop.permute.xlu1 %689 }
 0xb11   :  { %v1468_v39 = vmul.f32 %v690_v38, %v671_v31 }
 0xb13   :  { %v731_v41 = vrot.slane %v1468_v39, 6 }
 0xb15   :  { %732 = vrot.lane.b32.xlu0 %v731_v41, %s1246_s9 }
 0xb64   :  { %v707_v42 = vpop.permute.xlu2 %706 }
 0xb65   :  { %1104 = vmatmul.msk.f32.vlgmr.msrb.gmra.mxu2 %vm106_vm1, %v707_v42 }
 0xb87   :  { %v733_v44 = vpop.permute.xlu0 %732 }
 0xb88   :  { %1105 = vmatmul.msk.f32.vlgmr.msrb.gmra.mxu3 %vm106_vm1, %v733_v44 }
 0xbe8   :  { %v727_v45 = vpop.f32.mrf.mxu2 }
 0xbe9   :  { %v758_v46 = vrot.slane %v727_v45, 6 }
 0xbeb   :  { %v760_v48 = vadd.f32 %v758_v46, %v756_v47 }
 0xbed   :  { %1179 = vtanh.f32 %v760_v48  ;;  %v766_v55 = vmul.f32 0.5, %v760_v48 }
 0xbf3   :  { %v1180_v49 = vpop.eup %1179 }
 0xbf4   :  { %776 = vrot.lane.b32.xlu1 %v1180_v49, %s1245_s2 }
 0xc0b   :  { %v753_v50 = vpop.f32.mrf.mxu3 }
 0xc0c   :  { %v763_v51 = vrot.slane %v753_v50, 4 }
 0xc0e   :  { %v765_v53 = vadd.f32 %v763_v51, %v761_v52 }
 0xc10   :  { %1181 = vtanh.f32 %v765_v53  ;;  %v791_v58 = vmul.f32 0.5, %v765_v53 }
 0xc11   :  { %1183 = vtanh.f32 %v766_v55 }
 0xc12   :  { %1185 = vtanh.f32 %v791_v58 }
 0xc16   :  { %v1182_v54 = vpop.eup %1181 }
 0xc17   :  { %801 = vrot.lane.b32.xlu2 %v1182_v54, %s1245_s2  ;;  %v1184_v56 = vpop.eup %1183 }
 0xc18   :  { %v768_v60 = vadd.f32 1.0, %v1184_v56  ;;  %v1186_v2 = vpop.eup %1185 }
 0xc19   :  { %v793_v3 = vadd.f32 1.0, %v1186_v2 }
 0xc1a   :  { %v769_v62 = vmul.f32 0.5, %v768_v60 }
 0xc1b   :  { %v794_v4 = vmul.f32 0.5, %v793_v3 }
 0xc1c   :  { %v774_v16 = vmul.f32 %v772_v15, %v769_v62 }
 0xc1d   :  { %v799_v21 = vmul.f32 %v797_v19, %v794_v4 }
 0xc66   :  { %v777_v63 = vpop.permute.xlu1 %776 }
 0xc67   :  { %v779_v1 = vmul.f32 %v777_v63, %v769_v62 }
 0xc69   :  { %781 = vrot.lane.b32.xlu0 %v779_v1, %s1245_s2 }
 0xc71   :  { %v802_v7 = vpop.permute.xlu2 %801 }
 0xc72   :  { %v804_v8 = vmul.f32 %v802_v7, %v794_v4 }
 0xc74   :  { %806 = vrot.lane.b32.xlu1 %v804_v8, %s1245_s2 }
 0xcdb   :  { %v782_v17 = vpop.permute.xlu0 %781 }
 0xcdc   :  { %v784_v18 = vadd.f32 %v782_v17, %v774_v16 }
 0xcde   :  { %1187 = vtanh.f32 %v784_v18  ;;  %v896_v53 = vrot.slane %v784_v18, 6 }
 0xce4   :  { %v1188_v20 = vpop.eup %1187 }
 0xce5   :  { %787 = vrot.lane.b32.xlu2 %v1188_v20, %s1245_s2 }
 0xce6   :  { %v807_v22 = vpop.permute.xlu1 %806 }
 0xce7   :  { %v809_v23 = vadd.f32 %v807_v22, %v799_v21  ;;  %v1004_v21 = vld [vmem:[#allocation2 + $0x18] sm:$0xc0] }
 0xce9   :  { %1189 = vtanh.f32 %v809_v23  ;;  %v921_v60 = vrot.slane %v809_v23, 2 }
 0xcef   :  { %v1190_v24 = vpop.eup %1189 }
 0xcf0   :  { %812 = vrot.lane.b32.xlu0 %v1190_v24, %s1245_s2 }
 0xd3f   :  { %v788_v25 = vpop.permute.xlu2 %787 }
 0xd40   :  { %v1480_v27 = vmul.f32 %v788_v25, %v769_v62  ;;  %v1009_v25 = vld [vmem:[#allocation2] sm:$0x3] }
 0xd42   :  { %v829_v28 = vrot.slane %v1480_v27, 2 }
 0xd44   :  { %830 = vrot.lane.b32.xlu1 %v829_v28, %s1246_s9 }
 0xd62   :  { %v813_v30 = vpop.permute.xlu0 %812 }
 0xd63   :  { %v1484_v31 = vmul.f32 %v813_v30, %v794_v4 }
 0xd65   :  { %v855_v32 = vrot.slane %v1484_v31, 4 }
 0xd67   :  { %856 = vrot.lane.b32.xlu2 %v855_v32, %s1246_s9 }
 0xdb6   :  { %v831_v33 = vpop.permute.xlu1 %830 }
 0xdb7   :  { %1106 = vmatmul.msk.f32.vlgmr.msrb.gmra.mxu0 %vm106_vm1, %v831_v33 }
 0xdc1   :  { %v857_v34 = vpop.permute.xlu2 %856 }
 0xdc2   :  { %1107 = vmatmul.msk.f32.vlgmr.msrb.gmra.mxu1 %vm106_vm1, %v857_v34 }
 0xe34   :  { %v851_v5 = vpop.f32.mrf.mxu0 }
 0xe35   :  { %v882_v35 = vrot.slane %v851_v5, 4 }
 0xe37   :  { %v884_v9 = vadd.f32 %v882_v35, %v880_v6 }
 0xe39   :  { %1191 = vtanh.f32 %v884_v9  ;;  %v890_v38 = vmul.f32 0.5, %v884_v9 }
 0xe3f   :  { %v1192_v36 = vpop.eup %1191  ;;  %v877_v12 = vpop.f32.mrf.mxu1 }
 0xe40   :  { %v887_v37 = vrot.slane %v877_v12, 6  ;;  %900 = vrot.lane.b32.xlu0 %v1192_v36, %s1245_s2 }
 0xe42   :  { %v889_v11 = vadd.f32 %v887_v37, %v885_v10 }
 0xe44   :  { %1193 = vtanh.f32 %v889_v11  ;;  %v915_v42 = vmul.f32 0.5, %v889_v11 }
 0xe45   :  { %1195 = vtanh.f32 %v890_v38  ;;  %v333_v38 = vpack.c.bf16 %v1402_v43, %v1402_v43 }
 0xe46   :  { %1197 = vtanh.f32 %v915_v42  ;;  %v699_v42 = vpack.c.bf16 %v1468_v39, %v1468_v39  ;;  %v208_v39 = vpack.c.bf16 %v1370_v59, %v1370_v59  ;;  %v579_v59 = vpack.c.bf16 %v1452_v0, %v1452_v0 }
 0xe4a   :  { %v1194_v13 = vpop.eup %1193 }
 0xe4b   :  { %925 = vrot.lane.b32.xlu1 %v1194_v13, %s1245_s2  ;;  %v1196_v41 = vpop.eup %1195  ;;  %v201_v13 = vpack.c.bf16 %v1366_v57, %v1366_v57 }
 0xe4c   :  { %v892_v44 = vadd.f32 1.0, %v1196_v41  ;;  %v1198_v48 = vpop.eup %1197  ;;  %v573_v41 = vpack.c.bf16 %v1448_v61, %v1448_v61 }
 0xe4d   :  { %v917_v49 = vadd.f32 1.0, %v1198_v48 }
 0xe4e   :  { %v893_v45 = vmul.f32 0.5, %v892_v44 }
 0xe4f   :  { %v918_v50 = vmul.f32 0.5, %v917_v49 }
 0xe50   :  { %v898_v54 = vmul.f32 %v896_v53, %v893_v45  ;;  %v452_v53 = vpack.c.bf16 %v1424_v26, %v1424_v26  ;;  %v458_v26 = vpack.c.bf16 %v1428_v29, %v1428_v29 }
 0xe51   :  { %v923_v62 = vmul.f32 %v921_v60, %v918_v50  ;;  %v822_v60 = vpack.c.bf16 %v1484_v31, %v1484_v31 }
 0xeb2   :  { %v901_v46 = vpop.permute.xlu0 %900 }
 0xeb3   :  { %v903_v47 = vmul.f32 %v901_v46, %v893_v45 }
 0xeb5   :  { %905 = vrot.lane.b32.xlu2 %v903_v47, %s1245_s2 }
 0xebd   :  { %v926_v51 = vpop.permute.xlu1 %925 }
 0xebe   :  { %v928_v52 = vmul.f32 %v926_v51, %v918_v50 }
 0xec0   :  { %930 = vrot.lane.b32.xlu0 %v928_v52, %s1245_s2 }
 0xf0f   :  { %v906_v55 = vpop.permute.xlu2 %905 }
 0xf10   :  { %v1494_v56 = vadd.f32 %v906_v55, %v898_v54  ;;  %v326_v54 = vpack.c.bf16 %v1398_v40, %v1398_v40  ;;  %v816_v40 = vpack.c.bf16 %v1480_v27, %v1480_v27 }
 0xf12   :  { %1199 = vtanh.f32 %v1494_v56  ;;  %v1017_v57 = vrot.slane %v1494_v56, 6 }
 0xf18   :  { %v1200_v58 = vpop.eup %1199 }
 0xf19   :  { %911 = vrot.lane.b32.xlu1 %v1200_v58, %s1245_s2  ;;  %v693_v58 = vpack.c.bf16 %v1464_v14, %v1464_v14 }
 0xf32   :  { %v931_v63 = vpop.permute.xlu0 %930 }
 0xf33   :  { %v933_v1 = vadd.f32 %v931_v63, %v923_v62 }
 0xf35   :  { %1201 = vtanh.f32 %v933_v1  ;;  %v1042_v47 = vrot.slane %v933_v1, 2 }
 0xf3b   :  { %v1202_v2 = vpop.eup %1201 }
 0xf3c   :  { %936 = vrot.lane.b32.xlu2 %v1202_v2, %s1245_s2 }
 0xf8b   :  { %v912_v3 = vpop.permute.xlu1 %911 }
 0xf8c   :  { %v914_v4 = vmul.f32 %v912_v3, %v893_v45 }
 0xf8e   :  { %v953_v7 = vrot.slane %v914_v4, 4  ;;  %v940_v44 = vpack.c.bf16 %v914_v4, %v914_v4 }
 0xf90   :  { %954 = vrot.lane.b32.xlu0 %v953_v7, %s1246_s9 }
 0xf96   :  { %v937_v8 = vpop.permute.xlu2 %936 }
 0xf97   :  { %v1500_v15 = vmul.f32 %v937_v8, %v918_v50 }
 0xf99   :  { %v979_v16 = vrot.slane %v1500_v15, 2  ;;  %v946_v29 = vpack.c.bf16 %v1500_v15, %v1500_v15 }
 0xf9b   :  { %980 = vrot.lane.b32.xlu1 %v979_v16, %s1246_s9 }
0x1002   :  { %v955_v17 = vpop.permute.xlu0 %954 }
0x1003   :  { %1108 = vmatmul.msk.f32.vlgmr.msra.gmra.mxu2 %vm106_vm1, %v955_v17 }
0x100d   :  { %v981_v18 = vpop.permute.xlu1 %980 }
0x100e   :  { %1109 = vmatmul.msk.f32.vlgmr.msra.gmra.mxu3 %vm106_vm1, %v981_v18 }
0x1086   :  { %v975_v19 = vpop.f32.mrf.mxu2 }
0x1087   :  { %v1006_v20 = vrot.slane %v975_v19, 2 }
0x1089   :  { %v1008_v22 = vadd.f32 %v1006_v20, %v1004_v21 }
0x108b   :  { %1203 = vtanh.f32 %v1008_v22  ;;  %v1011_v32 = vmul.f32 0.5, %v1008_v22 }
0x1091   :  { %v1204_v23 = vpop.eup %1203  ;;  %v1001_v24 = vpop.f32.mrf.mxu3 }
0x1092   :  { %v1010_v28 = vadd.f32 %v1009_v25, %v1001_v24  ;;  %1021 = vrot.lane.b32.xlu2 %v1204_v23, %s1245_s2 }
0x1094   :  { %1205 = vtanh.f32 %v1010_v28  ;;  %v1036_v9 = vmul.f32 0.5, %v1010_v28 }
0x1095   :  { %1207 = vtanh.f32 %v1011_v32 }
0x1096   :  { %1209 = vtanh.f32 %v1036_v9 }
0x109a   :  { %v1206_v30 = vpop.eup %1205 }
0x109b   :  { %1046 = vrot.lane.b32.xlu0 %v1206_v30, %s1245_s2  ;;  %v1208_v33 = vpop.eup %1207 }
0x109c   :  { %v1013_v34 = vadd.f32 1.0, %v1208_v33  ;;  %v1210_v36 = vpop.eup %1209 }
0x109d   :  { %v1038_v12 = vadd.f32 1.0, %v1210_v36 }
0x109e   :  { %v1508_v5 = vmul.f32 0.5, %v1013_v34 }
0x109f   :  { %v1512_v37 = vmul.f32 0.5, %v1038_v12 }
0x10a0   :  { %v1019_v45 = vmul.f32 %v1017_v57, %v1508_v5 }
0x10a1   :  { %v1044_v61 = vmul.f32 %v1042_v47, %v1512_v37 }
0x10ec   :  { %v1022_v35 = vpop.permute.xlu2 %1021 }
0x10ed   :  { %v1024_v6 = vmul.f32 %v1022_v35, %v1508_v5 }
0x10ef   :  { %1026 = vrot.lane.b32.xlu1 %v1024_v6, %s1245_s2 }
0x110d   :  { %v1047_v10 = vpop.permute.xlu0 %1046 }
0x110e   :  { %v1049_v11 = vmul.f32 %v1047_v10, %v1512_v37 }
0x1110   :  { %1051 = vrot.lane.b32.xlu2 %v1049_v11, %s1245_s2 }
0x1118   :  { %203 = vrot.lane.b32.xlu2 %v201_v13, %s1246_s9 }
0x1120   :  { %335 = vrot.lane.b32.xlu2 %v333_v38, %s1246_s9 }
0x1128   :  { %575 = vrot.lane.b32.xlu2 %v573_v41, %s1246_s9 }
0x1130   :  { %701 = vrot.lane.b32.xlu2 %v699_v42, %s1246_s9 }
0x1138   :  { %942 = vrot.lane.b32.xlu2 %v940_v44, %s1246_s9 }
0x1161   :  { %v1027_v43 = vpop.permute.xlu1 %1026 }
0x1162   :  { %v1029_v46 = vadd.f32 %v1027_v43, %v1019_v45 }
0x1164   :  { %1211 = vtanh.f32 %v1029_v46 }
0x116a   :  { %v1212_v48 = vpop.eup %1211  ;;  %v1052_v49 = vpop.permute.xlu2 %1051 }
0x116b   :  { %v1054_v50 = vadd.f32 %v1052_v49, %v1044_v61  ;;  %1032 = vrot.lane.b32.xlu0 %v1212_v48, %s1245_s2 }
0x116d   :  { %1213 = vtanh.f32 %v1054_v50 }
0x1172   :  { %v204_v51 = vpop.permute.xlu2 %203 }
0x1173   :  { %v1214_v52 = vpop.eup %1213  ;;  %207 = vst.msk [vmem:[%s1629_s4] sm:$0x1] %vm206_vm2, %v204_v51  ;;  %210 = vrot.lane.b32.xlu0 %v208_v39, %s1246_s9 }
0x1174   :  { %1057 = vrot.lane.b32.xlu1 %v1214_v52, %s1245_s2 }
0x117a   :  { %v336_v55 = vpop.permute.xlu2 %335 }
0x117b   :  { %339 = vst.msk [vmem:[%s1630_s5 + $0x4] sm:$0x4] %vm338_vm3, %v336_v55  ;;  %454 = vrot.lane.b32.xlu0 %v452_v53, %s1246_s9 }
0x117c   :  { %328 = vrot.lane.b32.xlu1 %v326_v54, %s1246_s9 }
0x1182   :  { %v576_v56 = vpop.permute.xlu2 %575 }
0x1183   :  { %578 = vst.msk [vmem:[%s1629_s4] sm:$0x8] %vm213_vm4, %v576_v56  ;;  %581 = vrot.lane.b32.xlu0 %v579_v59, %s1246_s9 }
0x1184   :  { %460 = vrot.lane.b32.xlu1 %v458_v26, %s1246_s9 }
0x118a   :  { %v702_v0 = vpop.permute.xlu2 %701 }
0x118b   :  { %704 = vst.msk [vmem:[%s1630_s5] sm:$0x8] %vm213_vm4, %v702_v0  ;;  %818 = vrot.lane.b32.xlu0 %v816_v40, %s1246_s9 }
0x118c   :  { %695 = vrot.lane.b32.xlu1 %v693_v58, %s1246_s9 }
0x1192   :  { %v943_v27 = vpop.permute.xlu2 %942 }
0x1193   :  { %945 = vst.msk [vmem:[%s1629_s4 + $0x4] sm:$0x4] %vm338_vm3, %v943_v27  ;;  %948 = vrot.lane.b32.xlu0 %v946_v29, %s1246_s9 }
0x1194   :  { %824 = vrot.lane.b32.xlu1 %v822_v60, %s1246_s9 }
0x11dd   :  { %v1033_v14 = vpop.permute.xlu0 %1032 }
0x11de   :  { %v1035_v62 = vmul.f32 %v1033_v14, %v1508_v5 }
0x11e0   :  { %v1061_v63 = vpack.c.bf16 %v1035_v62, %v1035_v62 }
0x11e2   :  { %1063 = vrot.lane.b32.xlu1 %v1061_v63, %s1246_s9 }
0x11e5   :  { %v211_v1 = vpop.permute.xlu0 %210 }
0x11e6   :  { %214 = vst.msk [vmem:[%s1630_s5 + $0x4] sm:$0x8] %vm213_vm4, %v211_v1  ;;  %v1058_v31 = vpop.permute.xlu1 %1057 }
0x11e7   :  { %v1060_v2 = vmul.f32 %v1058_v31, %v1512_v37 }
0x11e9   :  { %v1067_v3 = vpack.c.bf16 %v1060_v2, %v1060_v2 }
0x11eb   :  { %1069 = vrot.lane.b32.xlu2 %v1067_v3, %s1246_s9 }
0x11ed   :  { %v455_v4 = vpop.permute.xlu0 %454 }
0x11ee   :  { %457 = vst.msk [vmem:[%s1629_s4] sm:$0x4] %vm338_vm3, %v455_v4  ;;  %v329_v7 = vpop.permute.xlu1 %328 }
0x11ef   :  { %332 = vst.msk [vmem:[%s1629_s4] sm:$0x2] %vm331_vm5, %v329_v7 }
0x11f5   :  { %v582_v8 = vpop.permute.xlu0 %581 }
0x11f6   :  { %584 = vst.msk [vmem:[%s1630_s5 + $0x4] sm:$0x1] %vm206_vm2, %v582_v8  ;;  %v461_v15 = vpop.permute.xlu1 %460 }
0x11f7   :  { %463 = vst.msk [vmem:[%s1630_s5 + $0x4] sm:$0x2] %vm331_vm5, %v461_v15 }
0x11fd   :  { %v819_v16 = vpop.permute.xlu0 %818 }
0x11fe   :  { %821 = vst.msk [vmem:[%s1629_s4 + $0x4] sm:$0x2] %vm331_vm5, %v819_v16  ;;  %v696_v17 = vpop.permute.xlu1 %695 }
0x11ff   :  { %698 = vst.msk [vmem:[%s1629_s4 + $0x4] sm:$0x1] %vm206_vm2, %v696_v17 }
0x1205   :  { %v949_v18 = vpop.permute.xlu0 %948 }
0x1206   :  { %951 = vst.msk [vmem:[%s1630_s5] sm:$0x2] %vm331_vm5, %v949_v18  ;;  %v825_v19 = vpop.permute.xlu1 %824 }
0x1207   :  { %827 = vst.msk [vmem:[%s1630_s5] sm:$0x4] %vm338_vm3, %v825_v19 }
0x1245   :  { %v1070_v20 = vpop.permute.xlu2 %1069 }
0x1246   :  { %1072 = vst.msk [vmem:[%s1630_s5] sm:$0x1] %vm206_vm2, %v1070_v20 }
0x1254   :  { %v1064_v21 = vpop.permute.xlu1 %1063 }
0x1255   :  { %1066 = vst.msk [vmem:[%s1629_s4 + $0x4] sm:$0x8] %vm213_vm4, %v1064_v21 }
0x1256   :  { %1081 = vsyncpa [#allocation4], 1 }

// kernel: bilstm_rnn_forward.3
= control target key start
LH: loop header
LB: loop body
LE: loop exit
PB: predicated region body
PF: predicated region fallthrough
CT: control target
= control target key end

     0   :  { %12 = vsyncpa [#allocation4], 0  ;;  %s1363_s24 = smov [#allocation3]   ;;  %s1364_s26 = smov 128   ;;  %s1767_s0 = inlined_call_operand.vmem [shape: bf16[16,32], index: 0, kind: input, shape index: {}]   ;;  %s1768_s1 = inlined_call_operand.vmem [shape: bf16[16,32], index: 1, kind: input, shape index: {}]   ;;  %s1769_s2 = inlined_call_operand.hbm [shape: bf16[2,32,256], index: 2, kind: input, shape index: {}]   ;;  %s1770_s3 = inlined_call_operand.vmem [shape: f32[1,256], index: 3, kind: input, shape index: {}]   ;;  %s1771_s4 = inlined_call_operand.vmem [shape: f32[2,32,128], index: 4, kind: input, shape index: {}]   ;;  %s1772_s5 = inlined_call_operand.vmem [shape: bf16[16,32], index: 5, kind: output, shape index: {0}]   ;;  %s1773_s6 = inlined_call_operand.vmem [shape: bf16[16,32], index: 6, kind: output, shape index: {1}]  }
   0x1   :  { %s21_s23 = sshll.u32 %s1769_s2, 4  ;;  %s23_s25 = sshll.u32 %s1363_s24, 4  ;;  %s22_s23 = int_to_ptr.hbm [resolvable:$true] %s21_s23  ;;  %s24_s25 = int_to_ptr.vmem [resolvable:$true] %s23_s25 }
   0x2   :  { %s1365_s27 = smov 8  }
   0x3   :  { %29 = dma.hbm_to_vmem [thread:$0]  %s22_s23, 1024, %s24_s25, [#allocation4], %s1364_s26, %s1364_s26, %s1365_s27  }
   0x4   :  { %1361 = dma.done.wait [#allocation4], 1024  }
   0x5   :  { %1362 = vsyncadd [#allocation4], 4294966272  ;;  %v1177_v0 = vld [vmem:[#allocation3 + $0x30] sm:$0xf]  ;;  %v1234_v1 = vld [vmem:[#allocation3 + $0x34] sm:$0xf0] }
   0x6   :  { %v1199_v2 = vld [vmem:[#allocation3 + $0x10] sm:$0xf]  ;;  %v1178_v3 = vor.u32 %v1234_v1, %v1177_v0  ;;  %v1229_v4 = vld [vmem:[#allocation3 + $0x14] sm:$0xf0]  ;;  %v1228_v5 = vld [vmem:[#allocation3 + $0x14] sm:$0xf] }
   0x7   :  { %v1201_v6 = vld [vmem:[#allocation3 + $0x18] sm:$0xf0]  ;;  %v1200_v7 = vor.u32 %v1229_v4, %v1199_v2  ;;  %v1169_v9 = vld [vmem:[#allocation3 + $0x20] sm:$0xf]  ;;  %v1232_v10 = vld [vmem:[#allocation3 + $0x24] sm:$0xf0] }
   0x8   :  { %v1204_v8 = vor.u32 %v1228_v5, %v1201_v6  ;;  %v1191_v11 = vld [vmem:[#allocation3] sm:$0xf]  ;;  %87 = vmatpush.bf16.msra.mxu0 %v1178_v3  ;;  %v1170_v12 = vor.u32 %v1232_v10, %v1169_v9  ;;  %v1227_v13 = vld [vmem:[#allocation3 + $0x4] sm:$0xf0]  ;;  %v1226_v14 = vld [vmem:[#allocation3 + $0x4] sm:$0xf] }
   0x9   :  { %v1193_v15 = vld [vmem:[#allocation3 + $0x8] sm:$0xf0]  ;;  %143 = vmatpush.bf16.msra.mxu2 %v1200_v7  ;;  %v1192_v16 = vor.u32 %v1227_v13, %v1191_v11  ;;  %v1233_v18 = vld [vmem:[#allocation3 + $0x34] sm:$0xf]  ;;  %v1179_v19 = vld [vmem:[#allocation3 + $0x38] sm:$0xf0] }
   0xa   :  { %157 = vmatpush.bf16.msra.mxu3 %v1204_v8  ;;  %v1196_v17 = vor.u32 %v1226_v14, %v1193_v15  ;;  %v1182_v20 = vor.u32 %v1233_v18, %v1179_v19  ;;  %v1231_v21 = vld [vmem:[#allocation3 + $0x24] sm:$0xf]  ;;  %v1413_v23 = vld [vmem:[%s1771_s4 + $0x18] sm:$0xff]  ;;  %v1171_v24 = vld [vmem:[#allocation3 + $0x28] sm:$0xf0]  ;;  %vm77_vm0 = vcmask 261120  }
   0xb   :  { %v1230_v22 = vld [vmem:[%s1768_s1] sm:$0xff]  ;;  %v1174_v26 = vor.u32 %v1231_v21, %v1171_v24  ;;  %v1422_v27 = vld [vmem:[%s1771_s4 + $0x10] sm:$0xff]  ;;  %v1427_v28 = vld [vmem:[%s1771_s4 + $0x38] sm:$0xff]  ;;  %v1366_v34 = vmov 0.0   ;;  %s1368_s22 = smov 64   ;;  %vm287_vm1 = vcmask 253952  }
   0xc   :  { %88 = vmatpush.bf16.msra.mxu0 %v1170_v12  ;;  %101 = vmatpush.bf16.msra.mxu1 %v1182_v20  ;;  %v1225_v25 = vld [vmem:[%s1767_s0] sm:$0xff]  ;;  %v1437_v29 = vld [vmem:[%s1771_s4 + $0x8] sm:$0xff]  ;;  %v1449_v31 = vld [vmem:[%s1771_s4 + $0x30] sm:$0xff]  ;;  %vm419_vm2 = vcmask 256002   ;;  %vm294_vm3 = vcmask 257027   ;;  %vm412_vm4 = vcmask 254977  }
   0xd   :  { %144 = vmatpush.bf16.msra.mxu2 %v1192_v16  ;;  %v1443_v30 = vld [vmem:[%s1771_s4] sm:$0xff]  ;;  %v1458_v32 = vld [vmem:[%s1771_s4 + $0x28] sm:$0xff] }
   0xe   :  { %158 = vmatpush.bf16.msra.mxu3 %v1196_v17  ;;  %v1466_v33 = vld [vmem:[%s1771_s4 + $0x20] sm:$0xff] }
   0xf   :  { %1183 = vmatmul.msk.bf16.vlgmr.msra.gmra.mxu0 %vm77_vm0, %v1230_v22  ;;  %v165_v36 = vld [vmem:[%s1770_s3] sm:$0x3]  ;;  %s1367_s3 = smov 32  }
  0x10   :  { %203 = vmatpush.msrb.mxu0 %v1413_v23  ;;  %1205 = vmatmul.msk.bf16.vlgmr.msra.gmra.mxu2 %vm77_vm0, %v1225_v25  ;;  %v167_v38 = vperm.slane %v165_v36, 0  ;;  %v168_v43 = vperm.slane %v165_v36, 1 }
  0x11   :  { %313 = vmatpush.msrb.mxu2 %v1413_v23  ;;  %1206 = vmatmul.msk.bf16.vlgmr.msra.gmra.mxu3 %vm77_vm0, %v1225_v25 }
  0x12   :  { %339 = vmatpush.msrb.mxu3 %v1427_v28  ;;  %102 = vmatpush.bf16.msra.mxu1 %v1174_v26 }
  0x13   :  { %204 = vmatpush.msrb.mxu0 %v1422_v27  ;;  %314 = vmatpush.msrb.mxu2 %v1422_v27 }
  0x14   :  { %340 = vmatpush.msrb.mxu3 %v1449_v31 }
  0x15   :  { %205 = vmatpush.msrb.mxu0 %v1437_v29  ;;  %1184 = vmatmul.msk.bf16.vlgmr.msra.gmra.mxu1 %vm77_vm0, %v1230_v22 }
  0x16   :  { %223 = vmatpush.msrb.mxu1 %v1427_v28  ;;  %315 = vmatpush.msrb.mxu2 %v1437_v29 }
  0x17   :  { %206 = vmatpush.msrb.mxu0 %v1443_v30  ;;  %341 = vmatpush.msrb.mxu3 %v1458_v32 }
  0x18   :  { %224 = vmatpush.msrb.mxu1 %v1449_v31  ;;  %316 = vmatpush.msrb.mxu2 %v1443_v30 }
  0x19   :  { %439 = vmatpush.msra.mxu0 %v1413_v23  ;;  %342 = vmatpush.msrb.mxu3 %v1466_v33 }
  0x1a   :  { %225 = vmatpush.msrb.mxu1 %v1458_v32  ;;  %563 = vmatpush.msra.mxu2 %v1413_v23 }
  0x1b   :  { %440 = vmatpush.msra.mxu0 %v1422_v27  ;;  %589 = vmatpush.msra.mxu3 %v1427_v28 }
  0x1c   :  { %226 = vmatpush.msrb.mxu1 %v1466_v33  ;;  %564 = vmatpush.msra.mxu2 %v1422_v27 }
  0x1d   :  { %441 = vmatpush.msra.mxu0 %v1437_v29  ;;  %590 = vmatpush.msra.mxu3 %v1449_v31 }
  0x1e   :  { %465 = vmatpush.msra.mxu1 %v1427_v28  ;;  %565 = vmatpush.msra.mxu2 %v1437_v29 }
  0x1f   :  { %442 = vmatpush.msra.mxu0 %v1443_v30  ;;  %591 = vmatpush.msra.mxu3 %v1458_v32 }
  0x20   :  { %466 = vmatpush.msra.mxu1 %v1449_v31  ;;  %566 = vmatpush.msra.mxu2 %v1443_v30 }
  0x21   :  { %207 = vmatmul.f32.vlgmr.msrb.gmra.mxu0 %v1366_v34  ;;  %592 = vmatpush.msra.mxu3 %v1466_v33 }
  0x22   :  { %467 = vmatpush.msra.mxu1 %v1458_v32  ;;  %684 = vmatpush.msrb.mxu0 %v1413_v23 }
  0x24   :  { %468 = vmatpush.msra.mxu1 %v1466_v33  ;;  %685 = vmatpush.msrb.mxu0 %v1422_v27 }
  0x25   :  { %227 = vmatmul.f32.vlgmr.msrb.gmra.mxu1 %v1366_v34 }
  0x26   :  { %686 = vmatpush.msrb.mxu0 %v1437_v29  ;;  %709 = vmatpush.msrb.mxu1 %v1427_v28 }
  0x28   :  { %687 = vmatpush.msrb.mxu0 %v1443_v30  ;;  %710 = vmatpush.msrb.mxu1 %v1449_v31 }
  0x2a   :  { %711 = vmatpush.msrb.mxu1 %v1458_v32 }
  0x2c   :  { %712 = vmatpush.msrb.mxu1 %v1466_v33 }
  0x8c   :  { %v90_v35 = vpop.f32.mrf.mxu0 }
  0x92   :  { %v104_v37 = vpop.f32.mrf.mxu1 }
  0x93   :  { %v146_v39 = vpop.f32.mrf.mxu2 }
  0x94   :  { %v160_v40 = vpop.f32.mrf.mxu3  ;;  %v147_v41 = vadd.f32 %v146_v39, %v90_v35  ;;  %v92_v44 = vpop.f32.mrf.mxu0 }
  0x95   :  { %v161_v42 = vadd.f32 %v160_v40, %v104_v37 }
  0x96   :  { %v171_v45 = vadd.f32 %v167_v38, %v147_v41 }
  0x97   :  { %v172_v46 = vadd.f32 %v168_v43, %v161_v42 }
  0x98   :  { %175 = vst [vmem:[#allocation2 + $0x10] sm:$0xff] %v171_v45 }
  0x99   :  { %176 = vst [vmem:[#allocation2] sm:$0xff] %v172_v46 }
  0x9a   :  { %v106_v47 = vpop.f32.mrf.mxu1 }
  0x9b   :  { %v148_v48 = vpop.f32.mrf.mxu2 }
  0x9c   :  { %v162_v49 = vpop.f32.mrf.mxu3  ;;  %v149_v50 = vadd.f32 %v148_v48, %v92_v44 }
  0x9d   :  { %v163_v51 = vadd.f32 %v162_v49, %v106_v47 }
  0x9e   :  { %v208_v52 = vpop.f32.mrf.mxu0  ;;  %v173_v53 = vadd.f32 %v167_v38, %v149_v50 }
  0x9f   :  { %v174_v54 = vadd.f32 %v168_v43, %v163_v51  ;;  %v231_v55 = vld [vmem:[#allocation2 + $0x10] sm:$0x3]  ;;  %v347_v36 = vld [vmem:[#allocation2 + $0x10] sm:$0xc] }
  0xa0   :  { %177 = vst [vmem:[#allocation2 + $0x18] sm:$0xff] %v173_v53  ;;  %v232_v56 = vadd.f32 %v231_v55, %v208_v52 }
  0xa1   :  { %178 = vst [vmem:[#allocation2 + $0x8] sm:$0xff] %v174_v54 }
  0xa2   :  { %1241 = vtanh.f32 %v232_v56  ;;  %v228_v57 = vpop.f32.mrf.mxu1  ;;  %v238_v63 = vmul.f32 0.5, %v232_v56 }
  0xa3   :  { %v235_v58 = vrot.slane %v228_v57, 2 }
  0xa8   :  { %v1242_v59 = vpop.eup %1241  ;;  %v233_v60 = vld [vmem:[#allocation2 + $0x8] sm:$0xc0]  ;;  %v352_v41 = vld [vmem:[#allocation2 + $0x8] sm:$0x30] }
  0xa9   :  { %v237_v61 = vadd.f32 %v235_v58, %v233_v60  ;;  %245 = vrot.lane.b32.xlu0 %v1242_v59, %s1367_s3 }
  0xab   :  { %1243 = vtanh.f32 %v237_v61  ;;  %v260_v0 = vmul.f32 0.5, %v237_v61 }
  0xac   :  { %1245 = vtanh.f32 %v238_v63 }
  0xad   :  { %1247 = vtanh.f32 %v260_v0 }
  0xb1   :  { %v1244_v62 = vpop.eup %1243 }
  0xb2   :  { %267 = vrot.lane.b32.xlu0 %v1244_v62, %s1367_s3  ;;  %v1246_v1 = vpop.eup %1245 }
  0xb3   :  { %v240_v2 = vadd.f32 1.0, %v1246_v1  ;;  %v1248_v5 = vpop.eup %1247 }
  0xb4   :  { %v262_v7 = vadd.f32 1.0, %v1248_v5 }
  0xb5   :  { %v241_v3 = vmul.f32 0.5, %v240_v2 }
  0xb6   :  { %v263_v8 = vmul.f32 0.5, %v262_v7 }
  0xb7   :  { %v243_v11 = vmul.f32 0.0, %v241_v3 }
  0xb8   :  { %v265_v14 = vmul.f32 0.0, %v263_v8 }
 0x11b   :  { %v246_v4 = vpop.permute.xlu0 %245 }
 0x11c   :  { %v248_v6 = vmul.f32 %v246_v4, %v241_v3 }
 0x11e   :  { %250 = vrot.lane.b32.xlu1 %v248_v6, %s1367_s3 }
 0x124   :  { %v268_v9 = vpop.permute.xlu0 %267 }
 0x125   :  { %v270_v10 = vmul.f32 %v268_v9, %v263_v8 }
 0x127   :  { %272 = vrot.lane.b32.xlu1 %v270_v10, %s1367_s3 }
 0x190   :  { %v251_v12 = vpop.permute.xlu1 %250 }
 0x191   :  { %v253_v13 = vadd.f32 %v251_v12, %v243_v11  ;;  %v473_v12 = vld [vmem:[#allocation2 + $0x10] sm:$0x30] }
 0x193   :  { %1249 = vtanh.f32 %v253_v13  ;;  %v363_v56 = vrot.slane %v253_v13, 6 }
 0x199   :  { %v1250_v15 = vpop.eup %1249  ;;  %v273_v16 = vpop.permute.xlu1 %272 }
 0x19a   :  { %v1504_v17 = vadd.f32 %v273_v16, %v265_v14  ;;  %256 = vrot.lane.b32.xlu2 %v1250_v15, %s1367_s3 }
 0x19c   :  { %1251 = vtanh.f32 %v1504_v17  ;;  %v388_v60 = vrot.slane %v1504_v17, 2  ;;  %v478_v17 = vld [vmem:[#allocation2 + $0x8] sm:$0xc] }
 0x1a2   :  { %v1252_v18 = vpop.eup %1251 }
 0x1a3   :  { %278 = vrot.lane.b32.xlu2 %v1252_v18, %s1367_s3 }
 0x1f4   :  { %v257_v19 = vpop.permute.xlu2 %256 }
 0x1f5   :  { %v1509_v20 = vmul.f32 %v257_v19, %v241_v3 }
 0x1f7   :  { %297 = vrot.lane.b32.xlu0 %v1509_v20, %s1368_s22 }
 0x1fd   :  { %v279_v21 = vpop.permute.xlu2 %278 }
 0x1fe   :  { %v1513_v22 = vmul.f32 %v279_v21, %v263_v8 }
 0x200   :  { %v322_v24 = vrot.slane %v1513_v22, 6 }
 0x202   :  { %323 = vrot.lane.b32.xlu1 %v322_v24, %s1368_s22 }
 0x269   :  { %v298_v25 = vpop.permute.xlu0 %297 }
 0x26a   :  { %1211 = vmatmul.msk.f32.vlgmr.msrb.gmra.mxu2 %vm77_vm0, %v298_v25 }
 0x26b   :  { %803 = vmatpush.msrb.mxu2 %v1413_v23 }
 0x26d   :  { %804 = vmatpush.msrb.mxu2 %v1422_v27 }
 0x26f   :  { %805 = vmatpush.msrb.mxu2 %v1437_v29 }
 0x271   :  { %806 = vmatpush.msrb.mxu2 %v1443_v30 }
 0x274   :  { %v324_v26 = vpop.permute.xlu1 %323 }
 0x275   :  { %1212 = vmatmul.msk.f32.vlgmr.msrb.gmra.mxu3 %vm77_vm0, %v324_v26 }
 0x276   :  { %829 = vmatpush.msrb.mxu3 %v1427_v28 }
 0x278   :  { %830 = vmatpush.msrb.mxu3 %v1449_v31 }
 0x27a   :  { %831 = vmatpush.msrb.mxu3 %v1458_v32 }
 0x27c   :  { %832 = vmatpush.msrb.mxu3 %v1466_v33 }
 0x2ed   :  { %v318_v34 = vpop.f32.mrf.mxu2 }
 0x2ee   :  { %v349_v35 = vrot.slane %v318_v34, 6 }
 0x2f0   :  { %v351_v37 = vadd.f32 %v349_v35, %v347_v36 }
 0x2f2   :  { %1253 = vtanh.f32 %v351_v37  ;;  %v357_v44 = vmul.f32 0.5, %v351_v37 }
 0x2f8   :  { %v1254_v38 = vpop.eup %1253  ;;  %v344_v39 = vpop.f32.mrf.mxu3 }
 0x2f9   :  { %v354_v40 = vrot.slane %v344_v39, 4  ;;  %367 = vrot.lane.b32.xlu2 %v1254_v38, %s1367_s3 }
 0x2fb   :  { %v356_v42 = vadd.f32 %v354_v40, %v352_v41 }
 0x2fd   :  { %1255 = vtanh.f32 %v356_v42  ;;  %v382_v50 = vmul.f32 0.5, %v356_v42 }
 0x2fe   :  { %1257 = vtanh.f32 %v357_v44 }
 0x2ff   :  { %1259 = vtanh.f32 %v382_v50 }
 0x303   :  { %v1256_v43 = vpop.eup %1255 }
 0x304   :  { %392 = vrot.lane.b32.xlu0 %v1256_v43, %s1367_s3  ;;  %v1258_v45 = vpop.eup %1257 }
 0x305   :  { %v359_v46 = vadd.f32 1.0, %v1258_v45  ;;  %v1260_v51 = vpop.eup %1259 }
 0x306   :  { %v384_v52 = vadd.f32 1.0, %v1260_v51 }
 0x307   :  { %v360_v47 = vmul.f32 0.5, %v359_v46 }
 0x308   :  { %v385_v53 = vmul.f32 0.5, %v384_v52 }
 0x309   :  { %v365_v57 = vmul.f32 %v363_v56, %v360_v47 }
 0x30a   :  { %v390_v62 = vmul.f32 %v388_v60, %v385_v53 }
 0x353   :  { %v368_v48 = vpop.permute.xlu2 %367 }
 0x354   :  { %v370_v49 = vmul.f32 %v368_v48, %v360_v47 }
 0x356   :  { %372 = vrot.lane.b32.xlu1 %v370_v49, %s1367_s3 }
 0x376   :  { %v393_v54 = vpop.permute.xlu0 %392 }
 0x377   :  { %v395_v55 = vmul.f32 %v393_v54, %v385_v53 }
 0x379   :  { %397 = vrot.lane.b32.xlu2 %v395_v55, %s1367_s3 }
 0x3c8   :  { %v373_v58 = vpop.permute.xlu1 %372 }
 0x3c9   :  { %v1531_v59 = vadd.f32 %v373_v58, %v365_v57 }
 0x3cb   :  { %1261 = vtanh.f32 %v1531_v59  ;;  %v489_v42 = vrot.slane %v1531_v59, 6 }
 0x3d1   :  { %v1262_v61 = vpop.eup %1261 }
 0x3d2   :  { %378 = vrot.lane.b32.xlu0 %v1262_v61, %s1367_s3 }
 0x3d3   :  { %v398_v63 = vpop.permute.xlu2 %397 }
 0x3d4   :  { %v1536_v0 = vadd.f32 %v398_v63, %v390_v62  ;;  %v602_v63 = vld [vmem:[#allocation2 + $0x8] sm:$0x3] }
 0x3d6   :  { %1263 = vtanh.f32 %v1536_v0  ;;  %v514_v46 = vrot.slane %v1536_v0, 2 }
 0x3dc   :  { %v1264_v1 = vpop.eup %1263 }
 0x3dd   :  { %403 = vrot.lane.b32.xlu1 %v1264_v1, %s1367_s3 }
 0x444   :  { %v379_v2 = vpop.permute.xlu0 %378 }
 0x445   :  { %v1540_v3 = vmul.f32 %v379_v2, %v360_v47 }
 0x447   :  { %v422_v4 = vrot.slane %v1540_v3, 2 }
 0x449   :  { %423 = vrot.lane.b32.xlu2 %v422_v4, %s1368_s22 }
 0x44f   :  { %v404_v5 = vpop.permute.xlu1 %403 }
 0x450   :  { %v1544_v6 = vmul.f32 %v404_v5, %v385_v53 }
 0x452   :  { %v448_v7 = vrot.slane %v1544_v6, 4 }
 0x454   :  { %449 = vrot.lane.b32.xlu0 %v448_v7, %s1368_s22 }
 0x4a3   :  { %v424_v8 = vpop.permute.xlu2 %423 }
 0x4a4   :  { %1213 = vmatmul.msk.f32.vlgmr.msra.gmra.mxu0 %vm77_vm0, %v424_v8 }
 0x4a5   :  { %927 = vmatpush.msra.mxu0 %v1413_v23 }
 0x4a7   :  { %928 = vmatpush.msra.mxu0 %v1422_v27 }
 0x4a9   :  { %929 = vmatpush.msra.mxu0 %v1437_v29 }
 0x4ab   :  { %930 = vmatpush.msra.mxu0 %v1443_v30 }
 0x4c6   :  { %v450_v9 = vpop.permute.xlu0 %449 }
 0x4c7   :  { %1214 = vmatmul.msk.f32.vlgmr.msra.gmra.mxu1 %vm77_vm0, %v450_v9 }
 0x4c8   :  { %953 = vmatpush.msra.mxu1 %v1427_v28 }
 0x4ca   :  { %954 = vmatpush.msra.mxu1 %v1449_v31 }
 0x4cc   :  { %955 = vmatpush.msra.mxu1 %v1458_v32 }
 0x4ce   :  { %956 = vmatpush.msra.mxu1 %v1466_v33 }
 0x521   :  { %v444_v10 = vpop.f32.mrf.mxu0 }
 0x522   :  { %v475_v11 = vrot.slane %v444_v10, 4 }
 0x524   :  { %v477_v13 = vadd.f32 %v475_v11, %v473_v12 }
 0x526   :  { %1265 = vtanh.f32 %v477_v13  ;;  %v483_v21 = vmul.f32 0.5, %v477_v13 }
 0x52c   :  { %v1266_v14 = vpop.eup %1265 }
 0x52d   :  { %493 = vrot.lane.b32.xlu1 %v1266_v14, %s1367_s3 }
 0x544   :  { %v470_v15 = vpop.f32.mrf.mxu1 }
 0x545   :  { %v480_v16 = vrot.slane %v470_v15, 6 }
 0x547   :  { %v482_v18 = vadd.f32 %v480_v16, %v478_v17 }
 0x549   :  { %1267 = vtanh.f32 %v482_v18  ;;  %v508_v25 = vmul.f32 0.5, %v482_v18 }
 0x54a   :  { %1269 = vtanh.f32 %v483_v21 }
 0x54b   :  { %1271 = vtanh.f32 %v508_v25 }
 0x54f   :  { %v1268_v19 = vpop.eup %1267 }
 0x550   :  { %518 = vrot.lane.b32.xlu2 %v1268_v19, %s1367_s3  ;;  %v1270_v24 = vpop.eup %1269 }
 0x551   :  { %v485_v26 = vadd.f32 1.0, %v1270_v24  ;;  %v1272_v37 = vpop.eup %1271 }
 0x552   :  { %v510_v38 = vadd.f32 1.0, %v1272_v37 }
 0x553   :  { %v486_v34 = vmul.f32 0.5, %v485_v26 }
 0x554   :  { %v511_v39 = vmul.f32 0.5, %v510_v38 }
 0x555   :  { %v491_v43 = vmul.f32 %v489_v42, %v486_v34 }
 0x556   :  { %v516_v48 = vmul.f32 %v514_v46, %v511_v39 }
 0x59f   :  { %v494_v35 = vpop.permute.xlu1 %493 }
 0x5a0   :  { %v496_v36 = vmul.f32 %v494_v35, %v486_v34 }
 0x5a2   :  { %498 = vrot.lane.b32.xlu0 %v496_v36, %s1367_s3 }
 0x5aa   :  { %v519_v40 = vpop.permute.xlu2 %518 }
 0x5ab   :  { %v521_v41 = vmul.f32 %v519_v40, %v511_v39 }
 0x5ad   :  { %523 = vrot.lane.b32.xlu1 %v521_v41, %s1367_s3 }
 0x614   :  { %v499_v44 = vpop.permute.xlu0 %498 }
 0x615   :  { %v501_v45 = vadd.f32 %v499_v44, %v491_v43  ;;  %v719_v44 = vld [vmem:[#allocation2] sm:$0xc0] }
 0x617   :  { %1273 = vtanh.f32 %v501_v45  ;;  %v610_v11 = vrot.slane %v501_v45, 6 }
 0x61d   :  { %v1274_v47 = vpop.eup %1273 }
 0x61e   :  { %504 = vrot.lane.b32.xlu2 %v1274_v47, %s1367_s3 }
 0x61f   :  { %v524_v49 = vpop.permute.xlu1 %523 }
 0x620   :  { %v526_v50 = vadd.f32 %v524_v49, %v516_v48 }
 0x622   :  { %1275 = vtanh.f32 %v526_v50  ;;  %v635_v16 = vrot.slane %v526_v50, 2 }
 0x628   :  { %v1276_v51 = vpop.eup %1275 }
 0x629   :  { %529 = vrot.lane.b32.xlu0 %v1276_v51, %s1367_s3 }
 0x678   :  { %v505_v52 = vpop.permute.xlu2 %504 }
 0x679   :  { %v1566_v53 = vmul.f32 %v505_v52, %v486_v34 }
 0x67b   :  { %v546_v54 = vrot.slane %v1566_v53, 4 }
 0x67d   :  { %547 = vrot.lane.b32.xlu1 %v546_v54, %s1368_s22 }
 0x69b   :  { %v530_v55 = vpop.permute.xlu0 %529 }
 0x69c   :  { %v1570_v56 = vmul.f32 %v530_v55, %v511_v39  ;;  %v717_v39 = vld [vmem:[#allocation2 + $0x18] sm:$0x3] }
 0x69e   :  { %v572_v57 = vrot.slane %v1570_v56, 2 }
 0x6a0   :  { %573 = vrot.lane.b32.xlu2 %v572_v57, %s1368_s22 }
 0x6ef   :  { %v548_v58 = vpop.permute.xlu1 %547 }
 0x6f0   :  { %1215 = vmatmul.msk.f32.vlgmr.msra.gmra.mxu2 %vm77_vm0, %v548_v58 }
 0x6f1   :  { %1051 = vmatpush.msra.mxu2 %v1413_v23  ;;  %v597_v23 = vld [vmem:[#allocation2 + $0x10] sm:$0xc0] }
 0x6f3   :  { %1052 = vmatpush.msra.mxu2 %v1422_v27 }
 0x6f5   :  { %1053 = vmatpush.msra.mxu2 %v1437_v29 }
 0x6f7   :  { %1054 = vmatpush.msra.mxu2 %v1443_v30 }
 0x6fa   :  { %v574_v59 = vpop.permute.xlu2 %573 }
 0x6fb   :  { %1216 = vmatmul.msk.f32.vlgmr.msra.gmra.mxu3 %vm77_vm0, %v574_v59 }
 0x6fc   :  { %1077 = vmatpush.msra.mxu3 %v1427_v28 }
 0x6fe   :  { %1078 = vmatpush.msra.mxu3 %v1449_v31 }
 0x700   :  { %1079 = vmatpush.msra.mxu3 %v1458_v32 }
 0x702   :  { %1080 = vmatpush.msra.mxu3 %v1466_v33 }
 0x773   :  { %v568_v60 = vpop.f32.mrf.mxu2 }
 0x774   :  { %v599_v61 = vrot.slane %v568_v60, 2 }
 0x776   :  { %v601_v62 = vadd.f32 %v599_v61, %v597_v23 }
 0x778   :  { %1277 = vtanh.f32 %v601_v62  ;;  %v604_v28 = vmul.f32 0.5, %v601_v62 }
 0x77e   :  { %v1278_v27 = vpop.eup %1277  ;;  %v594_v29 = vpop.f32.mrf.mxu3 }
 0x77f   :  { %v603_v30 = vadd.f32 %v602_v63, %v594_v29  ;;  %614 = vrot.lane.b32.xlu0 %v1278_v27, %s1367_s3 }
 0x781   :  { %1279 = vtanh.f32 %v603_v30  ;;  %v629_v31 = vmul.f32 0.5, %v603_v30 }
 0x782   :  { %1281 = vtanh.f32 %v604_v28 }
 0x783   :  { %1283 = vtanh.f32 %v629_v31 }
 0x787   :  { %v1280_v0 = vpop.eup %1279 }
 0x788   :  { %639 = vrot.lane.b32.xlu1 %v1280_v0, %s1367_s3  ;;  %v1282_v32 = vpop.eup %1281 }
 0x789   :  { %v606_v33 = vadd.f32 1.0, %v1282_v32  ;;  %v1284_v4 = vpop.eup %1283 }
 0x78a   :  { %v631_v7 = vadd.f32 1.0, %v1284_v4 }
 0x78b   :  { %v607_v1 = vmul.f32 0.5, %v606_v33 }
 0x78c   :  { %v632_v8 = vmul.f32 0.5, %v631_v7 }
 0x78d   :  { %v612_v12 = vmul.f32 %v610_v11, %v607_v1 }
 0x78e   :  { %v637_v17 = vmul.f32 %v635_v16, %v632_v8 }
 0x7f1   :  { %v615_v2 = vpop.permute.xlu0 %614 }
 0x7f2   :  { %v617_v5 = vmul.f32 %v615_v2, %v607_v1 }
 0x7f4   :  { %619 = vrot.lane.b32.xlu2 %v617_v5, %s1367_s3 }
 0x7fa   :  { %v640_v9 = vpop.permute.xlu1 %639 }
 0x7fb   :  { %v642_v10 = vmul.f32 %v640_v9, %v632_v8 }
 0x7fd   :  { %644 = vrot.lane.b32.xlu0 %v642_v10, %s1367_s3  ;;  %v837_v10 = vld [vmem:[#allocation2 + $0x18] sm:$0xc] }
 0x84e   :  { %v620_v13 = vpop.permute.xlu2 %619 }
 0x84f   :  { %v622_v14 = vadd.f32 %v620_v13, %v612_v12 }
 0x851   :  { %1285 = vtanh.f32 %v622_v14  ;;  %v730_v61 = vrot.slane %v622_v14, 6 }
 0x857   :  { %v1286_v15 = vpop.eup %1285 }
 0x858   :  { %625 = vrot.lane.b32.xlu1 %v1286_v15, %s1367_s3  ;;  %v842_v15 = vld [vmem:[#allocation2] sm:$0x30] }
 0x86f   :  { %v645_v18 = vpop.permute.xlu0 %644 }
 0x870   :  { %v647_v19 = vadd.f32 %v645_v18, %v637_v17 }
 0x872   :  { %1287 = vtanh.f32 %v647_v19  ;;  %v755_v29 = vrot.slane %v647_v19, 2 }
 0x878   :  { %v1288_v21 = vpop.eup %1287 }
 0x879   :  { %650 = vrot.lane.b32.xlu2 %v1288_v21, %s1367_s3 }
 0x8ca   :  { %v626_v24 = vpop.permute.xlu1 %625 }
 0x8cb   :  { %v1590_v25 = vmul.f32 %v626_v24, %v607_v1 }
 0x8cd   :  { %v667_v26 = vrot.slane %v1590_v25, 6 }
 0x8cf   :  { %668 = vrot.lane.b32.xlu1 %v667_v26, %s1368_s22 }
 0x8d3   :  { %v651_v34 = vpop.permute.xlu2 %650 }
 0x8d4   :  { %v1594_v35 = vmul.f32 %v651_v34, %v632_v8 }
 0x8d6   :  { %693 = vrot.lane.b32.xlu0 %v1594_v35, %s1368_s22 }
 0x941   :  { %v669_v36 = vpop.permute.xlu1 %668 }
 0x942   :  { %1217 = vmatmul.msk.f32.vlgmr.msrb.gmra.mxu0 %vm77_vm0, %v669_v36 }
 0x948   :  { %v694_v37 = vpop.permute.xlu0 %693 }
 0x949   :  { %1218 = vmatmul.msk.f32.vlgmr.msrb.gmra.mxu1 %vm77_vm0, %v694_v37 }
 0x9bf   :  { %v689_v38 = vpop.f32.mrf.mxu0 }
 0x9c0   :  { %v718_v40 = vadd.f32 %v717_v39, %v689_v38 }
 0x9c2   :  { %1289 = vtanh.f32 %v718_v40  ;;  %v724_v47 = vmul.f32 0.5, %v718_v40 }
 0x9c6   :  { %v714_v41 = vpop.f32.mrf.mxu1 }
 0x9c7   :  { %v721_v42 = vrot.slane %v714_v41, 2 }
 0x9c8   :  { %v1290_v43 = vpop.eup %1289 }
 0x9c9   :  { %v723_v45 = vadd.f32 %v721_v42, %v719_v44  ;;  %734 = vrot.lane.b32.xlu2 %v1290_v43, %s1367_s3 }
 0x9cb   :  { %1291 = vtanh.f32 %v723_v45  ;;  %v749_v54 = vmul.f32 0.5, %v723_v45 }
 0x9cc   :  { %1293 = vtanh.f32 %v724_v47 }
 0x9cd   :  { %1295 = vtanh.f32 %v749_v54 }
 0x9d1   :  { %v1292_v46 = vpop.eup %1291 }
 0x9d2   :  { %759 = vrot.lane.b32.xlu0 %v1292_v46, %s1367_s3  ;;  %v1294_v48 = vpop.eup %1293 }
 0x9d3   :  { %v726_v49 = vadd.f32 1.0, %v1294_v48  ;;  %v1296_v55 = vpop.eup %1295 }
 0x9d4   :  { %v751_v57 = vadd.f32 1.0, %v1296_v55 }
 0x9d5   :  { %v727_v50 = vmul.f32 0.5, %v726_v49 }
 0x9d6   :  { %v752_v58 = vmul.f32 0.5, %v751_v57 }
 0x9d7   :  { %v732_v23 = vmul.f32 %v730_v61, %v727_v50 }
 0x9d8   :  { %v757_v63 = vmul.f32 %v755_v29, %v752_v58 }
 0xa23   :  { %v735_v51 = vpop.permute.xlu2 %734 }
 0xa24   :  { %v737_v52 = vmul.f32 %v735_v51, %v727_v50 }
 0xa26   :  { %739 = vrot.lane.b32.xlu1 %v737_v52, %s1367_s3 }
 0xa44   :  { %v760_v59 = vpop.permute.xlu0 %759 }
 0xa45   :  { %v762_v60 = vmul.f32 %v760_v59, %v752_v58 }
 0xa47   :  { %764 = vrot.lane.b32.xlu2 %v762_v60, %s1367_s3 }
 0xa98   :  { %v740_v62 = vpop.permute.xlu1 %739 }
 0xa99   :  { %v742_v27 = vadd.f32 %v740_v62, %v732_v23 }
 0xa9b   :  { %1297 = vtanh.f32 %v742_v27  ;;  %v853_v42 = vrot.slane %v742_v27, 6  ;;  %v961_v27 = vld [vmem:[#allocation2 + $0x18] sm:$0x30] }
 0xaa1   :  { %v1298_v30 = vpop.eup %1297  ;;  %v765_v0 = vpop.permute.xlu2 %764 }
 0xaa2   :  { %v767_v28 = vadd.f32 %v765_v0, %v757_v63  ;;  %745 = vrot.lane.b32.xlu0 %v1298_v30, %s1367_s3 }
 0xaa4   :  { %1299 = vtanh.f32 %v767_v28  ;;  %v878_v46 = vrot.slane %v767_v28, 2  ;;  %v966_v28 = vld [vmem:[#allocation2] sm:$0xc] }
 0xaaa   :  { %v1300_v31 = vpop.eup %1299 }
 0xaab   :  { %770 = vrot.lane.b32.xlu1 %v1300_v31, %s1367_s3 }
 0xb14   :  { %v746_v32 = vpop.permute.xlu0 %745 }
 0xb15   :  { %v1606_v33 = vmul.f32 %v746_v32, %v727_v50 }
 0xb17   :  { %787 = vrot.lane.b32.xlu2 %v1606_v33, %s1368_s22 }
 0xb1d   :  { %v771_v1 = vpop.permute.xlu1 %770 }
 0xb1e   :  { %v1610_v2 = vmul.f32 %v771_v1, %v752_v58 }
 0xb20   :  { %v812_v4 = vrot.slane %v1610_v2, 6 }
 0xb22   :  { %813 = vrot.lane.b32.xlu0 %v812_v4, %s1368_s22 }
 0xb71   :  { %v788_v5 = vpop.permute.xlu2 %787 }
 0xb72   :  { %1219 = vmatmul.msk.f32.vlgmr.msrb.gmra.mxu2 %vm77_vm0, %v788_v5 }
 0xb94   :  { %v814_v7 = vpop.permute.xlu0 %813 }
 0xb95   :  { %1220 = vmatmul.msk.f32.vlgmr.msrb.gmra.mxu3 %vm77_vm0, %v814_v7 }
 0xbf5   :  { %v808_v8 = vpop.f32.mrf.mxu2 }
 0xbf6   :  { %v839_v9 = vrot.slane %v808_v8, 6 }
 0xbf8   :  { %v841_v11 = vadd.f32 %v839_v9, %v837_v10 }
 0xbfa   :  { %1301 = vtanh.f32 %v841_v11  ;;  %v847_v18 = vmul.f32 0.5, %v841_v11 }
 0xc00   :  { %v1302_v12 = vpop.eup %1301 }
 0xc01   :  { %857 = vrot.lane.b32.xlu1 %v1302_v12, %s1367_s3 }
 0xc18   :  { %v834_v13 = vpop.f32.mrf.mxu3 }
 0xc19   :  { %v844_v14 = vrot.slane %v834_v13, 4 }
 0xc1b   :  { %v846_v16 = vadd.f32 %v844_v14, %v842_v15 }
 0xc1d   :  { %1303 = vtanh.f32 %v846_v16  ;;  %v872_v21 = vmul.f32 0.5, %v846_v16 }
 0xc1e   :  { %1305 = vtanh.f32 %v847_v18 }
 0xc1f   :  { %1307 = vtanh.f32 %v872_v21 }
 0xc23   :  { %v1304_v17 = vpop.eup %1303 }
 0xc24   :  { %882 = vrot.lane.b32.xlu2 %v1304_v17, %s1367_s3  ;;  %v1306_v19 = vpop.eup %1305 }
 0xc25   :  { %v849_v24 = vadd.f32 1.0, %v1306_v19  ;;  %v1308_v37 = vpop.eup %1307 }
 0xc26   :  { %v874_v38 = vadd.f32 1.0, %v1308_v37 }
 0xc27   :  { %v850_v26 = vmul.f32 0.5, %v849_v24 }
 0xc28   :  { %v875_v39 = vmul.f32 0.5, %v874_v38 }
 0xc29   :  { %v855_v43 = vmul.f32 %v853_v42, %v850_v26 }
 0xc2a   :  { %v880_v48 = vmul.f32 %v878_v46, %v875_v39 }
 0xc73   :  { %v858_v34 = vpop.permute.xlu1 %857 }
 0xc74   :  { %v860_v36 = vmul.f32 %v858_v34, %v850_v26 }
 0xc76   :  { %862 = vrot.lane.b32.xlu0 %v860_v36, %s1367_s3 }
 0xc7e   :  { %v883_v40 = vpop.permute.xlu2 %882 }
 0xc7f   :  { %v885_v41 = vmul.f32 %v883_v40, %v875_v39 }
 0xc81   :  { %887 = vrot.lane.b32.xlu1 %v885_v41, %s1367_s3 }
 0xce8   :  { %v863_v44 = vpop.permute.xlu0 %862 }
 0xce9   :  { %v865_v45 = vadd.f32 %v863_v44, %v855_v43 }
 0xceb   :  { %1309 = vtanh.f32 %v865_v45  ;;  %v977_v16 = vrot.slane %v865_v45, 6 }
 0xcf1   :  { %v1310_v47 = vpop.eup %1309 }
 0xcf2   :  { %868 = vrot.lane.b32.xlu2 %v1310_v47, %s1367_s3 }
 0xcf3   :  { %v888_v49 = vpop.permute.xlu1 %887 }
 0xcf4   :  { %v890_v50 = vadd.f32 %v888_v49, %v880_v48  ;;  %v1085_v48 = vld [vmem:[#allocation2 + $0x18] sm:$0xc0] }
 0xcf6   :  { %1311 = vtanh.f32 %v890_v50  ;;  %v1002_v24 = vrot.slane %v890_v50, 2 }
 0xcfc   :  { %v1312_v51 = vpop.eup %1311 }
 0xcfd   :  { %893 = vrot.lane.b32.xlu0 %v1312_v51, %s1367_s3 }
 0xd4c   :  { %v869_v52 = vpop.permute.xlu2 %868 }
 0xd4d   :  { %v1622_v54 = vmul.f32 %v869_v52, %v850_v26  ;;  %v1090_v52 = vld [vmem:[#allocation2] sm:$0x3] }
 0xd4f   :  { %v910_v55 = vrot.slane %v1622_v54, 2 }
 0xd51   :  { %911 = vrot.lane.b32.xlu1 %v910_v55, %s1368_s22 }
 0xd6f   :  { %v894_v57 = vpop.permute.xlu0 %893 }
 0xd70   :  { %v1626_v58 = vmul.f32 %v894_v57, %v875_v39 }
 0xd72   :  { %v936_v59 = vrot.slane %v1626_v58, 4 }
 0xd74   :  { %937 = vrot.lane.b32.xlu2 %v936_v59, %s1368_s22 }
 0xdc3   :  { %v912_v60 = vpop.permute.xlu1 %911 }
 0xdc4   :  { %1221 = vmatmul.msk.f32.vlgmr.msra.gmra.mxu0 %vm77_vm0, %v912_v60 }
 0xdce   :  { %v938_v61 = vpop.permute.xlu2 %937 }
 0xdcf   :  { %1222 = vmatmul.msk.f32.vlgmr.msra.gmra.mxu1 %vm77_vm0, %v938_v61 }
 0xe41   :  { %v932_v23 = vpop.f32.mrf.mxu0 }
 0xe42   :  { %v963_v62 = vrot.slane %v932_v23, 4 }
 0xe44   :  { %v965_v29 = vadd.f32 %v963_v62, %v961_v27 }
 0xe46   :  { %1313 = vtanh.f32 %v965_v29  ;;  %v971_v1 = vmul.f32 0.5, %v965_v29 }
 0xe4c   :  { %v1314_v63 = vpop.eup %1313  ;;  %v958_v30 = vpop.f32.mrf.mxu1 }
 0xe4d   :  { %v968_v0 = vrot.slane %v958_v30, 6  ;;  %981 = vrot.lane.b32.xlu0 %v1314_v63, %s1367_s3 }
 0xe4f   :  { %v970_v31 = vadd.f32 %v968_v0, %v966_v28 }
 0xe51   :  { %1315 = vtanh.f32 %v970_v31  ;;  %v996_v5 = vmul.f32 0.5, %v970_v31 }
 0xe52   :  { %1317 = vtanh.f32 %v971_v1  ;;  %v414_v1 = vpack.c.bf16 %v1544_v6, %v1544_v6 }
 0xe53   :  { %1319 = vtanh.f32 %v996_v5  ;;  %v780_v5 = vpack.c.bf16 %v1610_v2, %v1610_v2  ;;  %v289_v2 = vpack.c.bf16 %v1513_v22, %v1513_v22  ;;  %v660_v22 = vpack.c.bf16 %v1594_v35, %v1594_v35 }
 0xe57   :  { %v1316_v32 = vpop.eup %1315 }
 0xe58   :  { %1006 = vrot.lane.b32.xlu1 %v1316_v32, %s1367_s3  ;;  %v1318_v4 = vpop.eup %1317  ;;  %v282_v32 = vpack.c.bf16 %v1509_v20, %v1509_v20 }
 0xe59   :  { %v973_v7 = vadd.f32 1.0, %v1318_v4  ;;  %v1320_v11 = vpop.eup %1319  ;;  %v654_v4 = vpack.c.bf16 %v1590_v25, %v1590_v25 }
 0xe5a   :  { %v998_v12 = vadd.f32 1.0, %v1320_v11 }
 0xe5b   :  { %v974_v8 = vmul.f32 0.5, %v973_v7 }
 0xe5c   :  { %v999_v13 = vmul.f32 0.5, %v998_v12 }
 0xe5d   :  { %v979_v17 = vmul.f32 %v977_v16, %v974_v8  ;;  %v533_v16 = vpack.c.bf16 %v1566_v53, %v1566_v53  ;;  %v539_v53 = vpack.c.bf16 %v1570_v56, %v1570_v56 }
 0xe5e   :  { %v1004_v26 = vmul.f32 %v1002_v24, %v999_v13  ;;  %v903_v24 = vpack.c.bf16 %v1626_v58, %v1626_v58 }
 0xebf   :  { %v982_v9 = vpop.permute.xlu0 %981 }
 0xec0   :  { %v984_v10 = vmul.f32 %v982_v9, %v974_v8 }
 0xec2   :  { %986 = vrot.lane.b32.xlu2 %v984_v10, %s1367_s3 }
 0xeca   :  { %v1007_v14 = vpop.permute.xlu1 %1006 }
 0xecb   :  { %v1009_v15 = vmul.f32 %v1007_v14, %v999_v13 }
 0xecd   :  { %1011 = vrot.lane.b32.xlu0 %v1009_v15, %s1367_s3 }
 0xf1c   :  { %v987_v18 = vpop.permute.xlu2 %986 }
 0xf1d   :  { %v1636_v19 = vadd.f32 %v987_v18, %v979_v17  ;;  %v407_v17 = vpack.c.bf16 %v1540_v3, %v1540_v3  ;;  %v897_v3 = vpack.c.bf16 %v1622_v54, %v1622_v54 }
 0xf1f   :  { %1321 = vtanh.f32 %v1636_v19  ;;  %v1098_v20 = vrot.slane %v1636_v19, 6 }
 0xf25   :  { %v1322_v21 = vpop.eup %1321 }
 0xf26   :  { %992 = vrot.lane.b32.xlu1 %v1322_v21, %s1367_s3  ;;  %v774_v21 = vpack.c.bf16 %v1606_v33, %v1606_v33 }
 0xf3f   :  { %v1012_v34 = vpop.permute.xlu0 %1011 }
 0xf40   :  { %v1014_v36 = vadd.f32 %v1012_v34, %v1004_v26 }
 0xf42   :  { %1323 = vtanh.f32 %v1014_v36  ;;  %v1123_v10 = vrot.slane %v1014_v36, 2 }
 0xf48   :  { %v1324_v37 = vpop.eup %1323 }
 0xf49   :  { %1017 = vrot.lane.b32.xlu2 %v1324_v37, %s1367_s3 }
 0xf98   :  { %v993_v38 = vpop.permute.xlu1 %992 }
 0xf99   :  { %v995_v39 = vmul.f32 %v993_v38, %v974_v8 }
 0xf9b   :  { %v1034_v40 = vrot.slane %v995_v39, 4  ;;  %v1021_v7 = vpack.c.bf16 %v995_v39, %v995_v39 }
 0xf9d   :  { %1035 = vrot.lane.b32.xlu0 %v1034_v40, %s1368_s22 }
 0xfa3   :  { %v1018_v41 = vpop.permute.xlu2 %1017 }
 0xfa4   :  { %v1642_v42 = vmul.f32 %v1018_v41, %v999_v13 }
 0xfa6   :  { %v1060_v43 = vrot.slane %v1642_v42, 2  ;;  %v1027_v56 = vpack.c.bf16 %v1642_v42, %v1642_v42 }
 0xfa8   :  { %1061 = vrot.lane.b32.xlu1 %v1060_v43, %s1368_s22 }
0x100f   :  { %v1036_v44 = vpop.permute.xlu0 %1035 }
0x1010   :  { %1223 = vmatmul.msk.f32.vlgmr.msra.gmra.mxu2 %vm77_vm0, %v1036_v44 }
0x101a   :  { %v1062_v45 = vpop.permute.xlu1 %1061 }
0x101b   :  { %1224 = vmatmul.msk.f32.vlgmr.msra.gmra.mxu3 %vm77_vm0, %v1062_v45 }
0x1093   :  { %v1056_v46 = vpop.f32.mrf.mxu2 }
0x1094   :  { %v1087_v47 = vrot.slane %v1056_v46, 2 }
0x1096   :  { %v1089_v49 = vadd.f32 %v1087_v47, %v1085_v48 }
0x1098   :  { %1325 = vtanh.f32 %v1089_v49  ;;  %v1092_v59 = vmul.f32 0.5, %v1089_v49 }
0x109e   :  { %v1326_v50 = vpop.eup %1325  ;;  %v1082_v51 = vpop.f32.mrf.mxu3 }
0x109f   :  { %v1091_v55 = vadd.f32 %v1090_v52, %v1082_v51  ;;  %1102 = vrot.lane.b32.xlu2 %v1326_v50, %s1367_s3 }
0x10a1   :  { %1327 = vtanh.f32 %v1091_v55  ;;  %v1117_v29 = vmul.f32 0.5, %v1091_v55 }
0x10a2   :  { %1329 = vtanh.f32 %v1092_v59 }
0x10a3   :  { %1331 = vtanh.f32 %v1117_v29 }
0x10a7   :  { %v1328_v57 = vpop.eup %1327 }
0x10a8   :  { %1127 = vrot.lane.b32.xlu0 %v1328_v57, %s1367_s3  ;;  %v1330_v60 = vpop.eup %1329 }
0x10a9   :  { %v1094_v61 = vadd.f32 1.0, %v1330_v60  ;;  %v1332_v63 = vpop.eup %1331 }
0x10aa   :  { %v1119_v30 = vadd.f32 1.0, %v1332_v63 }
0x10ab   :  { %v1650_v23 = vmul.f32 0.5, %v1094_v61 }
0x10ac   :  { %v1654_v0 = vmul.f32 0.5, %v1119_v30 }
0x10ad   :  { %v1100_v8 = vmul.f32 %v1098_v20, %v1650_v23 }
0x10ae   :  { %v1125_v25 = vmul.f32 %v1123_v10, %v1654_v0 }
0x10f9   :  { %v1103_v62 = vpop.permute.xlu2 %1102 }
0x10fa   :  { %v1105_v27 = vmul.f32 %v1103_v62, %v1650_v23 }
0x10fc   :  { %1107 = vrot.lane.b32.xlu1 %v1105_v27, %s1367_s3 }
0x111a   :  { %v1128_v28 = vpop.permute.xlu0 %1127 }
0x111b   :  { %v1130_v31 = vmul.f32 %v1128_v28, %v1654_v0 }
0x111d   :  { %1132 = vrot.lane.b32.xlu2 %v1130_v31, %s1367_s3 }
0x1125   :  { %284 = vrot.lane.b32.xlu2 %v282_v32, %s1368_s22 }
0x112d   :  { %416 = vrot.lane.b32.xlu2 %v414_v1, %s1368_s22 }
0x1135   :  { %656 = vrot.lane.b32.xlu2 %v654_v4, %s1368_s22 }
0x113d   :  { %782 = vrot.lane.b32.xlu2 %v780_v5, %s1368_s22 }
0x1145   :  { %1023 = vrot.lane.b32.xlu2 %v1021_v7, %s1368_s22 }
0x116e   :  { %v1108_v6 = vpop.permute.xlu1 %1107 }
0x116f   :  { %v1110_v9 = vadd.f32 %v1108_v6, %v1100_v8 }
0x1171   :  { %1333 = vtanh.f32 %v1110_v9 }
0x1177   :  { %v1334_v11 = vpop.eup %1333  ;;  %v1133_v12 = vpop.permute.xlu2 %1132 }
0x1178   :  { %v1135_v13 = vadd.f32 %v1133_v12, %v1125_v25  ;;  %1113 = vrot.lane.b32.xlu0 %v1334_v11, %s1367_s3 }
0x117a   :  { %1335 = vtanh.f32 %v1135_v13 }
0x117f   :  { %v285_v14 = vpop.permute.xlu2 %284 }
0x1180   :  { %v1336_v15 = vpop.eup %1335  ;;  %288 = vst.msk [vmem:[%s1772_s5] sm:$0x1] %vm287_vm1, %v285_v14  ;;  %291 = vrot.lane.b32.xlu0 %v289_v2, %s1368_s22 }
0x1181   :  { %1138 = vrot.lane.b32.xlu1 %v1336_v15, %s1367_s3 }
0x1187   :  { %v417_v18 = vpop.permute.xlu2 %416 }
0x1188   :  { %420 = vst.msk [vmem:[%s1773_s6 + $0x4] sm:$0x4] %vm419_vm2, %v417_v18  ;;  %535 = vrot.lane.b32.xlu0 %v533_v16, %s1368_s22 }
0x1189   :  { %409 = vrot.lane.b32.xlu1 %v407_v17, %s1368_s22 }
0x118f   :  { %v657_v19 = vpop.permute.xlu2 %656 }
0x1190   :  { %659 = vst.msk [vmem:[%s1772_s5] sm:$0x8] %vm294_vm3, %v657_v19  ;;  %662 = vrot.lane.b32.xlu0 %v660_v22, %s1368_s22 }
0x1191   :  { %541 = vrot.lane.b32.xlu1 %v539_v53, %s1368_s22 }
0x1197   :  { %v783_v35 = vpop.permute.xlu2 %782 }
0x1198   :  { %785 = vst.msk [vmem:[%s1773_s6] sm:$0x8] %vm294_vm3, %v783_v35  ;;  %899 = vrot.lane.b32.xlu0 %v897_v3, %s1368_s22 }
0x1199   :  { %776 = vrot.lane.b32.xlu1 %v774_v21, %s1368_s22 }
0x119f   :  { %v1024_v54 = vpop.permute.xlu2 %1023 }
0x11a0   :  { %1026 = vst.msk [vmem:[%s1772_s5 + $0x4] sm:$0x4] %vm419_vm2, %v1024_v54  ;;  %1029 = vrot.lane.b32.xlu0 %v1027_v56, %s1368_s22 }
0x11a1   :  { %905 = vrot.lane.b32.xlu1 %v903_v24, %s1368_s22 }
0x11ea   :  { %v1114_v33 = vpop.permute.xlu0 %1113 }
0x11eb   :  { %v1116_v26 = vmul.f32 %v1114_v33, %v1650_v23 }
0x11ed   :  { %v1142_v34 = vpack.c.bf16 %v1116_v26, %v1116_v26 }
0x11ef   :  { %1144 = vrot.lane.b32.xlu1 %v1142_v34, %s1368_s22 }
0x11f2   :  { %v292_v36 = vpop.permute.xlu0 %291 }
0x11f3   :  { %295 = vst.msk [vmem:[%s1773_s6 + $0x4] sm:$0x8] %vm294_vm3, %v292_v36  ;;  %v1139_v58 = vpop.permute.xlu1 %1138 }
0x11f4   :  { %v1141_v37 = vmul.f32 %v1139_v58, %v1654_v0 }
0x11f6   :  { %v1148_v38 = vpack.c.bf16 %v1141_v37, %v1141_v37 }
0x11f8   :  { %1150 = vrot.lane.b32.xlu2 %v1148_v38, %s1368_s22 }
0x11fa   :  { %v536_v39 = vpop.permute.xlu0 %535 }
0x11fb   :  { %538 = vst.msk [vmem:[%s1772_s5] sm:$0x4] %vm419_vm2, %v536_v39  ;;  %v410_v40 = vpop.permute.xlu1 %409 }
0x11fc   :  { %413 = vst.msk [vmem:[%s1772_s5] sm:$0x2] %vm412_vm4, %v410_v40 }
0x1202   :  { %v663_v41 = vpop.permute.xlu0 %662 }
0x1203   :  { %665 = vst.msk [vmem:[%s1773_s6 + $0x4] sm:$0x1] %vm287_vm1, %v663_v41  ;;  %v542_v42 = vpop.permute.xlu1 %541 }
0x1204   :  { %544 = vst.msk [vmem:[%s1773_s6 + $0x4] sm:$0x2] %vm412_vm4, %v542_v42 }
0x120a   :  { %v900_v43 = vpop.permute.xlu0 %899 }
0x120b   :  { %902 = vst.msk [vmem:[%s1772_s5 + $0x4] sm:$0x2] %vm412_vm4, %v900_v43  ;;  %v777_v44 = vpop.permute.xlu1 %776 }
0x120c   :  { %779 = vst.msk [vmem:[%s1772_s5 + $0x4] sm:$0x1] %vm287_vm1, %v777_v44 }
0x1212   :  { %v1030_v45 = vpop.permute.xlu0 %1029 }
0x1213   :  { %1032 = vst.msk [vmem:[%s1773_s6] sm:$0x2] %vm412_vm4, %v1030_v45  ;;  %v906_v46 = vpop.permute.xlu1 %905 }
0x1214   :  { %908 = vst.msk [vmem:[%s1773_s6] sm:$0x4] %vm419_vm2, %v906_v46 }
0x1252   :  { %v1151_v47 = vpop.permute.xlu2 %1150 }
0x1253   :  { %1153 = vst.msk [vmem:[%s1773_s6] sm:$0x1] %vm287_vm1, %v1151_v47 }
0x1261   :  { %v1145_v48 = vpop.permute.xlu1 %1144 }
0x1262   :  { %1147 = vst.msk [vmem:[%s1772_s5 + $0x4] sm:$0x8] %vm294_vm3, %v1145_v48 }
0x1263   :  { %1162 = vsyncpa [#allocation4], 1 }

</bundles_post_ra>
